<compile_context>
chip_gen: v7x
topology: tpu7x:2x2x1
jax: 0.10.0
libtpu: 0.0.40
codegen_flags: <defaults>
</compile_context>

<pallas_src>
import numpy as np

import jax
import jax.numpy as jnp
from jax import lax
from jax.experimental import pallas as pl
from jax.experimental.pallas import tpu as pltpu

# --- model hyper-parameters (small but consistent with Model4_2_1 defaults) ---
D_FEAT = 6
T_STEPS = 8
HIDDEN = 32          # hidden_size (kept small for the test)
HEAD_NUM = 3
NUM_RELATION = 4
N_STOCKS = 8         # "batch" N = number of stocks
NEG_SLOPE = 0.01     # nn.LeakyReLU default
EPS = 1e-6


# ----------------------------------------------------------------------------
# Single fused kernel: 4x (2-layer GRU) recurrence + attention heads +
# relation attention + final fc.
# ----------------------------------------------------------------------------
def fused_model_kernel(x2d_ref,
                       wih0_ref, whh0_ref, bih0_ref, bhh0_ref,
                       w1_ref, b1_ref,
                       wabt_ref, rel_ref, wrel_ref,
                       fcw_ref, bias_ref, fcb_ref,
                       out_ref, gi0_scr):
    N = out_ref.shape[0]
    H = HIDDEN
    G = 1 + HEAD_NUM                         # 4 GRUs fused along lanes
    GH = G * H                               # 128
    HN1 = HEAD_NUM + 1

    def sig(v):                              # sigmoid with a single EUP op
        return 0.5 * jnp.tanh(0.5 * v) + 0.5

    # ------------------ fused 4-GRU, 2-layer recurrence ------------------
    # Hidden state: (N, GH), GRU g at lanes [g*H, (g+1)*H).
    # Layer-0 input projection for ALL timesteps / GRUs, staged in VMEM scratch.
    gi0_scr[...] = (jnp.dot(x2d_ref[...], wih0_ref[...],
                            preferred_element_type=jnp.float32) + bih0_ref[...])

    h0 = jnp.zeros((N, GH), jnp.float32)
    h1 = jnp.zeros((N, GH), jnp.float32)
    for t in range(T_STEPS):                 # static unroll (T = 8)
        gi0 = gi0_scr[t * N:(t + 1) * N, :]                                    # (N, 3GH)
        gh0 = (jnp.dot(h0, whh0_ref[...], preferred_element_type=jnp.float32)
               + bhh0_ref[...])                                                # (N, 3GH)
        r0 = sig(gi0[:, 0:GH] + gh0[:, 0:GH])
        z0 = sig(gi0[:, GH:2 * GH] + gh0[:, GH:2 * GH])
        n0 = jnp.tanh(gi0[:, 2 * GH:3 * GH] + r0 * gh0[:, 2 * GH:3 * GH])
        h0 = (1.0 - z0) * n0 + z0 * h0

        # Layer 1: single matmul on [h0 | h1]; columns [r | z | n_i | n_h],
        # r/z already pre-summed (input + hidden weights stacked along K).
        g1 = (jnp.dot(jnp.concatenate([h0, h1], axis=1), w1_ref[...],
                      preferred_element_type=jnp.float32) + b1_ref[...])       # (N, 4GH)
        r1 = sig(g1[:, 0:GH])
        z1 = sig(g1[:, GH:2 * GH])
        n1 = jnp.tanh(g1[:, 2 * GH:3 * GH] + r1 * g1[:, 3 * GH:4 * GH])
        h1 = (1.0 - z1) * n1 + z1 * h1

    x = h1[:, 0:H]                           # main rnn last hidden (N, H)

    # --------------- merged epilogue "gram" matmul ---------------
    # L = [f_norm(head0) ; f_norm(head1) ; f_norm(head2) ; x ; wa^T ; wb^T]
    # gram = L @ L^T gives, in one MXU push:
    #   - per-head cosine-similarity matrices (diag blocks of the f_norm part)
    #   - sa  = x @ wa  (row term, stocks on sublanes)
    #   - sbt = wb^T @ x^T (col term, stocks on lanes)
    f_stack = jnp.concatenate([h1[:, (h + 1) * H:(h + 2) * H]
                               for h in range(HEAD_NUM)], axis=0)              # (3N, H)
    fn2 = jnp.sum(f_stack * f_stack, axis=1, keepdims=True)
    f_norm = f_stack * lax.rsqrt(jnp.maximum(fn2, EPS * EPS))                  # == f/max(|f|,eps)

    lhs = jnp.concatenate([f_norm, x, wabt_ref[...]], axis=0)                  # (4N+2HN1, H)
    gram = lax.dot_general(lhs, lhs, (((1,), (1,)), ((), ())),
                           preferred_element_type=jnp.float32)                 # (40, 40)
    xoff = HEAD_NUM * N
    waoff = xoff + N
    wboff = waoff + HN1
    sa = gram[xoff:xoff + N, waoff:waoff + HN1]                                # (N, HN1)
    sbt = gram[wboff:wboff + HN1, xoff:xoff + N]                               # (HN1, N)

    row_ids = lax.broadcasted_iota(jnp.int32, (N, N), 0)
    col_ids = lax.broadcasted_iota(jnp.int32, (N, N), 1)
    diag = row_ids == col_ids
    eye = diag.astype(jnp.float32)

    def leaky(v):
        return jnp.where(v >= 0.0, v, NEG_SLOPE * v)

    def row_softmax(v):                      # softmax over dim=1
        v = v - jnp.max(v, axis=1, keepdims=True)
        e = jnp.exp(v)
        return e * pl.reciprocal(jnp.sum(e, axis=1, keepdims=True), approx=True)

    # ---- attention heads (build_att_tensor) ----
    vw_blocks = []
    for h in range(HEAD_NUM):
        g = gram[h * N:(h + 1) * N, h * N:(h + 1) * N] - eye                   # sim - eye
        w = leaky(sa[:, h:h + 1] + sbt[h:h + 1, :] + bias_ref[h])              # (N, N)
        # Mask the diagonal explicitly (robust to matmul rounding) plus any
        # genuinely-zero similarity entry, matching the reference intent.
        masked = jnp.where(jnp.logical_or(g == 0.0, diag), -1e10, g * w)
        vw_blocks.append(row_softmax(masked))

    # ---- relation-matrix attention (rel_ref is (R, N, N); weights in SMEM) ----
    s_rel = wrel_ref[0] * rel_ref[0]
    rel_sum = rel_ref[0]
    for r in range(1, NUM_RELATION):
        rel_r = rel_ref[r]
        s_rel = s_rel + wrel_ref[r] * rel_r
        rel_sum = rel_sum + rel_r
    w = leaky(sa[:, HEAD_NUM:HEAD_NUM + 1] + sbt[HEAD_NUM:HEAD_NUM + 1, :]
              + s_rel + bias_ref[HEAD_NUM])
    mask = jnp.where(rel_sum != 0.0, 1.0, 0.0)
    tw = mask * w
    tw = jnp.where(tw == 0.0, -1e5, tw)      # matches torch (temp_weight == 0)
    vw_blocks.append(row_softmax(tw) * mask)

    # ---- single merged context matmul + single lane reduce for the fc layer ----
    # ctx[i,:] = sum_blocks vw_blk[i,:] @ (x * fcw[blk+1]); summing over lanes and
    # adding the x*fcw[0] term reproduces fc(concat(hidden_vector)) exactly.
    vw_all = jnp.concatenate(vw_blocks, axis=1)                                # (N, 4N)
    x_scaled = jnp.concatenate([x * fcw_ref[k + 1] for k in range(HN1)],
                               axis=0)                                         # (4N, H)
    ctx = jnp.dot(vw_all, x_scaled, preferred_element_type=jnp.float32)        # (N, H)
    pred = (jnp.sum(x * fcw_ref[0] + ctx, axis=1, keepdims=True)
            + fcb_ref[0])                                                      # (N, 1)

    # Lane-dense writeback: [hidden (N, GH) | pred broadcast (N, GH)].
    out_ref[...] = jnp.concatenate([h1, jnp.broadcast_to(pred, (N, GH))], axis=1)


# ----------------------------------------------------------------------------
# Glue / wrapper
# ----------------------------------------------------------------------------
def model_forward(x, relation, params):
    N = x.shape[0]
    G = 1 + HEAD_NUM
    GH = G * HIDDEN

    # Layout plumbing only (no compute): sequence as (T*N, D), relation as (R, N, N).
    raw = x.reshape(N, D_FEAT, T_STEPS).transpose(0, 2, 1)     # (N, T, D) like torch
    x2d = jnp.transpose(raw, (1, 0, 2)).reshape(T_STEPS * N, D_FEAT)
    rel_t = jnp.transpose(relation, (2, 0, 1))                 # (R, N, N)

    gp = params["gru_packed"]

    # TODO(synk): for large N, row-tile the relation / (N, N) attention matrices
    #   with a grid; budget tiles against v7x's 64 MiB physical / 32 MiB scoped
    #   VMEM (BlockSpec double-buffers each input) and set vmem_limit_bytes.
    # TODO(synk): for batched inference (many stock universes / dates), add a
    #   leading batch grid axis with dimension_semantics=("parallel",) so v7x's
    #   two TensorCores split the batch and the MXU sees >8 sublanes per dot.
    vmem = pl.BlockSpec(memory_space=pltpu.MemorySpace.VMEM)
    smem = pl.BlockSpec(memory_space=pltpu.MemorySpace.SMEM)

    out = pl.pallas_call(
        fused_model_kernel,
        out_shape=jax.ShapeDtypeStruct((N, 2 * GH), jnp.float32),
        in_specs=[
            vmem,                     # x2d (T*N, D)
            vmem, vmem, vmem, vmem,   # wih0, whh0, bih0, bhh0
            vmem, vmem,               # w1 (2GH, 4GH), b1 (1, 4GH)
            vmem,                     # wab_t (2*(HN+1), H)
            vmem,                     # relation (R, N, N)
            smem,                     # relation weights (R,)
            vmem,                     # fc weight blocks (2+HN, 1, H)
            smem,                     # head/relation biases (HN+1,)
            smem,                     # fc bias (1,)
        ],
        out_specs=vmem,
        scratch_shapes=[pltpu.VMEM((T_STEPS * N, 3 * GH), jnp.float32)],
    )(x2d, gp["wih0"], gp["whh0"], gp["bih0"], gp["bhh0"],
      gp["w1"], gp["b1"],
      params["wab_t"], rel_t, params["wrel_r"],
      params["fc_w_lanes"], params["att_bias"], params["fc_b"])

    pred = out[:, GH]            # pred broadcast block, take first lane
    h_all = out[:, :GH]          # (N, 4H): [main | head0 | head1 | head2]
    return pred, h_all


# ----------------------------------------------------------------------------
# Deterministic parameter construction (shapes from Model4_2_1.__init__)
# ----------------------------------------------------------------------------
def init_gru(key, in_size, hidden):
    bound = 1.0 / jnp.sqrt(hidden)
    ks = jax.random.split(key, 8)
    u = lambda k, s: jax.random.uniform(k, s, jnp.float32, -bound, bound)
    return dict(
        w_ih0=u(ks[0], (3 * hidden, in_size)), w_hh0=u(ks[1], (3 * hidden, hidden)),
        b_ih0=u(ks[2], (3 * hidden,)),         b_hh0=u(ks[3], (3 * hidden,)),
        w_ih1=u(ks[4], (3 * hidden, hidden)),  w_hh1=u(ks[5], (3 * hidden, hidden)),
        b_ih1=u(ks[6], (3 * hidden,)),         b_hh1=u(ks[7], (3 * hidden,)),
    )


def xavier_uniform(key, shape):
    bound = (6.0 / (shape[0] + shape[1])) ** 0.5
    return jax.random.uniform(key, shape, jnp.float32, -bound, bound)


def pack_gru_fused(plist):
    """Pack the 4 GRUs into fused gate-major weight matrices.

    Hidden state puts GRU g at lanes [g*H, (g+1)*H).  Columns:
      * wih0/whh0 (layer 0): [r | z | n] gate blocks of width G*H, GRU g at
        [g*H, (g+1)*H) within each block (whh0 block-diagonal).
      * w1 (layer 1, fused on [h0 | h1]): [r | z | n_i | n_h]; the r/z column
        blocks carry both input (rows 0:GH) and hidden (rows GH:2GH) weights so
        the MXU pre-sums them; n_i / n_h stay separate for the r*gh_n term.
    """
    G, H = len(plist), HIDDEN
    GH = G * H

    def bd(key, gate):                       # (GH, GH) block-diag of one gate
        M = np.zeros((GH, GH), np.float32)
        for g, p in enumerate(plist):
            w = np.asarray(p[key])
            M[g * H:(g + 1) * H, g * H:(g + 1) * H] = w[gate * H:(gate + 1) * H, :].T
        return M

    def gate_bias(key, gate):                # (GH,)
        b = np.zeros((GH,), np.float32)
        for g, p in enumerate(plist):
            bb = np.asarray(p[key])
            b[g * H:(g + 1) * H] = bb[gate * H:(gate + 1) * H]
        return b

    # layer-0 input projection: shared x -> dense (D, 3GH)
    wih0 = np.zeros((D_FEAT, 3 * GH), np.float32)
    for g, p in enumerate(plist):
        w = np.asarray(p["w_ih0"])
        for gate in range(3):
            wih0[:, gate * GH + g * H: gate * GH + (g + 1) * H] = \
                w[gate * H:(gate + 1) * H, :].T

    whh0 = np.concatenate([bd("w_hh0", 0), bd("w_hh0", 1), bd("w_hh0", 2)], axis=1)
    bih0 = np.concatenate([gate_bias("b_ih0", g) for g in range(3)])[None, :]
    bhh0 = np.concatenate([gate_bias("b_hh0", g) for g in range(3)])[None, :]

    # layer-1 fused projection on [h0 | h1]: (2GH, 4GH), cols [r | z | n_i | n_h]
    w1 = np.zeros((2 * GH, 4 * GH), np.float32)
    w1[0:GH, 0:GH] = bd("w_ih1", 0);          w1[GH:2 * GH, 0:GH] = bd("w_hh1", 0)
    w1[0:GH, GH:2 * GH] = bd("w_ih1", 1);     w1[GH:2 * GH, GH:2 * GH] = bd("w_hh1", 1)
    w1[0:GH, 2 * GH:3 * GH] = bd("w_ih1", 2)
    w1[GH:2 * GH, 3 * GH:4 * GH] = bd("w_hh1", 2)

    b1 = np.concatenate([
        gate_bias("b_ih1", 0) + gate_bias("b_hh1", 0),
        gate_bias("b_ih1", 1) + gate_bias("b_hh1", 1),
        gate_bias("b_ih1", 2),
        gate_bias("b_hh1", 2)])[None, :]

    return dict(wih0=jnp.asarray(wih0), whh0=jnp.asarray(whh0),
                bih0=jnp.asarray(bih0), bhh0=jnp.asarray(bhh0),
                w1=jnp.asarray(w1), b1=jnp.asarray(b1))


# Pure-JAX 2-layer GRU reference (sanity-check of the fused Pallas recurrence).
def gru_two_layer_ref(raw, p):
    def layer(seq, w_ih, w_hh, b_ih, b_hh):
        Hh = w_hh.shape[1]

        def cell(h, xt):
            gi = xt @ w_ih.T + b_ih
            gh = h @ w_hh.T + b_hh
            r = jax.nn.sigmoid(gi[:, :Hh] + gh[:, :Hh])
            z = jax.nn.sigmoid(gi[:, Hh:2 * Hh] + gh[:, Hh:2 * Hh])
            n = jnp.tanh(gi[:, 2 * Hh:] + r * gh[:, 2 * Hh:])
            h_new = (1.0 - z) * n + z * h
            return h_new, h_new

        h0 = jnp.zeros((seq.shape[1], Hh), jnp.float32)
        _, outs = lax.scan(cell, h0, seq)
        return outs

    seq = jnp.transpose(raw, (1, 0, 2))
    o0 = layer(seq, p["w_ih0"], p["w_hh0"], p["b_ih0"], p["b_hh0"])
    o1 = layer(o0, p["w_ih1"], p["w_hh1"], p["b_ih1"], p["b_hh1"])
    return o1[-1]


if __name__ == "__main__":
    key = jax.random.PRNGKey(0)
    keys = jax.random.split(key, 16)

    # GRUs: main rnn + HEAD_NUM head rnns (all with input d_feat, 2 layers).
    gru_params = [init_gru(keys[i], D_FEAT, HIDDEN) for i in range(1 + HEAD_NUM)]

    # Attention weights W_i (2H,1), b_i = 0 ; W (2H+R,1), b = 0 (as in __init__).
    W_heads = [xavier_uniform(keys[4 + i], (2 * HIDDEN, 1)) for i in range(HEAD_NUM)]
    W_rel = xavier_uniform(keys[8], (2 * HIDDEN + NUM_RELATION, 1))
    b_heads = [0.0] * HEAD_NUM
    b_rel = 0.0

    # fc: Linear(hidden*(2+head_num), 1)
    fc_in = HIDDEN * (2 + HEAD_NUM)
    fc_bound = 1.0 / (fc_in ** 0.5)
    fc_weight = jax.random.uniform(keys[9], (1, fc_in), jnp.float32, -fc_bound, fc_bound)
    fc_bias = jax.random.uniform(keys[10], (1,), jnp.float32, -fc_bound, fc_bound)

    wa = jnp.concatenate([W_heads[i][:HIDDEN] for i in range(HEAD_NUM)]
                         + [W_rel[:HIDDEN]], axis=1)                            # (H, HN+1)
    wb = jnp.concatenate([W_heads[i][HIDDEN:2 * HIDDEN] for i in range(HEAD_NUM)]
                         + [W_rel[HIDDEN:2 * HIDDEN]], axis=1)                  # (H, HN+1)

    params = dict(
        gru_packed=pack_gru_fused(gru_params),
        wab_t=jnp.concatenate([wa, wb], axis=1).T,                              # (2*(HN+1), H)
        wrel_r=W_rel[2 * HIDDEN:, 0],                                           # (R,)  SMEM
        att_bias=jnp.array(b_heads + [b_rel], jnp.float32),                     # (HN+1,)
        fc_w_lanes=fc_weight.reshape(1, 2 + HEAD_NUM, HIDDEN).transpose(1, 0, 2),  # (5,1,H)
        fc_b=fc_bias,                                                           # (1,)
    )

    # Inputs: x (N, d_feat*T), relation_matrix (N, N, R) with some sparsity.
    x = jax.random.normal(keys[11], (N_STOCKS, D_FEAT * T_STEPS), jnp.float32)
    rel_vals = jax.random.uniform(keys[12], (N_STOCKS, N_STOCKS, NUM_RELATION), jnp.float32)
    rel_keep = jax.random.bernoulli(keys[13], 0.4, (N_STOCKS, N_STOCKS, NUM_RELATION))
    relation = (rel_vals * rel_keep).astype(jnp.float32)

    fwd = jax.jit(model_forward)
    pred, h_all = fwd(x, relation, params)
    pred = jax.block_until_ready(pred)
    h_all = jax.block_until_ready(h_all)

    # Sanity: fused Pallas GRU recurrence vs pure-JAX 2-layer GRU reference.
    # (Both run at default matmul precision; tolerance covers bf16-pass rounding
    #  and accumulation-order differences — wiring bugs would be O(0.1-1).)
    raw = x.reshape(N_STOCKS, D_FEAT, T_STEPS).transpose(0, 2, 1)
    for g in range(1 + HEAD_NUM):
        ref_h = gru_two_layer_ref(raw, gru_params[g])
        got_h = h_all[:, g * HIDDEN:(g + 1) * HIDDEN]
        assert jnp.allclose(got_h, ref_h, rtol=2e-2, atol=2e-2), f"GRU {g} mismatch"

    assert pred.shape == (N_STOCKS,)
    assert bool(jnp.all(jnp.isfinite(pred)))
    print("KERNEL_OK")
</pallas_src>

<mosaic_0001>
module attributes {stable_mosaic.version = 11 : i64} {
  func.func @fused_model_kernel(%arg0: memref<64x6xf32, #tpu.memory_space<vmem>>, %arg1: memref<6x384xf32, #tpu.memory_space<vmem>>, %arg2: memref<128x384xf32, #tpu.memory_space<vmem>>, %arg3: memref<1x384xf32, #tpu.memory_space<vmem>>, %arg4: memref<1x384xf32, #tpu.memory_space<vmem>>, %arg5: memref<256x512xf32, #tpu.memory_space<vmem>>, %arg6: memref<1x512xf32, #tpu.memory_space<vmem>>, %arg7: memref<8x32xf32, #tpu.memory_space<vmem>>, %arg8: memref<4x8x8xf32, #tpu.memory_space<vmem>>, %arg9: memref<4xf32, #tpu.memory_space<smem>>, %arg10: memref<5x1x32xf32, #tpu.memory_space<vmem>>, %arg11: memref<4xf32, #tpu.memory_space<smem>>, %arg12: memref<1xf32, #tpu.memory_space<smem>>, %arg13: memref<8x256xf32, #tpu.memory_space<vmem>>, %arg14: memref<64x384xf32, #tpu.memory_space<vmem>>) attributes {dimension_semantics = [], scalar_prefetch = 0 : i64, scratch_operands = 1 : i64, tpu.core_type = #tpu.core_type<tc>} {
    %c0 = arith.constant 0 : index
    %c0_0 = arith.constant 0 : index
    %0 = vector.load %arg0[%c0, %c0_0] : memref<64x6xf32, #tpu.memory_space<vmem>>, vector<64x6xf32>
    %c0_1 = arith.constant 0 : index
    %c0_2 = arith.constant 0 : index
    %1 = vector.load %arg1[%c0_1, %c0_2] : memref<6x384xf32, #tpu.memory_space<vmem>>, vector<6x384xf32>
    %cst = arith.constant dense<0.000000e+00> : vector<64x384xf32>
    %2 = tpu.matmul %0, %1, %cst {dimension_numbers = #tpu.dot_dimension_numbers<[1], [0], [0], [1], [0, 0, 1, 1], [], []>} : vector<64x6xf32>, vector<6x384xf32>, vector<64x384xf32> -> vector<64x384xf32>
    %c0_3 = arith.constant 0 : index
    %c0_4 = arith.constant 0 : index
    %3 = vector.load %arg3[%c0_3, %c0_4] : memref<1x384xf32, #tpu.memory_space<vmem>>, vector<1x384xf32>
    %4 = vector.broadcast %3 : vector<1x384xf32> to vector<64x384xf32>
    %5 = arith.addf %2, %4 : vector<64x384xf32>
    %c0_5 = arith.constant 0 : index
    %c0_6 = arith.constant 0 : index
    %6 = vector.load %arg14[%c0_5, %c0_6] : memref<64x384xf32, #tpu.memory_space<vmem>>, vector<64x384xf32>
    tpu.vector_store %arg14[%c0_5, %c0_6], %5 {strides = array<i32>} : memref<64x384xf32, #tpu.memory_space<vmem>>, vector<64x384xf32>,
    %cst_7 = arith.constant 0.000000e+00 : f32
    %7 = vector.broadcast %cst_7 : f32 to vector<8x128xf32>
    %cst_8 = arith.constant 0.000000e+00 : f32
    %8 = vector.broadcast %cst_8 : f32 to vector<8x128xf32>
    %c0_9 = arith.constant 0 : index
    %c0_10 = arith.constant 0 : index
    %9 = vector.load %arg14[%c0_9, %c0_10] : memref<64x384xf32, #tpu.memory_space<vmem>>, vector<8x384xf32>
    %c0_11 = arith.constant 0 : index
    %c0_12 = arith.constant 0 : index
    %10 = vector.load %arg2[%c0_11, %c0_12] : memref<128x384xf32, #tpu.memory_space<vmem>>, vector<128x384xf32>
    %cst_13 = arith.constant dense<0.000000e+00> : vector<8x384xf32>
    %11 = tpu.matmul %7, %10, %cst_13 {dimension_numbers = #tpu.dot_dimension_numbers<[1], [0], [0], [1], [0, 0, 1, 1], [], []>} : vector<8x128xf32>, vector<128x384xf32>, vector<8x384xf32> -> vector<8x384xf32>
    %c0_14 = arith.constant 0 : index
    %c0_15 = arith.constant 0 : index
    %12 = vector.load %arg4[%c0_14, %c0_15] : memref<1x384xf32, #tpu.memory_space<vmem>>, vector<1x384xf32>
    %13 = vector.broadcast %12 : vector<1x384xf32> to vector<8x384xf32>
    %14 = arith.addf %11, %13 : vector<8x384xf32>
    %15 = vector.extract_strided_slice %9 {offsets = [0, 0], sizes = [8, 128], strides = [1, 1]} : vector<8x384xf32> to vector<8x128xf32>
    %16 = vector.extract_strided_slice %14 {offsets = [0, 0], sizes = [8, 128], strides = [1, 1]} : vector<8x384xf32> to vector<8x128xf32>
    %17 = arith.addf %15, %16 : vector<8x128xf32>
    %cst_16 = arith.constant 5.000000e-01 : f32
    %18 = vector.broadcast %cst_16 : f32 to vector<8x128xf32>
    %19 = arith.mulf %18, %17 : vector<8x128xf32>
    %20 = math.tanh %19 : vector<8x128xf32>
    %cst_17 = arith.constant 5.000000e-01 : f32
    %21 = vector.broadcast %cst_17 : f32 to vector<8x128xf32>
    %22 = arith.mulf %21, %20 : vector<8x128xf32>
    %cst_18 = arith.constant 5.000000e-01 : f32
    %23 = vector.broadcast %cst_18 : f32 to vector<8x128xf32>
    %24 = arith.addf %22, %23 : vector<8x128xf32>
    %25 = vector.extract_strided_slice %9 {offsets = [0, 128], sizes = [8, 128], strides = [1, 1]} : vector<8x384xf32> to vector<8x128xf32>
    %26 = vector.extract_strided_slice %14 {offsets = [0, 128], sizes = [8, 128], strides = [1, 1]} : vector<8x384xf32> to vector<8x128xf32>
    %27 = arith.addf %25, %26 : vector<8x128xf32>
    %cst_19 = arith.constant 5.000000e-01 : f32
    %28 = vector.broadcast %cst_19 : f32 to vector<8x128xf32>
    %29 = arith.mulf %28, %27 : vector<8x128xf32>
    %30 = math.tanh %29 : vector<8x128xf32>
    %cst_20 = arith.constant 5.000000e-01 : f32
    %31 = vector.broadcast %cst_20 : f32 to vector<8x128xf32>
    %32 = arith.mulf %31, %30 : vector<8x128xf32>
    %cst_21 = arith.constant 5.000000e-01 : f32
    %33 = vector.broadcast %cst_21 : f32 to vector<8x128xf32>
    %34 = arith.addf %32, %33 : vector<8x128xf32>
    %35 = vector.extract_strided_slice %9 {offsets = [0, 256], sizes = [8, 128], strides = [1, 1]} : vector<8x384xf32> to vector<8x128xf32>
    %36 = vector.extract_strided_slice %14 {offsets = [0, 256], sizes = [8, 128], strides = [1, 1]} : vector<8x384xf32> to vector<8x128xf32>
    %37 = arith.mulf %24, %36 : vector<8x128xf32>
    %38 = arith.addf %35, %37 : vector<8x128xf32>
    %39 = math.tanh %38 : vector<8x128xf32>
    %cst_22 = arith.constant 1.000000e+00 : f32
    %40 = vector.broadcast %cst_22 : f32 to vector<8x128xf32>
    %41 = arith.subf %40, %34 : vector<8x128xf32>
    %42 = arith.mulf %41, %39 : vector<8x128xf32>
    %43 = arith.mulf %34, %7 : vector<8x128xf32>
    %44 = arith.addf %42, %43 : vector<8x128xf32>
    %45 = tpu.concatenate %44, %8 in 1 : vector<8x128xf32>, vector<8x128xf32> -> vector<8x256xf32>
    %c0_23 = arith.constant 0 : index
    %c0_24 = arith.constant 0 : index
    %46 = vector.load %arg5[%c0_23, %c0_24] : memref<256x512xf32, #tpu.memory_space<vmem>>, vector<256x512xf32>
    %cst_25 = arith.constant dense<0.000000e+00> : vector<8x512xf32>
    %47 = tpu.matmul %45, %46, %cst_25 {dimension_numbers = #tpu.dot_dimension_numbers<[1], [0], [0], [1], [0, 0, 1, 1], [], []>} : vector<8x256xf32>, vector<256x512xf32>, vector<8x512xf32> -> vector<8x512xf32>
    %c0_26 = arith.constant 0 : index
    %c0_27 = arith.constant 0 : index
    %48 = vector.load %arg6[%c0_26, %c0_27] : memref<1x512xf32, #tpu.memory_space<vmem>>, vector<1x512xf32>
    %49 = vector.broadcast %48 : vector<1x512xf32> to vector<8x512xf32>
    %50 = arith.addf %47, %49 : vector<8x512xf32>
    %51 = vector.extract_strided_slice %50 {offsets = [0, 0], sizes = [8, 128], strides = [1, 1]} : vector<8x512xf32> to vector<8x128xf32>
    %cst_28 = arith.constant 5.000000e-01 : f32
    %52 = vector.broadcast %cst_28 : f32 to vector<8x128xf32>
    %53 = arith.mulf %52, %51 : vector<8x128xf32>
    %54 = math.tanh %53 : vector<8x128xf32>
    %cst_29 = arith.constant 5.000000e-01 : f32
    %55 = vector.broadcast %cst_29 : f32 to vector<8x128xf32>
    %56 = arith.mulf %55, %54 : vector<8x128xf32>
    %cst_30 = arith.constant 5.000000e-01 : f32
    %57 = vector.broadcast %cst_30 : f32 to vector<8x128xf32>
    %58 = arith.addf %56, %57 : vector<8x128xf32>
    %59 = vector.extract_strided_slice %50 {offsets = [0, 128], sizes = [8, 128], strides = [1, 1]} : vector<8x512xf32> to vector<8x128xf32>
    %cst_31 = arith.constant 5.000000e-01 : f32
    %60 = vector.broadcast %cst_31 : f32 to vector<8x128xf32>
    %61 = arith.mulf %60, %59 : vector<8x128xf32>
    %62 = math.tanh %61 : vector<8x128xf32>
    %cst_32 = arith.constant 5.000000e-01 : f32
    %63 = vector.broadcast %cst_32 : f32 to vector<8x128xf32>
    %64 = arith.mulf %63, %62 : vector<8x128xf32>
    %cst_33 = arith.constant 5.000000e-01 : f32
    %65 = vector.broadcast %cst_33 : f32 to vector<8x128xf32>
    %66 = arith.addf %64, %65 : vector<8x128xf32>
    %67 = vector.extract_strided_slice %50 {offsets = [0, 256], sizes = [8, 128], strides = [1, 1]} : vector<8x512xf32> to vector<8x128xf32>
    %68 = vector.extract_strided_slice %50 {offsets = [0, 384], sizes = [8, 128], strides = [1, 1]} : vector<8x512xf32> to vector<8x128xf32>
    %69 = arith.mulf %58, %68 : vector<8x128xf32>
    %70 = arith.addf %67, %69 : vector<8x128xf32>
    %71 = math.tanh %70 : vector<8x128xf32>
    %cst_34 = arith.constant 1.000000e+00 : f32
    %72 = vector.broadcast %cst_34 : f32 to vector<8x128xf32>
    %73 = arith.subf %72, %66 : vector<8x128xf32>
    %74 = arith.mulf %73, %71 : vector<8x128xf32>
    %75 = arith.mulf %66, %8 : vector<8x128xf32>
    %76 = arith.addf %74, %75 : vector<8x128xf32>
    %c8 = arith.constant 8 : index
    %c0_35 = arith.constant 0 : index
    %77 = vector.load %arg14[%c8, %c0_35] : memref<64x384xf32, #tpu.memory_space<vmem>>, vector<8x384xf32>
    %c0_36 = arith.constant 0 : index
    %c0_37 = arith.constant 0 : index
    %78 = vector.load %arg2[%c0_36, %c0_37] : memref<128x384xf32, #tpu.memory_space<vmem>>, vector<128x384xf32>
    %cst_38 = arith.constant dense<0.000000e+00> : vector<8x384xf32>
    %79 = tpu.matmul %44, %78, %cst_38 {dimension_numbers = #tpu.dot_dimension_numbers<[1], [0], [0], [1], [0, 0, 1, 1], [], []>} : vector<8x128xf32>, vector<128x384xf32>, vector<8x384xf32> -> vector<8x384xf32>
    %c0_39 = arith.constant 0 : index
    %c0_40 = arith.constant 0 : index
    %80 = vector.load %arg4[%c0_39, %c0_40] : memref<1x384xf32, #tpu.memory_space<vmem>>, vector<1x384xf32>
    %81 = vector.broadcast %80 : vector<1x384xf32> to vector<8x384xf32>
    %82 = arith.addf %79, %81 : vector<8x384xf32>
    %83 = vector.extract_strided_slice %77 {offsets = [0, 0], sizes = [8, 128], strides = [1, 1]} : vector<8x384xf32> to vector<8x128xf32>
    %84 = vector.extract_strided_slice %82 {offsets = [0, 0], sizes = [8, 128], strides = [1, 1]} : vector<8x384xf32> to vector<8x128xf32>
    %85 = arith.addf %83, %84 : vector<8x128xf32>
    %cst_41 = arith.constant 5.000000e-01 : f32
    %86 = vector.broadcast %cst_41 : f32 to vector<8x128xf32>
    %87 = arith.mulf %86, %85 : vector<8x128xf32>
    %88 = math.tanh %87 : vector<8x128xf32>
    %cst_42 = arith.constant 5.000000e-01 : f32
    %89 = vector.broadcast %cst_42 : f32 to vector<8x128xf32>
    %90 = arith.mulf %89, %88 : vector<8x128xf32>
    %cst_43 = arith.constant 5.000000e-01 : f32
    %91 = vector.broadcast %cst_43 : f32 to vector<8x128xf32>
    %92 = arith.addf %90, %91 : vector<8x128xf32>
    %93 = vector.extract_strided_slice %77 {offsets = [0, 128], sizes = [8, 128], strides = [1, 1]} : vector<8x384xf32> to vector<8x128xf32>
    %94 = vector.extract_strided_slice %82 {offsets = [0, 128], sizes = [8, 128], strides = [1, 1]} : vector<8x384xf32> to vector<8x128xf32>
    %95 = arith.addf %93, %94 : vector<8x128xf32>
    %cst_44 = arith.constant 5.000000e-01 : f32
    %96 = vector.broadcast %cst_44 : f32 to vector<8x128xf32>
    %97 = arith.mulf %96, %95 : vector<8x128xf32>
    %98 = math.tanh %97 : vector<8x128xf32>
    %cst_45 = arith.constant 5.000000e-01 : f32
    %99 = vector.broadcast %cst_45 : f32 to vector<8x128xf32>
    %100 = arith.mulf %99, %98 : vector<8x128xf32>
    %cst_46 = arith.constant 5.000000e-01 : f32
    %101 = vector.broadcast %cst_46 : f32 to vector<8x128xf32>
    %102 = arith.addf %100, %101 : vector<8x128xf32>
    %103 = vector.extract_strided_slice %77 {offsets = [0, 256], sizes = [8, 128], strides = [1, 1]} : vector<8x384xf32> to vector<8x128xf32>
    %104 = vector.extract_strided_slice %82 {offsets = [0, 256], sizes = [8, 128], strides = [1, 1]} : vector<8x384xf32> to vector<8x128xf32>
    %105 = arith.mulf %92, %104 : vector<8x128xf32>
    %106 = arith.addf %103, %105 : vector<8x128xf32>
    %107 = math.tanh %106 : vector<8x128xf32>
    %cst_47 = arith.constant 1.000000e+00 : f32
    %108 = vector.broadcast %cst_47 : f32 to vector<8x128xf32>
    %109 = arith.subf %108, %102 : vector<8x128xf32>
    %110 = arith.mulf %109, %107 : vector<8x128xf32>
    %111 = arith.mulf %102, %44 : vector<8x128xf32>
    %112 = arith.addf %110, %111 : vector<8x128xf32>
    %113 = tpu.concatenate %112, %76 in 1 : vector<8x128xf32>, vector<8x128xf32> -> vector<8x256xf32>
    %c0_48 = arith.constant 0 : index
    %c0_49 = arith.constant 0 : index
    %114 = vector.load %arg5[%c0_48, %c0_49] : memref<256x512xf32, #tpu.memory_space<vmem>>, vector<256x512xf32>
    %cst_50 = arith.constant dense<0.000000e+00> : vector<8x512xf32>
    %115 = tpu.matmul %113, %114, %cst_50 {dimension_numbers = #tpu.dot_dimension_numbers<[1], [0], [0], [1], [0, 0, 1, 1], [], []>} : vector<8x256xf32>, vector<256x512xf32>, vector<8x512xf32> -> vector<8x512xf32>
    %c0_51 = arith.constant 0 : index
    %c0_52 = arith.constant 0 : index
    %116 = vector.load %arg6[%c0_51, %c0_52] : memref<1x512xf32, #tpu.memory_space<vmem>>, vector<1x512xf32>
    %117 = vector.broadcast %116 : vector<1x512xf32> to vector<8x512xf32>
    %118 = arith.addf %115, %117 : vector<8x512xf32>
    %119 = vector.extract_strided_slice %118 {offsets = [0, 0], sizes = [8, 128], strides = [1, 1]} : vector<8x512xf32> to vector<8x128xf32>
    %cst_53 = arith.constant 5.000000e-01 : f32
    %120 = vector.broadcast %cst_53 : f32 to vector<8x128xf32>
    %121 = arith.mulf %120, %119 : vector<8x128xf32>
    %122 = math.tanh %121 : vector<8x128xf32>
    %cst_54 = arith.constant 5.000000e-01 : f32
    %123 = vector.broadcast %cst_54 : f32 to vector<8x128xf32>
    %124 = arith.mulf %123, %122 : vector<8x128xf32>
    %cst_55 = arith.constant 5.000000e-01 : f32
    %125 = vector.broadcast %cst_55 : f32 to vector<8x128xf32>
    %126 = arith.addf %124, %125 : vector<8x128xf32>
    %127 = vector.extract_strided_slice %118 {offsets = [0, 128], sizes = [8, 128], strides = [1, 1]} : vector<8x512xf32> to vector<8x128xf32>
    %cst_56 = arith.constant 5.000000e-01 : f32
    %128 = vector.broadcast %cst_56 : f32 to vector<8x128xf32>
    %129 = arith.mulf %128, %127 : vector<8x128xf32>
    %130 = math.tanh %129 : vector<8x128xf32>
    %cst_57 = arith.constant 5.000000e-01 : f32
    %131 = vector.broadcast %cst_57 : f32 to vector<8x128xf32>
    %132 = arith.mulf %131, %130 : vector<8x128xf32>
    %cst_58 = arith.constant 5.000000e-01 : f32
    %133 = vector.broadcast %cst_58 : f32 to vector<8x128xf32>
    %134 = arith.addf %132, %133 : vector<8x128xf32>
    %135 = vector.extract_strided_slice %118 {offsets = [0, 256], sizes = [8, 128], strides = [1, 1]} : vector<8x512xf32> to vector<8x128xf32>
    %136 = vector.extract_strided_slice %118 {offsets = [0, 384], sizes = [8, 128], strides = [1, 1]} : vector<8x512xf32> to vector<8x128xf32>
    %137 = arith.mulf %126, %136 : vector<8x128xf32>
    %138 = arith.addf %135, %137 : vector<8x128xf32>
    %139 = math.tanh %138 : vector<8x128xf32>
    %cst_59 = arith.constant 1.000000e+00 : f32
    %140 = vector.broadcast %cst_59 : f32 to vector<8x128xf32>
    %141 = arith.subf %140, %134 : vector<8x128xf32>
    %142 = arith.mulf %141, %139 : vector<8x128xf32>
    %143 = arith.mulf %134, %76 : vector<8x128xf32>
    %144 = arith.addf %142, %143 : vector<8x128xf32>
    %c16 = arith.constant 16 : index
    %c0_60 = arith.constant 0 : index
    %145 = vector.load %arg14[%c16, %c0_60] : memref<64x384xf32, #tpu.memory_space<vmem>>, vector<8x384xf32>
    %c0_61 = arith.constant 0 : index
    %c0_62 = arith.constant 0 : index
    %146 = vector.load %arg2[%c0_61, %c0_62] : memref<128x384xf32, #tpu.memory_space<vmem>>, vector<128x384xf32>
    %cst_63 = arith.constant dense<0.000000e+00> : vector<8x384xf32>
    %147 = tpu.matmul %112, %146, %cst_63 {dimension_numbers = #tpu.dot_dimension_numbers<[1], [0], [0], [1], [0, 0, 1, 1], [], []>} : vector<8x128xf32>, vector<128x384xf32>, vector<8x384xf32> -> vector<8x384xf32>
    %c0_64 = arith.constant 0 : index
    %c0_65 = arith.constant 0 : index
    %148 = vector.load %arg4[%c0_64, %c0_65] : memref<1x384xf32, #tpu.memory_space<vmem>>, vector<1x384xf32>
    %149 = vector.broadcast %148 : vector<1x384xf32> to vector<8x384xf32>
    %150 = arith.addf %147, %149 : vector<8x384xf32>
    %151 = vector.extract_strided_slice %145 {offsets = [0, 0], sizes = [8, 128], strides = [1, 1]} : vector<8x384xf32> to vector<8x128xf32>
    %152 = vector.extract_strided_slice %150 {offsets = [0, 0], sizes = [8, 128], strides = [1, 1]} : vector<8x384xf32> to vector<8x128xf32>
    %153 = arith.addf %151, %152 : vector<8x128xf32>
    %cst_66 = arith.constant 5.000000e-01 : f32
    %154 = vector.broadcast %cst_66 : f32 to vector<8x128xf32>
    %155 = arith.mulf %154, %153 : vector<8x128xf32>
    %156 = math.tanh %155 : vector<8x128xf32>
    %cst_67 = arith.constant 5.000000e-01 : f32
    %157 = vector.broadcast %cst_67 : f32 to vector<8x128xf32>
    %158 = arith.mulf %157, %156 : vector<8x128xf32>
    %cst_68 = arith.constant 5.000000e-01 : f32
    %159 = vector.broadcast %cst_68 : f32 to vector<8x128xf32>
    %160 = arith.addf %158, %159 : vector<8x128xf32>
    %161 = vector.extract_strided_slice %145 {offsets = [0, 128], sizes = [8, 128], strides = [1, 1]} : vector<8x384xf32> to vector<8x128xf32>
    %162 = vector.extract_strided_slice %150 {offsets = [0, 128], sizes = [8, 128], strides = [1, 1]} : vector<8x384xf32> to vector<8x128xf32>
    %163 = arith.addf %161, %162 : vector<8x128xf32>
    %cst_69 = arith.constant 5.000000e-01 : f32
    %164 = vector.broadcast %cst_69 : f32 to vector<8x128xf32>
    %165 = arith.mulf %164, %163 : vector<8x128xf32>
    %166 = math.tanh %165 : vector<8x128xf32>
    %cst_70 = arith.constant 5.000000e-01 : f32
    %167 = vector.broadcast %cst_70 : f32 to vector<8x128xf32>
    %168 = arith.mulf %167, %166 : vector<8x128xf32>
    %cst_71 = arith.constant 5.000000e-01 : f32
    %169 = vector.broadcast %cst_71 : f32 to vector<8x128xf32>
    %170 = arith.addf %168, %169 : vector<8x128xf32>
    %171 = vector.extract_strided_slice %145 {offsets = [0, 256], sizes = [8, 128], strides = [1, 1]} : vector<8x384xf32> to vector<8x128xf32>
    %172 = vector.extract_strided_slice %150 {offsets = [0, 256], sizes = [8, 128], strides = [1, 1]} : vector<8x384xf32> to vector<8x128xf32>
    %173 = arith.mulf %160, %172 : vector<8x128xf32>
    %174 = arith.addf %171, %173 : vector<8x128xf32>
    %175 = math.tanh %174 : vector<8x128xf32>
    %cst_72 = arith.constant 1.000000e+00 : f32
    %176 = vector.broadcast %cst_72 : f32 to vector<8x128xf32>
    %177 = arith.subf %176, %170 : vector<8x128xf32>
    %178 = arith.mulf %177, %175 : vector<8x128xf32>
    %179 = arith.mulf %170, %112 : vector<8x128xf32>
    %180 = arith.addf %178, %179 : vector<8x128xf32>
    %181 = tpu.concatenate %180, %144 in 1 : vector<8x128xf32>, vector<8x128xf32> -> vector<8x256xf32>
    %c0_73 = arith.constant 0 : index
    %c0_74 = arith.constant 0 : index
    %182 = vector.load %arg5[%c0_73, %c0_74] : memref<256x512xf32, #tpu.memory_space<vmem>>, vector<256x512xf32>
    %cst_75 = arith.constant dense<0.000000e+00> : vector<8x512xf32>
    %183 = tpu.matmul %181, %182, %cst_75 {dimension_numbers = #tpu.dot_dimension_numbers<[1], [0], [0], [1], [0, 0, 1, 1], [], []>} : vector<8x256xf32>, vector<256x512xf32>, vector<8x512xf32> -> vector<8x512xf32>
    %c0_76 = arith.constant 0 : index
    %c0_77 = arith.constant 0 : index
    %184 = vector.load %arg6[%c0_76, %c0_77] : memref<1x512xf32, #tpu.memory_space<vmem>>, vector<1x512xf32>
    %185 = vector.broadcast %184 : vector<1x512xf32> to vector<8x512xf32>
    %186 = arith.addf %183, %185 : vector<8x512xf32>
    %187 = vector.extract_strided_slice %186 {offsets = [0, 0], sizes = [8, 128], strides = [1, 1]} : vector<8x512xf32> to vector<8x128xf32>
    %cst_78 = arith.constant 5.000000e-01 : f32
    %188 = vector.broadcast %cst_78 : f32 to vector<8x128xf32>
    %189 = arith.mulf %188, %187 : vector<8x128xf32>
    %190 = math.tanh %189 : vector<8x128xf32>
    %cst_79 = arith.constant 5.000000e-01 : f32
    %191 = vector.broadcast %cst_79 : f32 to vector<8x128xf32>
    %192 = arith.mulf %191, %190 : vector<8x128xf32>
    %cst_80 = arith.constant 5.000000e-01 : f32
    %193 = vector.broadcast %cst_80 : f32 to vector<8x128xf32>
    %194 = arith.addf %192, %193 : vector<8x128xf32>
    %195 = vector.extract_strided_slice %186 {offsets = [0, 128], sizes = [8, 128], strides = [1, 1]} : vector<8x512xf32> to vector<8x128xf32>
    %cst_81 = arith.constant 5.000000e-01 : f32
    %196 = vector.broadcast %cst_81 : f32 to vector<8x128xf32>
    %197 = arith.mulf %196, %195 : vector<8x128xf32>
    %198 = math.tanh %197 : vector<8x128xf32>
    %cst_82 = arith.constant 5.000000e-01 : f32
    %199 = vector.broadcast %cst_82 : f32 to vector<8x128xf32>
    %200 = arith.mulf %199, %198 : vector<8x128xf32>
    %cst_83 = arith.constant 5.000000e-01 : f32
    %201 = vector.broadcast %cst_83 : f32 to vector<8x128xf32>
    %202 = arith.addf %200, %201 : vector<8x128xf32>
    %203 = vector.extract_strided_slice %186 {offsets = [0, 256], sizes = [8, 128], strides = [1, 1]} : vector<8x512xf32> to vector<8x128xf32>
    %204 = vector.extract_strided_slice %186 {offsets = [0, 384], sizes = [8, 128], strides = [1, 1]} : vector<8x512xf32> to vector<8x128xf32>
    %205 = arith.mulf %194, %204 : vector<8x128xf32>
    %206 = arith.addf %203, %205 : vector<8x128xf32>
    %207 = math.tanh %206 : vector<8x128xf32>
    %cst_84 = arith.constant 1.000000e+00 : f32
    %208 = vector.broadcast %cst_84 : f32 to vector<8x128xf32>
    %209 = arith.subf %208, %202 : vector<8x128xf32>
    %210 = arith.mulf %209, %207 : vector<8x128xf32>
    %211 = arith.mulf %202, %144 : vector<8x128xf32>
    %212 = arith.addf %210, %211 : vector<8x128xf32>
    %c24 = arith.constant 24 : index
    %c0_85 = arith.constant 0 : index
    %213 = vector.load %arg14[%c24, %c0_85] : memref<64x384xf32, #tpu.memory_space<vmem>>, vector<8x384xf32>
    %c0_86 = arith.constant 0 : index
    %c0_87 = arith.constant 0 : index
    %214 = vector.load %arg2[%c0_86, %c0_87] : memref<128x384xf32, #tpu.memory_space<vmem>>, vector<128x384xf32>
    %cst_88 = arith.constant dense<0.000000e+00> : vector<8x384xf32>
    %215 = tpu.matmul %180, %214, %cst_88 {dimension_numbers = #tpu.dot_dimension_numbers<[1], [0], [0], [1], [0, 0, 1, 1], [], []>} : vector<8x128xf32>, vector<128x384xf32>, vector<8x384xf32> -> vector<8x384xf32>
    %c0_89 = arith.constant 0 : index
    %c0_90 = arith.constant 0 : index
    %216 = vector.load %arg4[%c0_89, %c0_90] : memref<1x384xf32, #tpu.memory_space<vmem>>, vector<1x384xf32>
    %217 = vector.broadcast %216 : vector<1x384xf32> to vector<8x384xf32>
    %218 = arith.addf %215, %217 : vector<8x384xf32>
    %219 = vector.extract_strided_slice %213 {offsets = [0, 0], sizes = [8, 128], strides = [1, 1]} : vector<8x384xf32> to vector<8x128xf32>
    %220 = vector.extract_strided_slice %218 {offsets = [0, 0], sizes = [8, 128], strides = [1, 1]} : vector<8x384xf32> to vector<8x128xf32>
    %221 = arith.addf %219, %220 : vector<8x128xf32>
    %cst_91 = arith.constant 5.000000e-01 : f32
    %222 = vector.broadcast %cst_91 : f32 to vector<8x128xf32>
    %223 = arith.mulf %222, %221 : vector<8x128xf32>
    %224 = math.tanh %223 : vector<8x128xf32>
    %cst_92 = arith.constant 5.000000e-01 : f32
    %225 = vector.broadcast %cst_92 : f32 to vector<8x128xf32>
    %226 = arith.mulf %225, %224 : vector<8x128xf32>
    %cst_93 = arith.constant 5.000000e-01 : f32
    %227 = vector.broadcast %cst_93 : f32 to vector<8x128xf32>
    %228 = arith.addf %226, %227 : vector<8x128xf32>
    %229 = vector.extract_strided_slice %213 {offsets = [0, 128], sizes = [8, 128], strides = [1, 1]} : vector<8x384xf32> to vector<8x128xf32>
    %230 = vector.extract_strided_slice %218 {offsets = [0, 128], sizes = [8, 128], strides = [1, 1]} : vector<8x384xf32> to vector<8x128xf32>
    %231 = arith.addf %229, %230 : vector<8x128xf32>
    %cst_94 = arith.constant 5.000000e-01 : f32
    %232 = vector.broadcast %cst_94 : f32 to vector<8x128xf32>
    %233 = arith.mulf %232, %231 : vector<8x128xf32>
    %234 = math.tanh %233 : vector<8x128xf32>
    %cst_95 = arith.constant 5.000000e-01 : f32
    %235 = vector.broadcast %cst_95 : f32 to vector<8x128xf32>
    %236 = arith.mulf %235, %234 : vector<8x128xf32>
    %cst_96 = arith.constant 5.000000e-01 : f32
    %237 = vector.broadcast %cst_96 : f32 to vector<8x128xf32>
    %238 = arith.addf %236, %237 : vector<8x128xf32>
    %239 = vector.extract_strided_slice %213 {offsets = [0, 256], sizes = [8, 128], strides = [1, 1]} : vector<8x384xf32> to vector<8x128xf32>
    %240 = vector.extract_strided_slice %218 {offsets = [0, 256], sizes = [8, 128], strides = [1, 1]} : vector<8x384xf32> to vector<8x128xf32>
    %241 = arith.mulf %228, %240 : vector<8x128xf32>
    %242 = arith.addf %239, %241 : vector<8x128xf32>
    %243 = math.tanh %242 : vector<8x128xf32>
    %cst_97 = arith.constant 1.000000e+00 : f32
    %244 = vector.broadcast %cst_97 : f32 to vector<8x128xf32>
    %245 = arith.subf %244, %238 : vector<8x128xf32>
    %246 = arith.mulf %245, %243 : vector<8x128xf32>
    %247 = arith.mulf %238, %180 : vector<8x128xf32>
    %248 = arith.addf %246, %247 : vector<8x128xf32>
    %249 = tpu.concatenate %248, %212 in 1 : vector<8x128xf32>, vector<8x128xf32> -> vector<8x256xf32>
    %c0_98 = arith.constant 0 : index
    %c0_99 = arith.constant 0 : index
    %250 = vector.load %arg5[%c0_98, %c0_99] : memref<256x512xf32, #tpu.memory_space<vmem>>, vector<256x512xf32>
    %cst_100 = arith.constant dense<0.000000e+00> : vector<8x512xf32>
    %251 = tpu.matmul %249, %250, %cst_100 {dimension_numbers = #tpu.dot_dimension_numbers<[1], [0], [0], [1], [0, 0, 1, 1], [], []>} : vector<8x256xf32>, vector<256x512xf32>, vector<8x512xf32> -> vector<8x512xf32>
    %c0_101 = arith.constant 0 : index
    %c0_102 = arith.constant 0 : index
    %252 = vector.load %arg6[%c0_101, %c0_102] : memref<1x512xf32, #tpu.memory_space<vmem>>, vector<1x512xf32>
    %253 = vector.broadcast %252 : vector<1x512xf32> to vector<8x512xf32>
    %254 = arith.addf %251, %253 : vector<8x512xf32>
    %255 = vector.extract_strided_slice %254 {offsets = [0, 0], sizes = [8, 128], strides = [1, 1]} : vector<8x512xf32> to vector<8x128xf32>
    %cst_103 = arith.constant 5.000000e-01 : f32
    %256 = vector.broadcast %cst_103 : f32 to vector<8x128xf32>
    %257 = arith.mulf %256, %255 : vector<8x128xf32>
    %258 = math.tanh %257 : vector<8x128xf32>
    %cst_104 = arith.constant 5.000000e-01 : f32
    %259 = vector.broadcast %cst_104 : f32 to vector<8x128xf32>
    %260 = arith.mulf %259, %258 : vector<8x128xf32>
    %cst_105 = arith.constant 5.000000e-01 : f32
    %261 = vector.broadcast %cst_105 : f32 to vector<8x128xf32>
    %262 = arith.addf %260, %261 : vector<8x128xf32>
    %263 = vector.extract_strided_slice %254 {offsets = [0, 128], sizes = [8, 128], strides = [1, 1]} : vector<8x512xf32> to vector<8x128xf32>
    %cst_106 = arith.constant 5.000000e-01 : f32
    %264 = vector.broadcast %cst_106 : f32 to vector<8x128xf32>
    %265 = arith.mulf %264, %263 : vector<8x128xf32>
    %266 = math.tanh %265 : vector<8x128xf32>
    %cst_107 = arith.constant 5.000000e-01 : f32
    %267 = vector.broadcast %cst_107 : f32 to vector<8x128xf32>
    %268 = arith.mulf %267, %266 : vector<8x128xf32>
    %cst_108 = arith.constant 5.000000e-01 : f32
    %269 = vector.broadcast %cst_108 : f32 to vector<8x128xf32>
    %270 = arith.addf %268, %269 : vector<8x128xf32>
    %271 = vector.extract_strided_slice %254 {offsets = [0, 256], sizes = [8, 128], strides = [1, 1]} : vector<8x512xf32> to vector<8x128xf32>
    %272 = vector.extract_strided_slice %254 {offsets = [0, 384], sizes = [8, 128], strides = [1, 1]} : vector<8x512xf32> to vector<8x128xf32>
    %273 = arith.mulf %262, %272 : vector<8x128xf32>
    %274 = arith.addf %271, %273 : vector<8x128xf32>
    %275 = math.tanh %274 : vector<8x128xf32>
    %cst_109 = arith.constant 1.000000e+00 : f32
    %276 = vector.broadcast %cst_109 : f32 to vector<8x128xf32>
    %277 = arith.subf %276, %270 : vector<8x128xf32>
    %278 = arith.mulf %277, %275 : vector<8x128xf32>
    %279 = arith.mulf %270, %212 : vector<8x128xf32>
    %280 = arith.addf %278, %279 : vector<8x128xf32>
    %c32 = arith.constant 32 : index
    %c0_110 = arith.constant 0 : index
    %281 = vector.load %arg14[%c32, %c0_110] : memref<64x384xf32, #tpu.memory_space<vmem>>, vector<8x384xf32>
    %c0_111 = arith.constant 0 : index
    %c0_112 = arith.constant 0 : index
    %282 = vector.load %arg2[%c0_111, %c0_112] : memref<128x384xf32, #tpu.memory_space<vmem>>, vector<128x384xf32>
    %cst_113 = arith.constant dense<0.000000e+00> : vector<8x384xf32>
    %283 = tpu.matmul %248, %282, %cst_113 {dimension_numbers = #tpu.dot_dimension_numbers<[1], [0], [0], [1], [0, 0, 1, 1], [], []>} : vector<8x128xf32>, vector<128x384xf32>, vector<8x384xf32> -> vector<8x384xf32>
    %c0_114 = arith.constant 0 : index
    %c0_115 = arith.constant 0 : index
    %284 = vector.load %arg4[%c0_114, %c0_115] : memref<1x384xf32, #tpu.memory_space<vmem>>, vector<1x384xf32>
    %285 = vector.broadcast %284 : vector<1x384xf32> to vector<8x384xf32>
    %286 = arith.addf %283, %285 : vector<8x384xf32>
    %287 = vector.extract_strided_slice %281 {offsets = [0, 0], sizes = [8, 128], strides = [1, 1]} : vector<8x384xf32> to vector<8x128xf32>
    %288 = vector.extract_strided_slice %286 {offsets = [0, 0], sizes = [8, 128], strides = [1, 1]} : vector<8x384xf32> to vector<8x128xf32>
    %289 = arith.addf %287, %288 : vector<8x128xf32>
    %cst_116 = arith.constant 5.000000e-01 : f32
    %290 = vector.broadcast %cst_116 : f32 to vector<8x128xf32>
    %291 = arith.mulf %290, %289 : vector<8x128xf32>
    %292 = math.tanh %291 : vector<8x128xf32>
    %cst_117 = arith.constant 5.000000e-01 : f32
    %293 = vector.broadcast %cst_117 : f32 to vector<8x128xf32>
    %294 = arith.mulf %293, %292 : vector<8x128xf32>
    %cst_118 = arith.constant 5.000000e-01 : f32
    %295 = vector.broadcast %cst_118 : f32 to vector<8x128xf32>
    %296 = arith.addf %294, %295 : vector<8x128xf32>
    %297 = vector.extract_strided_slice %281 {offsets = [0, 128], sizes = [8, 128], strides = [1, 1]} : vector<8x384xf32> to vector<8x128xf32>
    %298 = vector.extract_strided_slice %286 {offsets = [0, 128], sizes = [8, 128], strides = [1, 1]} : vector<8x384xf32> to vector<8x128xf32>
    %299 = arith.addf %297, %298 : vector<8x128xf32>
    %cst_119 = arith.constant 5.000000e-01 : f32
    %300 = vector.broadcast %cst_119 : f32 to vector<8x128xf32>
    %301 = arith.mulf %300, %299 : vector<8x128xf32>
    %302 = math.tanh %301 : vector<8x128xf32>
    %cst_120 = arith.constant 5.000000e-01 : f32
    %303 = vector.broadcast %cst_120 : f32 to vector<8x128xf32>
    %304 = arith.mulf %303, %302 : vector<8x128xf32>
    %cst_121 = arith.constant 5.000000e-01 : f32
    %305 = vector.broadcast %cst_121 : f32 to vector<8x128xf32>
    %306 = arith.addf %304, %305 : vector<8x128xf32>
    %307 = vector.extract_strided_slice %281 {offsets = [0, 256], sizes = [8, 128], strides = [1, 1]} : vector<8x384xf32> to vector<8x128xf32>
    %308 = vector.extract_strided_slice %286 {offsets = [0, 256], sizes = [8, 128], strides = [1, 1]} : vector<8x384xf32> to vector<8x128xf32>
    %309 = arith.mulf %296, %308 : vector<8x128xf32>
    %310 = arith.addf %307, %309 : vector<8x128xf32>
    %311 = math.tanh %310 : vector<8x128xf32>
    %cst_122 = arith.constant 1.000000e+00 : f32
    %312 = vector.broadcast %cst_122 : f32 to vector<8x128xf32>
    %313 = arith.subf %312, %306 : vector<8x128xf32>
    %314 = arith.mulf %313, %311 : vector<8x128xf32>
    %315 = arith.mulf %306, %248 : vector<8x128xf32>
    %316 = arith.addf %314, %315 : vector<8x128xf32>
    %317 = tpu.concatenate %316, %280 in 1 : vector<8x128xf32>, vector<8x128xf32> -> vector<8x256xf32>
    %c0_123 = arith.constant 0 : index
    %c0_124 = arith.constant 0 : index
    %318 = vector.load %arg5[%c0_123, %c0_124] : memref<256x512xf32, #tpu.memory_space<vmem>>, vector<256x512xf32>
    %cst_125 = arith.constant dense<0.000000e+00> : vector<8x512xf32>
    %319 = tpu.matmul %317, %318, %cst_125 {dimension_numbers = #tpu.dot_dimension_numbers<[1], [0], [0], [1], [0, 0, 1, 1], [], []>} : vector<8x256xf32>, vector<256x512xf32>, vector<8x512xf32> -> vector<8x512xf32>
    %c0_126 = arith.constant 0 : index
    %c0_127 = arith.constant 0 : index
    %320 = vector.load %arg6[%c0_126, %c0_127] : memref<1x512xf32, #tpu.memory_space<vmem>>, vector<1x512xf32>
    %321 = vector.broadcast %320 : vector<1x512xf32> to vector<8x512xf32>
    %322 = arith.addf %319, %321 : vector<8x512xf32>
    %323 = vector.extract_strided_slice %322 {offsets = [0, 0], sizes = [8, 128], strides = [1, 1]} : vector<8x512xf32> to vector<8x128xf32>
    %cst_128 = arith.constant 5.000000e-01 : f32
    %324 = vector.broadcast %cst_128 : f32 to vector<8x128xf32>
    %325 = arith.mulf %324, %323 : vector<8x128xf32>
    %326 = math.tanh %325 : vector<8x128xf32>
    %cst_129 = arith.constant 5.000000e-01 : f32
    %327 = vector.broadcast %cst_129 : f32 to vector<8x128xf32>
    %328 = arith.mulf %327, %326 : vector<8x128xf32>
    %cst_130 = arith.constant 5.000000e-01 : f32
    %329 = vector.broadcast %cst_130 : f32 to vector<8x128xf32>
    %330 = arith.addf %328, %329 : vector<8x128xf32>
    %331 = vector.extract_strided_slice %322 {offsets = [0, 128], sizes = [8, 128], strides = [1, 1]} : vector<8x512xf32> to vector<8x128xf32>
    %cst_131 = arith.constant 5.000000e-01 : f32
    %332 = vector.broadcast %cst_131 : f32 to vector<8x128xf32>
    %333 = arith.mulf %332, %331 : vector<8x128xf32>
    %334 = math.tanh %333 : vector<8x128xf32>
    %cst_132 = arith.constant 5.000000e-01 : f32
    %335 = vector.broadcast %cst_132 : f32 to vector<8x128xf32>
    %336 = arith.mulf %335, %334 : vector<8x128xf32>
    %cst_133 = arith.constant 5.000000e-01 : f32
    %337 = vector.broadcast %cst_133 : f32 to vector<8x128xf32>
    %338 = arith.addf %336, %337 : vector<8x128xf32>
    %339 = vector.extract_strided_slice %322 {offsets = [0, 256], sizes = [8, 128], strides = [1, 1]} : vector<8x512xf32> to vector<8x128xf32>
    %340 = vector.extract_strided_slice %322 {offsets = [0, 384], sizes = [8, 128], strides = [1, 1]} : vector<8x512xf32> to vector<8x128xf32>
    %341 = arith.mulf %330, %340 : vector<8x128xf32>
    %342 = arith.addf %339, %341 : vector<8x128xf32>
    %343 = math.tanh %342 : vector<8x128xf32>
    %cst_134 = arith.constant 1.000000e+00 : f32
    %344 = vector.broadcast %cst_134 : f32 to vector<8x128xf32>
    %345 = arith.subf %344, %338 : vector<8x128xf32>
    %346 = arith.mulf %345, %343 : vector<8x128xf32>
    %347 = arith.mulf %338, %280 : vector<8x128xf32>
    %348 = arith.addf %346, %347 : vector<8x128xf32>
    %c40 = arith.constant 40 : index
    %c0_135 = arith.constant 0 : index
    %349 = vector.load %arg14[%c40, %c0_135] : memref<64x384xf32, #tpu.memory_space<vmem>>, vector<8x384xf32>
    %c0_136 = arith.constant 0 : index
    %c0_137 = arith.constant 0 : index
    %350 = vector.load %arg2[%c0_136, %c0_137] : memref<128x384xf32, #tpu.memory_space<vmem>>, vector<128x384xf32>
    %cst_138 = arith.constant dense<0.000000e+00> : vector<8x384xf32>
    %351 = tpu.matmul %316, %350, %cst_138 {dimension_numbers = #tpu.dot_dimension_numbers<[1], [0], [0], [1], [0, 0, 1, 1], [], []>} : vector<8x128xf32>, vector<128x384xf32>, vector<8x384xf32> -> vector<8x384xf32>
    %c0_139 = arith.constant 0 : index
    %c0_140 = arith.constant 0 : index
    %352 = vector.load %arg4[%c0_139, %c0_140] : memref<1x384xf32, #tpu.memory_space<vmem>>, vector<1x384xf32>
    %353 = vector.broadcast %352 : vector<1x384xf32> to vector<8x384xf32>
    %354 = arith.addf %351, %353 : vector<8x384xf32>
    %355 = vector.extract_strided_slice %349 {offsets = [0, 0], sizes = [8, 128], strides = [1, 1]} : vector<8x384xf32> to vector<8x128xf32>
    %356 = vector.extract_strided_slice %354 {offsets = [0, 0], sizes = [8, 128], strides = [1, 1]} : vector<8x384xf32> to vector<8x128xf32>
    %357 = arith.addf %355, %356 : vector<8x128xf32>
    %cst_141 = arith.constant 5.000000e-01 : f32
    %358 = vector.broadcast %cst_141 : f32 to vector<8x128xf32>
    %359 = arith.mulf %358, %357 : vector<8x128xf32>
    %360 = math.tanh %359 : vector<8x128xf32>
    %cst_142 = arith.constant 5.000000e-01 : f32
    %361 = vector.broadcast %cst_142 : f32 to vector<8x128xf32>
    %362 = arith.mulf %361, %360 : vector<8x128xf32>
    %cst_143 = arith.constant 5.000000e-01 : f32
    %363 = vector.broadcast %cst_143 : f32 to vector<8x128xf32>
    %364 = arith.addf %362, %363 : vector<8x128xf32>
    %365 = vector.extract_strided_slice %349 {offsets = [0, 128], sizes = [8, 128], strides = [1, 1]} : vector<8x384xf32> to vector<8x128xf32>
    %366 = vector.extract_strided_slice %354 {offsets = [0, 128], sizes = [8, 128], strides = [1, 1]} : vector<8x384xf32> to vector<8x128xf32>
    %367 = arith.addf %365, %366 : vector<8x128xf32>
    %cst_144 = arith.constant 5.000000e-01 : f32
    %368 = vector.broadcast %cst_144 : f32 to vector<8x128xf32>
    %369 = arith.mulf %368, %367 : vector<8x128xf32>
    %370 = math.tanh %369 : vector<8x128xf32>
    %cst_145 = arith.constant 5.000000e-01 : f32
    %371 = vector.broadcast %cst_145 : f32 to vector<8x128xf32>
    %372 = arith.mulf %371, %370 : vector<8x128xf32>
    %cst_146 = arith.constant 5.000000e-01 : f32
    %373 = vector.broadcast %cst_146 : f32 to vector<8x128xf32>
    %374 = arith.addf %372, %373 : vector<8x128xf32>
    %375 = vector.extract_strided_slice %349 {offsets = [0, 256], sizes = [8, 128], strides = [1, 1]} : vector<8x384xf32> to vector<8x128xf32>
    %376 = vector.extract_strided_slice %354 {offsets = [0, 256], sizes = [8, 128], strides = [1, 1]} : vector<8x384xf32> to vector<8x128xf32>
    %377 = arith.mulf %364, %376 : vector<8x128xf32>
    %378 = arith.addf %375, %377 : vector<8x128xf32>
    %379 = math.tanh %378 : vector<8x128xf32>
    %cst_147 = arith.constant 1.000000e+00 : f32
    %380 = vector.broadcast %cst_147 : f32 to vector<8x128xf32>
    %381 = arith.subf %380, %374 : vector<8x128xf32>
    %382 = arith.mulf %381, %379 : vector<8x128xf32>
    %383 = arith.mulf %374, %316 : vector<8x128xf32>
    %384 = arith.addf %382, %383 : vector<8x128xf32>
    %385 = tpu.concatenate %384, %348 in 1 : vector<8x128xf32>, vector<8x128xf32> -> vector<8x256xf32>
    %c0_148 = arith.constant 0 : index
    %c0_149 = arith.constant 0 : index
    %386 = vector.load %arg5[%c0_148, %c0_149] : memref<256x512xf32, #tpu.memory_space<vmem>>, vector<256x512xf32>
    %cst_150 = arith.constant dense<0.000000e+00> : vector<8x512xf32>
    %387 = tpu.matmul %385, %386, %cst_150 {dimension_numbers = #tpu.dot_dimension_numbers<[1], [0], [0], [1], [0, 0, 1, 1], [], []>} : vector<8x256xf32>, vector<256x512xf32>, vector<8x512xf32> -> vector<8x512xf32>
    %c0_151 = arith.constant 0 : index
    %c0_152 = arith.constant 0 : index
    %388 = vector.load %arg6[%c0_151, %c0_152] : memref<1x512xf32, #tpu.memory_space<vmem>>, vector<1x512xf32>
    %389 = vector.broadcast %388 : vector<1x512xf32> to vector<8x512xf32>
    %390 = arith.addf %387, %389 : vector<8x512xf32>
    %391 = vector.extract_strided_slice %390 {offsets = [0, 0], sizes = [8, 128], strides = [1, 1]} : vector<8x512xf32> to vector<8x128xf32>
    %cst_153 = arith.constant 5.000000e-01 : f32
    %392 = vector.broadcast %cst_153 : f32 to vector<8x128xf32>
    %393 = arith.mulf %392, %391 : vector<8x128xf32>
    %394 = math.tanh %393 : vector<8x128xf32>
    %cst_154 = arith.constant 5.000000e-01 : f32
    %395 = vector.broadcast %cst_154 : f32 to vector<8x128xf32>
    %396 = arith.mulf %395, %394 : vector<8x128xf32>
    %cst_155 = arith.constant 5.000000e-01 : f32
    %397 = vector.broadcast %cst_155 : f32 to vector<8x128xf32>
    %398 = arith.addf %396, %397 : vector<8x128xf32>
    %399 = vector.extract_strided_slice %390 {offsets = [0, 128], sizes = [8, 128], strides = [1, 1]} : vector<8x512xf32> to vector<8x128xf32>
    %cst_156 = arith.constant 5.000000e-01 : f32
    %400 = vector.broadcast %cst_156 : f32 to vector<8x128xf32>
    %401 = arith.mulf %400, %399 : vector<8x128xf32>
    %402 = math.tanh %401 : vector<8x128xf32>
    %cst_157 = arith.constant 5.000000e-01 : f32
    %403 = vector.broadcast %cst_157 : f32 to vector<8x128xf32>
    %404 = arith.mulf %403, %402 : vector<8x128xf32>
    %cst_158 = arith.constant 5.000000e-01 : f32
    %405 = vector.broadcast %cst_158 : f32 to vector<8x128xf32>
    %406 = arith.addf %404, %405 : vector<8x128xf32>
    %407 = vector.extract_strided_slice %390 {offsets = [0, 256], sizes = [8, 128], strides = [1, 1]} : vector<8x512xf32> to vector<8x128xf32>
    %408 = vector.extract_strided_slice %390 {offsets = [0, 384], sizes = [8, 128], strides = [1, 1]} : vector<8x512xf32> to vector<8x128xf32>
    %409 = arith.mulf %398, %408 : vector<8x128xf32>
    %410 = arith.addf %407, %409 : vector<8x128xf32>
    %411 = math.tanh %410 : vector<8x128xf32>
    %cst_159 = arith.constant 1.000000e+00 : f32
    %412 = vector.broadcast %cst_159 : f32 to vector<8x128xf32>
    %413 = arith.subf %412, %406 : vector<8x128xf32>
    %414 = arith.mulf %413, %411 : vector<8x128xf32>
    %415 = arith.mulf %406, %348 : vector<8x128xf32>
    %416 = arith.addf %414, %415 : vector<8x128xf32>
    %c48 = arith.constant 48 : index
    %c0_160 = arith.constant 0 : index
    %417 = vector.load %arg14[%c48, %c0_160] : memref<64x384xf32, #tpu.memory_space<vmem>>, vector<8x384xf32>
    %c0_161 = arith.constant 0 : index
    %c0_162 = arith.constant 0 : index
    %418 = vector.load %arg2[%c0_161, %c0_162] : memref<128x384xf32, #tpu.memory_space<vmem>>, vector<128x384xf32>
    %cst_163 = arith.constant dense<0.000000e+00> : vector<8x384xf32>
    %419 = tpu.matmul %384, %418, %cst_163 {dimension_numbers = #tpu.dot_dimension_numbers<[1], [0], [0], [1], [0, 0, 1, 1], [], []>} : vector<8x128xf32>, vector<128x384xf32>, vector<8x384xf32> -> vector<8x384xf32>
    %c0_164 = arith.constant 0 : index
    %c0_165 = arith.constant 0 : index
    %420 = vector.load %arg4[%c0_164, %c0_165] : memref<1x384xf32, #tpu.memory_space<vmem>>, vector<1x384xf32>
    %421 = vector.broadcast %420 : vector<1x384xf32> to vector<8x384xf32>
    %422 = arith.addf %419, %421 : vector<8x384xf32>
    %423 = vector.extract_strided_slice %417 {offsets = [0, 0], sizes = [8, 128], strides = [1, 1]} : vector<8x384xf32> to vector<8x128xf32>
    %424 = vector.extract_strided_slice %422 {offsets = [0, 0], sizes = [8, 128], strides = [1, 1]} : vector<8x384xf32> to vector<8x128xf32>
    %425 = arith.addf %423, %424 : vector<8x128xf32>
    %cst_166 = arith.constant 5.000000e-01 : f32
    %426 = vector.broadcast %cst_166 : f32 to vector<8x128xf32>
    %427 = arith.mulf %426, %425 : vector<8x128xf32>
    %428 = math.tanh %427 : vector<8x128xf32>
    %cst_167 = arith.constant 5.000000e-01 : f32
    %429 = vector.broadcast %cst_167 : f32 to vector<8x128xf32>
    %430 = arith.mulf %429, %428 : vector<8x128xf32>
    %cst_168 = arith.constant 5.000000e-01 : f32
    %431 = vector.broadcast %cst_168 : f32 to vector<8x128xf32>
    %432 = arith.addf %430, %431 : vector<8x128xf32>
    %433 = vector.extract_strided_slice %417 {offsets = [0, 128], sizes = [8, 128], strides = [1, 1]} : vector<8x384xf32> to vector<8x128xf32>
    %434 = vector.extract_strided_slice %422 {offsets = [0, 128], sizes = [8, 128], strides = [1, 1]} : vector<8x384xf32> to vector<8x128xf32>
    %435 = arith.addf %433, %434 : vector<8x128xf32>
    %cst_169 = arith.constant 5.000000e-01 : f32
    %436 = vector.broadcast %cst_169 : f32 to vector<8x128xf32>
    %437 = arith.mulf %436, %435 : vector<8x128xf32>
    %438 = math.tanh %437 : vector<8x128xf32>
    %cst_170 = arith.constant 5.000000e-01 : f32
    %439 = vector.broadcast %cst_170 : f32 to vector<8x128xf32>
    %440 = arith.mulf %439, %438 : vector<8x128xf32>
    %cst_171 = arith.constant 5.000000e-01 : f32
    %441 = vector.broadcast %cst_171 : f32 to vector<8x128xf32>
    %442 = arith.addf %440, %441 : vector<8x128xf32>
    %443 = vector.extract_strided_slice %417 {offsets = [0, 256], sizes = [8, 128], strides = [1, 1]} : vector<8x384xf32> to vector<8x128xf32>
    %444 = vector.extract_strided_slice %422 {offsets = [0, 256], sizes = [8, 128], strides = [1, 1]} : vector<8x384xf32> to vector<8x128xf32>
    %445 = arith.mulf %432, %444 : vector<8x128xf32>
    %446 = arith.addf %443, %445 : vector<8x128xf32>
    %447 = math.tanh %446 : vector<8x128xf32>
    %cst_172 = arith.constant 1.000000e+00 : f32
    %448 = vector.broadcast %cst_172 : f32 to vector<8x128xf32>
    %449 = arith.subf %448, %442 : vector<8x128xf32>
    %450 = arith.mulf %449, %447 : vector<8x128xf32>
    %451 = arith.mulf %442, %384 : vector<8x128xf32>
    %452 = arith.addf %450, %451 : vector<8x128xf32>
    %453 = tpu.concatenate %452, %416 in 1 : vector<8x128xf32>, vector<8x128xf32> -> vector<8x256xf32>
    %c0_173 = arith.constant 0 : index
    %c0_174 = arith.constant 0 : index
    %454 = vector.load %arg5[%c0_173, %c0_174] : memref<256x512xf32, #tpu.memory_space<vmem>>, vector<256x512xf32>
    %cst_175 = arith.constant dense<0.000000e+00> : vector<8x512xf32>
    %455 = tpu.matmul %453, %454, %cst_175 {dimension_numbers = #tpu.dot_dimension_numbers<[1], [0], [0], [1], [0, 0, 1, 1], [], []>} : vector<8x256xf32>, vector<256x512xf32>, vector<8x512xf32> -> vector<8x512xf32>
    %c0_176 = arith.constant 0 : index
    %c0_177 = arith.constant 0 : index
    %456 = vector.load %arg6[%c0_176, %c0_177] : memref<1x512xf32, #tpu.memory_space<vmem>>, vector<1x512xf32>
    %457 = vector.broadcast %456 : vector<1x512xf32> to vector<8x512xf32>
    %458 = arith.addf %455, %457 : vector<8x512xf32>
    %459 = vector.extract_strided_slice %458 {offsets = [0, 0], sizes = [8, 128], strides = [1, 1]} : vector<8x512xf32> to vector<8x128xf32>
    %cst_178 = arith.constant 5.000000e-01 : f32
    %460 = vector.broadcast %cst_178 : f32 to vector<8x128xf32>
    %461 = arith.mulf %460, %459 : vector<8x128xf32>
    %462 = math.tanh %461 : vector<8x128xf32>
    %cst_179 = arith.constant 5.000000e-01 : f32
    %463 = vector.broadcast %cst_179 : f32 to vector<8x128xf32>
    %464 = arith.mulf %463, %462 : vector<8x128xf32>
    %cst_180 = arith.constant 5.000000e-01 : f32
    %465 = vector.broadcast %cst_180 : f32 to vector<8x128xf32>
    %466 = arith.addf %464, %465 : vector<8x128xf32>
    %467 = vector.extract_strided_slice %458 {offsets = [0, 128], sizes = [8, 128], strides = [1, 1]} : vector<8x512xf32> to vector<8x128xf32>
    %cst_181 = arith.constant 5.000000e-01 : f32
    %468 = vector.broadcast %cst_181 : f32 to vector<8x128xf32>
    %469 = arith.mulf %468, %467 : vector<8x128xf32>
    %470 = math.tanh %469 : vector<8x128xf32>
    %cst_182 = arith.constant 5.000000e-01 : f32
    %471 = vector.broadcast %cst_182 : f32 to vector<8x128xf32>
    %472 = arith.mulf %471, %470 : vector<8x128xf32>
    %cst_183 = arith.constant 5.000000e-01 : f32
    %473 = vector.broadcast %cst_183 : f32 to vector<8x128xf32>
    %474 = arith.addf %472, %473 : vector<8x128xf32>
    %475 = vector.extract_strided_slice %458 {offsets = [0, 256], sizes = [8, 128], strides = [1, 1]} : vector<8x512xf32> to vector<8x128xf32>
    %476 = vector.extract_strided_slice %458 {offsets = [0, 384], sizes = [8, 128], strides = [1, 1]} : vector<8x512xf32> to vector<8x128xf32>
    %477 = arith.mulf %466, %476 : vector<8x128xf32>
    %478 = arith.addf %475, %477 : vector<8x128xf32>
    %479 = math.tanh %478 : vector<8x128xf32>
    %cst_184 = arith.constant 1.000000e+00 : f32
    %480 = vector.broadcast %cst_184 : f32 to vector<8x128xf32>
    %481 = arith.subf %480, %474 : vector<8x128xf32>
    %482 = arith.mulf %481, %479 : vector<8x128xf32>
    %483 = arith.mulf %474, %416 : vector<8x128xf32>
    %484 = arith.addf %482, %483 : vector<8x128xf32>
    %c56 = arith.constant 56 : index
    %c0_185 = arith.constant 0 : index
    %485 = vector.load %arg14[%c56, %c0_185] : memref<64x384xf32, #tpu.memory_space<vmem>>, vector<8x384xf32>
    %c0_186 = arith.constant 0 : index
    %c0_187 = arith.constant 0 : index
    %486 = vector.load %arg2[%c0_186, %c0_187] : memref<128x384xf32, #tpu.memory_space<vmem>>, vector<128x384xf32>
    %cst_188 = arith.constant dense<0.000000e+00> : vector<8x384xf32>
    %487 = tpu.matmul %452, %486, %cst_188 {dimension_numbers = #tpu.dot_dimension_numbers<[1], [0], [0], [1], [0, 0, 1, 1], [], []>} : vector<8x128xf32>, vector<128x384xf32>, vector<8x384xf32> -> vector<8x384xf32>
    %c0_189 = arith.constant 0 : index
    %c0_190 = arith.constant 0 : index
    %488 = vector.load %arg4[%c0_189, %c0_190] : memref<1x384xf32, #tpu.memory_space<vmem>>, vector<1x384xf32>
    %489 = vector.broadcast %488 : vector<1x384xf32> to vector<8x384xf32>
    %490 = arith.addf %487, %489 : vector<8x384xf32>
    %491 = vector.extract_strided_slice %485 {offsets = [0, 0], sizes = [8, 128], strides = [1, 1]} : vector<8x384xf32> to vector<8x128xf32>
    %492 = vector.extract_strided_slice %490 {offsets = [0, 0], sizes = [8, 128], strides = [1, 1]} : vector<8x384xf32> to vector<8x128xf32>
    %493 = arith.addf %491, %492 : vector<8x128xf32>
    %cst_191 = arith.constant 5.000000e-01 : f32
    %494 = vector.broadcast %cst_191 : f32 to vector<8x128xf32>
    %495 = arith.mulf %494, %493 : vector<8x128xf32>
    %496 = math.tanh %495 : vector<8x128xf32>
    %cst_192 = arith.constant 5.000000e-01 : f32
    %497 = vector.broadcast %cst_192 : f32 to vector<8x128xf32>
    %498 = arith.mulf %497, %496 : vector<8x128xf32>
    %cst_193 = arith.constant 5.000000e-01 : f32
    %499 = vector.broadcast %cst_193 : f32 to vector<8x128xf32>
    %500 = arith.addf %498, %499 : vector<8x128xf32>
    %501 = vector.extract_strided_slice %485 {offsets = [0, 128], sizes = [8, 128], strides = [1, 1]} : vector<8x384xf32> to vector<8x128xf32>
    %502 = vector.extract_strided_slice %490 {offsets = [0, 128], sizes = [8, 128], strides = [1, 1]} : vector<8x384xf32> to vector<8x128xf32>
    %503 = arith.addf %501, %502 : vector<8x128xf32>
    %cst_194 = arith.constant 5.000000e-01 : f32
    %504 = vector.broadcast %cst_194 : f32 to vector<8x128xf32>
    %505 = arith.mulf %504, %503 : vector<8x128xf32>
    %506 = math.tanh %505 : vector<8x128xf32>
    %cst_195 = arith.constant 5.000000e-01 : f32
    %507 = vector.broadcast %cst_195 : f32 to vector<8x128xf32>
    %508 = arith.mulf %507, %506 : vector<8x128xf32>
    %cst_196 = arith.constant 5.000000e-01 : f32
    %509 = vector.broadcast %cst_196 : f32 to vector<8x128xf32>
    %510 = arith.addf %508, %509 : vector<8x128xf32>
    %511 = vector.extract_strided_slice %485 {offsets = [0, 256], sizes = [8, 128], strides = [1, 1]} : vector<8x384xf32> to vector<8x128xf32>
    %512 = vector.extract_strided_slice %490 {offsets = [0, 256], sizes = [8, 128], strides = [1, 1]} : vector<8x384xf32> to vector<8x128xf32>
    %513 = arith.mulf %500, %512 : vector<8x128xf32>
    %514 = arith.addf %511, %513 : vector<8x128xf32>
    %515 = math.tanh %514 : vector<8x128xf32>
    %cst_197 = arith.constant 1.000000e+00 : f32
    %516 = vector.broadcast %cst_197 : f32 to vector<8x128xf32>
    %517 = arith.subf %516, %510 : vector<8x128xf32>
    %518 = arith.mulf %517, %515 : vector<8x128xf32>
    %519 = arith.mulf %510, %452 : vector<8x128xf32>
    %520 = arith.addf %518, %519 : vector<8x128xf32>
    %521 = tpu.concatenate %520, %484 in 1 : vector<8x128xf32>, vector<8x128xf32> -> vector<8x256xf32>
    %c0_198 = arith.constant 0 : index
    %c0_199 = arith.constant 0 : index
    %522 = vector.load %arg5[%c0_198, %c0_199] : memref<256x512xf32, #tpu.memory_space<vmem>>, vector<256x512xf32>
    %cst_200 = arith.constant dense<0.000000e+00> : vector<8x512xf32>
    %523 = tpu.matmul %521, %522, %cst_200 {dimension_numbers = #tpu.dot_dimension_numbers<[1], [0], [0], [1], [0, 0, 1, 1], [], []>} : vector<8x256xf32>, vector<256x512xf32>, vector<8x512xf32> -> vector<8x512xf32>
    %c0_201 = arith.constant 0 : index
    %c0_202 = arith.constant 0 : index
    %524 = vector.load %arg6[%c0_201, %c0_202] : memref<1x512xf32, #tpu.memory_space<vmem>>, vector<1x512xf32>
    %525 = vector.broadcast %524 : vector<1x512xf32> to vector<8x512xf32>
    %526 = arith.addf %523, %525 : vector<8x512xf32>
    %527 = vector.extract_strided_slice %526 {offsets = [0, 0], sizes = [8, 128], strides = [1, 1]} : vector<8x512xf32> to vector<8x128xf32>
    %cst_203 = arith.constant 5.000000e-01 : f32
    %528 = vector.broadcast %cst_203 : f32 to vector<8x128xf32>
    %529 = arith.mulf %528, %527 : vector<8x128xf32>
    %530 = math.tanh %529 : vector<8x128xf32>
    %cst_204 = arith.constant 5.000000e-01 : f32
    %531 = vector.broadcast %cst_204 : f32 to vector<8x128xf32>
    %532 = arith.mulf %531, %530 : vector<8x128xf32>
    %cst_205 = arith.constant 5.000000e-01 : f32
    %533 = vector.broadcast %cst_205 : f32 to vector<8x128xf32>
    %534 = arith.addf %532, %533 : vector<8x128xf32>
    %535 = vector.extract_strided_slice %526 {offsets = [0, 128], sizes = [8, 128], strides = [1, 1]} : vector<8x512xf32> to vector<8x128xf32>
    %cst_206 = arith.constant 5.000000e-01 : f32
    %536 = vector.broadcast %cst_206 : f32 to vector<8x128xf32>
    %537 = arith.mulf %536, %535 : vector<8x128xf32>
    %538 = math.tanh %537 : vector<8x128xf32>
    %cst_207 = arith.constant 5.000000e-01 : f32
    %539 = vector.broadcast %cst_207 : f32 to vector<8x128xf32>
    %540 = arith.mulf %539, %538 : vector<8x128xf32>
    %cst_208 = arith.constant 5.000000e-01 : f32
    %541 = vector.broadcast %cst_208 : f32 to vector<8x128xf32>
    %542 = arith.addf %540, %541 : vector<8x128xf32>
    %543 = vector.extract_strided_slice %526 {offsets = [0, 256], sizes = [8, 128], strides = [1, 1]} : vector<8x512xf32> to vector<8x128xf32>
    %544 = vector.extract_strided_slice %526 {offsets = [0, 384], sizes = [8, 128], strides = [1, 1]} : vector<8x512xf32> to vector<8x128xf32>
    %545 = arith.mulf %534, %544 : vector<8x128xf32>
    %546 = arith.addf %543, %545 : vector<8x128xf32>
    %547 = math.tanh %546 : vector<8x128xf32>
    %cst_209 = arith.constant 1.000000e+00 : f32
    %548 = vector.broadcast %cst_209 : f32 to vector<8x128xf32>
    %549 = arith.subf %548, %542 : vector<8x128xf32>
    %550 = arith.mulf %549, %547 : vector<8x128xf32>
    %551 = arith.mulf %542, %484 : vector<8x128xf32>
    %552 = arith.addf %550, %551 : vector<8x128xf32>
    %553 = vector.extract_strided_slice %552 {offsets = [0, 0], sizes = [8, 32], strides = [1, 1]} : vector<8x128xf32> to vector<8x32xf32>
    %554 = vector.extract_strided_slice %552 {offsets = [0, 32], sizes = [8, 32], strides = [1, 1]} : vector<8x128xf32> to vector<8x32xf32>
    %555 = vector.extract_strided_slice %552 {offsets = [0, 64], sizes = [8, 32], strides = [1, 1]} : vector<8x128xf32> to vector<8x32xf32>
    %556 = vector.extract_strided_slice %552 {offsets = [0, 96], sizes = [8, 32], strides = [1, 1]} : vector<8x128xf32> to vector<8x32xf32>
    %557 = tpu.concatenate %554, %555, %556 in 0 : vector<8x32xf32>, vector<8x32xf32>, vector<8x32xf32> -> vector<24x32xf32>
    %558 = arith.mulf %557, %557 : vector<24x32xf32>
    %cst_210 = arith.constant dense<0.000000e+00> : vector<24xf32>
    %559 = vector.multi_reduction <add>, %558, %cst_210 [1] : vector<24x32xf32> to vector<24xf32>
    %560 = vector.shape_cast %559 : vector<24xf32> to vector<24x1xf32>
    %cst_211 = arith.constant 9.99999996E-13 : f32
    %561 = vector.broadcast %cst_211 : f32 to vector<24x1xf32>
    %562 = arith.maximumf %560, %561 : vector<24x1xf32>
    %563 = math.rsqrt %562 : vector<24x1xf32>
    %564 = vector.broadcast %563 : vector<24x1xf32> to vector<24x32xf32>
    %565 = arith.mulf %557, %564 : vector<24x32xf32>
    %c0_212 = arith.constant 0 : index
    %c0_213 = arith.constant 0 : index
    %566 = vector.load %arg7[%c0_212, %c0_213] : memref<8x32xf32, #tpu.memory_space<vmem>>, vector<8x32xf32>
    %567 = tpu.concatenate %565, %553, %566 in 0 : vector<24x32xf32>, vector<8x32xf32>, vector<8x32xf32> -> vector<40x32xf32>
    %cst_214 = arith.constant dense<0.000000e+00> : vector<40x40xf32>
    %568 = tpu.matmul %567, %567, %cst_214 {dimension_numbers = #tpu.dot_dimension_numbers<[1], [1], [0], [0], [0, 0, 1, 0], [], []>} : vector<40x32xf32>, vector<40x32xf32>, vector<40x40xf32> -> vector<40x40xf32>
    %569 = vector.extract_strided_slice %568 {offsets = [24, 32], sizes = [8, 4], strides = [1, 1]} : vector<40x40xf32> to vector<8x4xf32>
    %570 = vector.extract_strided_slice %568 {offsets = [36, 24], sizes = [4, 8], strides = [1, 1]} : vector<40x40xf32> to vector<4x8xf32>
    %571 = tpu.iota {dimensions = array<i32: 0>} : vector<8x8xi32>
    %572 = tpu.iota {dimensions = array<i32: 1>} : vector<8x8xi32>
    %573 = arith.cmpi eq, %571, %572 : vector<8x8xi32>
    %574 = arith.extui %573 : vector<8x8xi1> to vector<8x8xi32>
    %575 = arith.sitofp %574 : vector<8x8xi32> to vector<8x8xf32>
    %576 = vector.extract_strided_slice %568 {offsets = [0, 0], sizes = [8, 8], strides = [1, 1]} : vector<40x40xf32> to vector<8x8xf32>
    %577 = arith.subf %576, %575 : vector<8x8xf32>
    %578 = vector.extract_strided_slice %569 {offsets = [0, 0], sizes = [8, 1], strides = [1, 1]} : vector<8x4xf32> to vector<8x1xf32>
    %579 = vector.extract_strided_slice %570 {offsets = [0, 0], sizes = [1, 8], strides = [1, 1]} : vector<4x8xf32> to vector<1x8xf32>
    %580 = vector.broadcast %578 : vector<8x1xf32> to vector<8x8xf32>
    %581 = vector.broadcast %579 : vector<1x8xf32> to vector<8x8xf32>
    %582 = arith.addf %580, %581 : vector<8x8xf32>
    %c0_215 = arith.constant 0 : index
    %583 = memref.load %arg11[%c0_215] : memref<4xf32, #tpu.memory_space<smem>>
    %584 = vector.broadcast %583 : f32 to vector<8x8xf32>
    %585 = arith.addf %582, %584 : vector<8x8xf32>
    %cst_216 = arith.constant 0.000000e+00 : f32
    %586 = vector.broadcast %cst_216 : f32 to vector<8x8xf32>
    %587 = arith.cmpf oge, %585, %586 : vector<8x8xf32>
    %cst_217 = arith.constant 0.00999999977 : f32
    %588 = vector.broadcast %cst_217 : f32 to vector<8x8xf32>
    %589 = arith.mulf %588, %585 : vector<8x8xf32>
    %590 = arith.select %587, %585, %589 : vector<8x8xi1>, vector<8x8xf32>
    %cst_218 = arith.constant 0.000000e+00 : f32
    %591 = vector.broadcast %cst_218 : f32 to vector<8x8xf32>
    %592 = arith.cmpf oeq, %577, %591 : vector<8x8xf32>
    %593 = arith.ori %592, %573 : vector<8x8xi1>
    %594 = arith.mulf %577, %590 : vector<8x8xf32>
    %cst_219 = arith.constant -1.000000e+10 : f32
    %595 = vector.broadcast %cst_219 : f32 to vector<8x8xf32>
    %596 = arith.select %593, %595, %594 : vector<8x8xi1>, vector<8x8xf32>
    %cst_220 = arith.constant dense<0xFF800000> : vector<8xf32>
    %597 = vector.multi_reduction <maximumf>, %596, %cst_220 [1] : vector<8x8xf32> to vector<8xf32>
    %598 = vector.shape_cast %597 : vector<8xf32> to vector<8x1xf32>
    %599 = vector.broadcast %598 : vector<8x1xf32> to vector<8x8xf32>
    %600 = arith.subf %596, %599 : vector<8x8xf32>
    %601 = math.exp %600 : vector<8x8xf32>
    %cst_221 = arith.constant dense<0.000000e+00> : vector<8xf32>
    %602 = vector.multi_reduction <add>, %601, %cst_221 [1] : vector<8x8xf32> to vector<8xf32>
    %603 = vector.shape_cast %602 : vector<8xf32> to vector<8x1xf32>
    %604 = tpu.reciprocal %603 {approx = true} : vector<8x1xf32> -> vector<8x1xf32>
    %605 = vector.broadcast %604 : vector<8x1xf32> to vector<8x8xf32>
    %606 = arith.mulf %601, %605 : vector<8x8xf32>
    %607 = vector.extract_strided_slice %568 {offsets = [8, 8], sizes = [8, 8], strides = [1, 1]} : vector<40x40xf32> to vector<8x8xf32>
    %608 = arith.subf %607, %575 : vector<8x8xf32>
    %609 = vector.extract_strided_slice %569 {offsets = [0, 1], sizes = [8, 1], strides = [1, 1]} : vector<8x4xf32> to vector<8x1xf32>
    %610 = vector.extract_strided_slice %570 {offsets = [1, 0], sizes = [1, 8], strides = [1, 1]} : vector<4x8xf32> to vector<1x8xf32>
    %611 = vector.broadcast %609 : vector<8x1xf32> to vector<8x8xf32>
    %612 = vector.broadcast %610 : vector<1x8xf32> to vector<8x8xf32>
    %613 = arith.addf %611, %612 : vector<8x8xf32>
    %c1 = arith.constant 1 : index
    %614 = memref.load %arg11[%c1] : memref<4xf32, #tpu.memory_space<smem>>
    %615 = vector.broadcast %614 : f32 to vector<8x8xf32>
    %616 = arith.addf %613, %615 : vector<8x8xf32>
    %cst_222 = arith.constant 0.000000e+00 : f32
    %617 = vector.broadcast %cst_222 : f32 to vector<8x8xf32>
    %618 = arith.cmpf oge, %616, %617 : vector<8x8xf32>
    %cst_223 = arith.constant 0.00999999977 : f32
    %619 = vector.broadcast %cst_223 : f32 to vector<8x8xf32>
    %620 = arith.mulf %619, %616 : vector<8x8xf32>
    %621 = arith.select %618, %616, %620 : vector<8x8xi1>, vector<8x8xf32>
    %cst_224 = arith.constant 0.000000e+00 : f32
    %622 = vector.broadcast %cst_224 : f32 to vector<8x8xf32>
    %623 = arith.cmpf oeq, %608, %622 : vector<8x8xf32>
    %624 = arith.ori %623, %573 : vector<8x8xi1>
    %625 = arith.mulf %608, %621 : vector<8x8xf32>
    %cst_225 = arith.constant -1.000000e+10 : f32
    %626 = vector.broadcast %cst_225 : f32 to vector<8x8xf32>
    %627 = arith.select %624, %626, %625 : vector<8x8xi1>, vector<8x8xf32>
    %cst_226 = arith.constant dense<0xFF800000> : vector<8xf32>
    %628 = vector.multi_reduction <maximumf>, %627, %cst_226 [1] : vector<8x8xf32> to vector<8xf32>
    %629 = vector.shape_cast %628 : vector<8xf32> to vector<8x1xf32>
    %630 = vector.broadcast %629 : vector<8x1xf32> to vector<8x8xf32>
    %631 = arith.subf %627, %630 : vector<8x8xf32>
    %632 = math.exp %631 : vector<8x8xf32>
    %cst_227 = arith.constant dense<0.000000e+00> : vector<8xf32>
    %633 = vector.multi_reduction <add>, %632, %cst_227 [1] : vector<8x8xf32> to vector<8xf32>
    %634 = vector.shape_cast %633 : vector<8xf32> to vector<8x1xf32>
    %635 = tpu.reciprocal %634 {approx = true} : vector<8x1xf32> -> vector<8x1xf32>
    %636 = vector.broadcast %635 : vector<8x1xf32> to vector<8x8xf32>
    %637 = arith.mulf %632, %636 : vector<8x8xf32>
    %638 = vector.extract_strided_slice %568 {offsets = [16, 16], sizes = [8, 8], strides = [1, 1]} : vector<40x40xf32> to vector<8x8xf32>
    %639 = arith.subf %638, %575 : vector<8x8xf32>
    %640 = vector.extract_strided_slice %569 {offsets = [0, 2], sizes = [8, 1], strides = [1, 1]} : vector<8x4xf32> to vector<8x1xf32>
    %641 = vector.extract_strided_slice %570 {offsets = [2, 0], sizes = [1, 8], strides = [1, 1]} : vector<4x8xf32> to vector<1x8xf32>
    %642 = vector.broadcast %640 : vector<8x1xf32> to vector<8x8xf32>
    %643 = vector.broadcast %641 : vector<1x8xf32> to vector<8x8xf32>
    %644 = arith.addf %642, %643 : vector<8x8xf32>
    %c2 = arith.constant 2 : index
    %645 = memref.load %arg11[%c2] : memref<4xf32, #tpu.memory_space<smem>>
    %646 = vector.broadcast %645 : f32 to vector<8x8xf32>
    %647 = arith.addf %644, %646 : vector<8x8xf32>
    %cst_228 = arith.constant 0.000000e+00 : f32
    %648 = vector.broadcast %cst_228 : f32 to vector<8x8xf32>
    %649 = arith.cmpf oge, %647, %648 : vector<8x8xf32>
    %cst_229 = arith.constant 0.00999999977 : f32
    %650 = vector.broadcast %cst_229 : f32 to vector<8x8xf32>
    %651 = arith.mulf %650, %647 : vector<8x8xf32>
    %652 = arith.select %649, %647, %651 : vector<8x8xi1>, vector<8x8xf32>
    %cst_230 = arith.constant 0.000000e+00 : f32
    %653 = vector.broadcast %cst_230 : f32 to vector<8x8xf32>
    %654 = arith.cmpf oeq, %639, %653 : vector<8x8xf32>
    %655 = arith.ori %654, %573 : vector<8x8xi1>
    %656 = arith.mulf %639, %652 : vector<8x8xf32>
    %cst_231 = arith.constant -1.000000e+10 : f32
    %657 = vector.broadcast %cst_231 : f32 to vector<8x8xf32>
    %658 = arith.select %655, %657, %656 : vector<8x8xi1>, vector<8x8xf32>
    %cst_232 = arith.constant dense<0xFF800000> : vector<8xf32>
    %659 = vector.multi_reduction <maximumf>, %658, %cst_232 [1] : vector<8x8xf32> to vector<8xf32>
    %660 = vector.shape_cast %659 : vector<8xf32> to vector<8x1xf32>
    %661 = vector.broadcast %660 : vector<8x1xf32> to vector<8x8xf32>
    %662 = arith.subf %658, %661 : vector<8x8xf32>
    %663 = math.exp %662 : vector<8x8xf32>
    %cst_233 = arith.constant dense<0.000000e+00> : vector<8xf32>
    %664 = vector.multi_reduction <add>, %663, %cst_233 [1] : vector<8x8xf32> to vector<8xf32>
    %665 = vector.shape_cast %664 : vector<8xf32> to vector<8x1xf32>
    %666 = tpu.reciprocal %665 {approx = true} : vector<8x1xf32> -> vector<8x1xf32>
    %667 = vector.broadcast %666 : vector<8x1xf32> to vector<8x8xf32>
    %668 = arith.mulf %663, %667 : vector<8x8xf32>
    %c0_234 = arith.constant 0 : index
    %669 = memref.load %arg9[%c0_234] : memref<4xf32, #tpu.memory_space<smem>>
    %c0_235 = arith.constant 0 : index
    %c0_236 = arith.constant 0 : index
    %c0_237 = arith.constant 0 : index
    %670 = vector.load %arg8[%c0_235, %c0_236, %c0_237] : memref<4x8x8xf32, #tpu.memory_space<vmem>>, vector<1x8x8xf32>
    %671 = vector.shape_cast %670 : vector<1x8x8xf32> to vector<8x8xf32>
    %672 = vector.broadcast %669 : f32 to vector<8x8xf32>
    %673 = arith.mulf %672, %671 : vector<8x8xf32>
    %c0_238 = arith.constant 0 : index
    %c0_239 = arith.constant 0 : index
    %c0_240 = arith.constant 0 : index
    %674 = vector.load %arg8[%c0_238, %c0_239, %c0_240] : memref<4x8x8xf32, #tpu.memory_space<vmem>>, vector<1x8x8xf32>
    %675 = vector.shape_cast %674 : vector<1x8x8xf32> to vector<8x8xf32>
    %c1_241 = arith.constant 1 : index
    %c0_242 = arith.constant 0 : index
    %c0_243 = arith.constant 0 : index
    %676 = vector.load %arg8[%c1_241, %c0_242, %c0_243] : memref<4x8x8xf32, #tpu.memory_space<vmem>>, vector<1x8x8xf32>
    %677 = vector.shape_cast %676 : vector<1x8x8xf32> to vector<8x8xf32>
    %c1_244 = arith.constant 1 : index
    %678 = memref.load %arg9[%c1_244] : memref<4xf32, #tpu.memory_space<smem>>
    %679 = vector.broadcast %678 : f32 to vector<8x8xf32>
    %680 = arith.mulf %679, %677 : vector<8x8xf32>
    %681 = arith.addf %673, %680 : vector<8x8xf32>
    %682 = arith.addf %675, %677 : vector<8x8xf32>
    %c2_245 = arith.constant 2 : index
    %c0_246 = arith.constant 0 : index
    %c0_247 = arith.constant 0 : index
    %683 = vector.load %arg8[%c2_245, %c0_246, %c0_247] : memref<4x8x8xf32, #tpu.memory_space<vmem>>, vector<1x8x8xf32>
    %684 = vector.shape_cast %683 : vector<1x8x8xf32> to vector<8x8xf32>
    %c2_248 = arith.constant 2 : index
    %685 = memref.load %arg9[%c2_248] : memref<4xf32, #tpu.memory_space<smem>>
    %686 = vector.broadcast %685 : f32 to vector<8x8xf32>
    %687 = arith.mulf %686, %684 : vector<8x8xf32>
    %688 = arith.addf %681, %687 : vector<8x8xf32>
    %689 = arith.addf %682, %684 : vector<8x8xf32>
    %c3 = arith.constant 3 : index
    %c0_249 = arith.constant 0 : index
    %c0_250 = arith.constant 0 : index
    %690 = vector.load %arg8[%c3, %c0_249, %c0_250] : memref<4x8x8xf32, #tpu.memory_space<vmem>>, vector<1x8x8xf32>
    %691 = vector.shape_cast %690 : vector<1x8x8xf32> to vector<8x8xf32>
    %c3_251 = arith.constant 3 : index
    %692 = memref.load %arg9[%c3_251] : memref<4xf32, #tpu.memory_space<smem>>
    %693 = vector.broadcast %692 : f32 to vector<8x8xf32>
    %694 = arith.mulf %693, %691 : vector<8x8xf32>
    %695 = arith.addf %688, %694 : vector<8x8xf32>
    %696 = arith.addf %689, %691 : vector<8x8xf32>
    %697 = vector.extract_strided_slice %569 {offsets = [0, 3], sizes = [8, 1], strides = [1, 1]} : vector<8x4xf32> to vector<8x1xf32>
    %698 = vector.extract_strided_slice %570 {offsets = [3, 0], sizes = [1, 8], strides = [1, 1]} : vector<4x8xf32> to vector<1x8xf32>
    %699 = vector.broadcast %697 : vector<8x1xf32> to vector<8x8xf32>
    %700 = vector.broadcast %698 : vector<1x8xf32> to vector<8x8xf32>
    %701 = arith.addf %699, %700 : vector<8x8xf32>
    %702 = arith.addf %701, %695 : vector<8x8xf32>
    %c3_252 = arith.constant 3 : index
    %703 = memref.load %arg11[%c3_252] : memref<4xf32, #tpu.memory_space<smem>>
    %704 = vector.broadcast %703 : f32 to vector<8x8xf32>
    %705 = arith.addf %702, %704 : vector<8x8xf32>
    %cst_253 = arith.constant 0.000000e+00 : f32
    %706 = vector.broadcast %cst_253 : f32 to vector<8x8xf32>
    %707 = arith.cmpf oge, %705, %706 : vector<8x8xf32>
    %cst_254 = arith.constant 0.00999999977 : f32
    %708 = vector.broadcast %cst_254 : f32 to vector<8x8xf32>
    %709 = arith.mulf %708, %705 : vector<8x8xf32>
    %710 = arith.select %707, %705, %709 : vector<8x8xi1>, vector<8x8xf32>
    %cst_255 = arith.constant 0.000000e+00 : f32
    %711 = vector.broadcast %cst_255 : f32 to vector<8x8xf32>
    %712 = arith.cmpf one, %696, %711 : vector<8x8xf32>
    %cst_256 = arith.constant 1.000000e+00 : f32
    %cst_257 = arith.constant 0.000000e+00 : f32
    %713 = vector.broadcast %cst_256 : f32 to vector<8x8xf32>
    %714 = vector.broadcast %cst_257 : f32 to vector<8x8xf32>
    %715 = arith.select %712, %713, %714 : vector<8x8xi1>, vector<8x8xf32>
    %716 = arith.mulf %715, %710 : vector<8x8xf32>
    %cst_258 = arith.constant 0.000000e+00 : f32
    %717 = vector.broadcast %cst_258 : f32 to vector<8x8xf32>
    %718 = arith.cmpf oeq, %716, %717 : vector<8x8xf32>
    %cst_259 = arith.constant -1.000000e+05 : f32
    %719 = vector.broadcast %cst_259 : f32 to vector<8x8xf32>
    %720 = arith.select %718, %719, %716 : vector<8x8xi1>, vector<8x8xf32>
    %cst_260 = arith.constant dense<0xFF800000> : vector<8xf32>
    %721 = vector.multi_reduction <maximumf>, %720, %cst_260 [1] : vector<8x8xf32> to vector<8xf32>
    %722 = vector.shape_cast %721 : vector<8xf32> to vector<8x1xf32>
    %723 = vector.broadcast %722 : vector<8x1xf32> to vector<8x8xf32>
    %724 = arith.subf %720, %723 : vector<8x8xf32>
    %725 = math.exp %724 : vector<8x8xf32>
    %cst_261 = arith.constant dense<0.000000e+00> : vector<8xf32>
    %726 = vector.multi_reduction <add>, %725, %cst_261 [1] : vector<8x8xf32> to vector<8xf32>
    %727 = vector.shape_cast %726 : vector<8xf32> to vector<8x1xf32>
    %728 = tpu.reciprocal %727 {approx = true} : vector<8x1xf32> -> vector<8x1xf32>
    %729 = vector.broadcast %728 : vector<8x1xf32> to vector<8x8xf32>
    %730 = arith.mulf %725, %729 : vector<8x8xf32>
    %731 = arith.mulf %730, %715 : vector<8x8xf32>
    %732 = tpu.concatenate %606, %637, %668, %731 in 1 : vector<8x8xf32>, vector<8x8xf32>, vector<8x8xf32>, vector<8x8xf32> -> vector<8x32xf32>
    %c1_262 = arith.constant 1 : index
    %c0_263 = arith.constant 0 : index
    %c0_264 = arith.constant 0 : index
    %733 = vector.load %arg10[%c1_262, %c0_263, %c0_264] : memref<5x1x32xf32, #tpu.memory_space<vmem>>, vector<1x1x32xf32>
    %734 = vector.shape_cast %733 : vector<1x1x32xf32> to vector<1x32xf32>
    %735 = vector.broadcast %734 : vector<1x32xf32> to vector<8x32xf32>
    %736 = arith.mulf %553, %735 : vector<8x32xf32>
    %c2_265 = arith.constant 2 : index
    %c0_266 = arith.constant 0 : index
    %c0_267 = arith.constant 0 : index
    %737 = vector.load %arg10[%c2_265, %c0_266, %c0_267] : memref<5x1x32xf32, #tpu.memory_space<vmem>>, vector<1x1x32xf32>
    %738 = vector.shape_cast %737 : vector<1x1x32xf32> to vector<1x32xf32>
    %739 = vector.broadcast %738 : vector<1x32xf32> to vector<8x32xf32>
    %740 = arith.mulf %553, %739 : vector<8x32xf32>
    %c3_268 = arith.constant 3 : index
    %c0_269 = arith.constant 0 : index
    %c0_270 = arith.constant 0 : index
    %741 = vector.load %arg10[%c3_268, %c0_269, %c0_270] : memref<5x1x32xf32, #tpu.memory_space<vmem>>, vector<1x1x32xf32>
    %742 = vector.shape_cast %741 : vector<1x1x32xf32> to vector<1x32xf32>
    %743 = vector.broadcast %742 : vector<1x32xf32> to vector<8x32xf32>
    %744 = arith.mulf %553, %743 : vector<8x32xf32>
    %c4 = arith.constant 4 : index
    %c0_271 = arith.constant 0 : index
    %c0_272 = arith.constant 0 : index
    %745 = vector.load %arg10[%c4, %c0_271, %c0_272] : memref<5x1x32xf32, #tpu.memory_space<vmem>>, vector<1x1x32xf32>
    %746 = vector.shape_cast %745 : vector<1x1x32xf32> to vector<1x32xf32>
    %747 = vector.broadcast %746 : vector<1x32xf32> to vector<8x32xf32>
    %748 = arith.mulf %553, %747 : vector<8x32xf32>
    %749 = tpu.concatenate %736, %740, %744, %748 in 0 : vector<8x32xf32>, vector<8x32xf32>, vector<8x32xf32>, vector<8x32xf32> -> vector<32x32xf32>
    %cst_273 = arith.constant dense<0.000000e+00> : vector<8x32xf32>
    %750 = tpu.matmul %732, %749, %cst_273 {dimension_numbers = #tpu.dot_dimension_numbers<[1], [0], [0], [1], [0, 0, 1, 1], [], []>} : vector<8x32xf32>, vector<32x32xf32>, vector<8x32xf32> -> vector<8x32xf32>
    %c0_274 = arith.constant 0 : index
    %c0_275 = arith.constant 0 : index
    %c0_276 = arith.constant 0 : index
    %751 = vector.load %arg10[%c0_274, %c0_275, %c0_276] : memref<5x1x32xf32, #tpu.memory_space<vmem>>, vector<1x1x32xf32>
    %752 = vector.shape_cast %751 : vector<1x1x32xf32> to vector<1x32xf32>
    %753 = vector.broadcast %752 : vector<1x32xf32> to vector<8x32xf32>
    %754 = arith.mulf %553, %753 : vector<8x32xf32>
    %755 = arith.addf %754, %750 : vector<8x32xf32>
    %cst_277 = arith.constant dense<0.000000e+00> : vector<8xf32>
    %756 = vector.multi_reduction <add>, %755, %cst_277 [1] : vector<8x32xf32> to vector<8xf32>
    %757 = vector.shape_cast %756 : vector<8xf32> to vector<8x1xf32>
    %c0_278 = arith.constant 0 : index
    %758 = memref.load %arg12[%c0_278] : memref<1xf32, #tpu.memory_space<smem>>
    %759 = vector.broadcast %758 : f32 to vector<8x1xf32>
    %760 = arith.addf %757, %759 : vector<8x1xf32>
    %761 = vector.shape_cast %760 : vector<8x1xf32> to vector<8x1xf32>
    %762 = vector.broadcast %761 : vector<8x1xf32> to vector<8x128xf32>
    %763 = tpu.concatenate %552, %762 in 1 : vector<8x128xf32>, vector<8x128xf32> -> vector<8x256xf32>
    %c0_279 = arith.constant 0 : index
    %c0_280 = arith.constant 0 : index
    %764 = vector.load %arg13[%c0_279, %c0_280] : memref<8x256xf32, #tpu.memory_space<vmem>>, vector<8x256xf32>
    tpu.vector_store %arg13[%c0_279, %c0_280], %763 {strides = array<i32>} : memref<8x256xf32, #tpu.memory_space<vmem>>, vector<8x256xf32>,
    return
  }
}

</mosaic_0001>

<bundles_post_ra>
// kernel: model_forward.1
= control target key start
LH: loop header
LB: loop body
LE: loop exit
PB: predicated region body
PF: predicated region fallthrough
CT: control target
= control target key end

     0   :  { %19 = vsyncpa [#allocation5], 0  ;;  %s7487_s0 = inlined_call_operand.vmem [shape: f32[64,6], index: 0, kind: input, shape index: {}]   ;;  %s7488_s1 = inlined_call_operand.vmem [shape: f32[6,384], index: 1, kind: input, shape index: {}]   ;;  %s7489_s2 = inlined_call_operand.hbm [shape: f32[128,384], index: 2, kind: input, shape index: {}]   ;;  %s7490_s3 = inlined_call_operand.vmem [shape: f32[1,384], index: 3, kind: input, shape index: {}]   ;;  %s7491_s4 = inlined_call_operand.vmem [shape: f32[1,384], index: 4, kind: input, shape index: {}]   ;;  %s7492_s5 = inlined_call_operand.hbm [shape: f32[256,512], index: 5, kind: input, shape index: {}]   ;;  %s7493_s6 = inlined_call_operand.vmem [shape: f32[1,512], index: 6, kind: input, shape index: {}]   ;;  %s7494_s7 = inlined_call_operand.vmem [shape: f32[8,32], index: 7, kind: input, shape index: {}]   ;;  %s7495_s8 = inlined_call_operand.vmem [shape: f32[4,8,8], index: 8, kind: input, shape index: {}]   ;;  %s7496_s9 = inlined_call_operand.vmem [shape: f32[4], index: 9, kind: input, shape index: {}]   ;;  %s7497_s10 = inlined_call_operand.vmem [shape: f32[5,1,32], index: 10, kind: input, shape index: {}]   ;;  %s7498_s11 = inlined_call_operand.vmem [shape: f32[4], index: 11, kind: input, shape index: {}]   ;;  %s7499_s12 = inlined_call_operand.<no memory space> [shape: f32[1], index: 12, kind: input, shape index: {}]   ;;  %s7500_s13 = inlined_call_operand.vmem [shape: f32[8,256], index: 13, kind: output, shape index: {}]  }
   0x1   :  { %20 = vsyncpa [#allocation8], 0 }
   0x2   :  { %21 = vsyncpa [#allocation6], 0 }
   0x3   :  { %22 = vsyncpa [#allocation11], 0  ;;  %s5969_s25 = smov [#allocation4]   ;;  %s5893_s29 = scalar_lea.hbm %s7489_s2, 6144 }
   0x4   :  { %s32_s26 = sshll.u32 %s5969_s25, 4  ;;  %p5894_p0 = scmp.ne.s32.totalorder %s7489_s2, %s5893_s29  ;;  %s33_s26 = int_to_ptr.vmem [resolvable:$true] %s32_s26 }
   0x5   :  { %p5897_p1 = scmp.lt.u32.totalorder %s5893_s29, %s7489_s2 }
   0x7   :  { %p5899_p2 = pnand %p5897_p1, %p5894_p0 }
   0x9   :  { %5902 = shalt.err (!%p5899_p2)
}
   0xa   :  { %s5903_s17 = scalar_lea.vmem %s33_s26, 6144  ;;  %p5908_p4 = scmp.lt.s32.totalorder %s33_s26, %s33_s26 }
   0xb   :  { %p5904_p3 = scmp.ne.s32.totalorder %s33_s26, %s5903_s17  ;;  %p5909_p5 = scmp.lt.s32.totalorder %s5903_s17, %s5903_s17 }
   0xd   :  { %p5910_p6 = por %p5909_p5, %p5908_p4 }
   0xf   :  { %p5911_p7 = pnand %p5910_p6, %p5904_p3 }
  0x11   :  { %5914 = shalt.err (!%p5911_p7)
}
  0x12   :  { %s5970_s18 = smov 384   ;;  %s5971_s19 = smov 24  }
  0x13   :  { %38 = dma.hbm_to_vmem [thread:$0]  %s7489_s2, 6144, %s33_s26, [#allocation5], %s5970_s18, %s5970_s18, %s5971_s19  }
  0x14   :  { %s5972_s22 = smov [#allocation7]   ;;  %s5915_s27 = scalar_lea.hbm %s7492_s5, 16384 }
  0x15   :  { %s48_s23 = sshll.u32 %s5972_s22, 4  ;;  %p5916_p8 = scmp.ne.s32.totalorder %s7492_s5, %s5915_s27  ;;  %s49_s23 = int_to_ptr.vmem [resolvable:$true] %s48_s23 }
  0x16   :  { %p5919_p9 = scmp.lt.u32.totalorder %s5915_s27, %s7492_s5 }
  0x18   :  { %p5921_p10 = pnand %p5919_p9, %p5916_p8 }
  0x1a   :  { %5924 = shalt.err (!%p5921_p10)
}
  0x1b   :  { %s5925_s15 = scalar_lea.vmem %s49_s23, 16384  ;;  %p5930_p12 = scmp.lt.s32.totalorder %s49_s23, %s49_s23 }
  0x1c   :  { %p5926_p11 = scmp.ne.s32.totalorder %s49_s23, %s5925_s15  ;;  %p5931_p13 = scmp.lt.s32.totalorder %s5925_s15, %s5925_s15 }
  0x1e   :  { %p5932_p0 = por %p5931_p13, %p5930_p12 }
  0x20   :  { %p5933_p1 = pnand %p5932_p0, %p5926_p11 }
  0x22   :  { %5936 = shalt.err (!%p5933_p1)
}
  0x23   :  { %s5973_s2 = smov 512   ;;  %s5974_s26 = smov 32  }
  0x24   :  { %54 = dma.hbm_to_vmem [thread:$0]  %s7492_s5, 16384, %s49_s23, [#allocation8], %s5973_s2, %s5973_s2, %s5974_s26  }
  0x25   :  { %s67_s21 = sshll.u32 %s7496_s9, 4  ;;  %s79_s25 = sshll.u32 %s7498_s11, 4  ;;  %s68_s21 = int_to_ptr.vmem [resolvable:$true] %s67_s21  ;;  %s80_s25 = int_to_ptr.vmem [resolvable:$true] %s79_s25 }
  0x26   :  { %s5937_s27 = scalar_lea.vmem %s68_s21, 16  ;;  %p5942_p3 = scmp.lt.s32.totalorder %s68_s21, %s68_s21 }
  0x27   :  { %p5938_p2 = scmp.ne.s32.totalorder %s68_s21, %s5937_s27  ;;  %p5943_p4 = scmp.lt.s32.totalorder %s5937_s27, %s5937_s27 }
  0x29   :  { %p5944_p5 = por %p5943_p4, %p5942_p3 }
  0x2b   :  { %p5945_p6 = pnand %p5944_p5, %p5938_p2 }
  0x2d   :  { %5948 = shalt.err (!%p5945_p6)
}
  0x2e   :  { %s5975_s28 = smov [#allocation9]   ;;  %s5949_s5 = scalar_lea.vmem %s80_s25, 16 }
  0x2f   :  { %70 = dma.vmem_to_smem %s68_s21, 16, %s5975_s28, [#allocation6]  }
  0x30   :  { %p5950_p7 = scmp.ne.s32.totalorder %s80_s25, %s5949_s5  ;;  %p5954_p8 = scmp.lt.s32.totalorder %s80_s25, %s80_s25 }
  0x31   :  { %p5955_p9 = scmp.lt.s32.totalorder %s5949_s5, %s5949_s5 }
  0x33   :  { %p5956_p10 = por %p5955_p9, %p5954_p8 }
  0x35   :  { %p5957_p11 = pnand %p5956_p10, %p5950_p7 }
  0x37   :  { %5960 = shalt.err (!%p5957_p11)
}
  0x38   :  { %s5976_s9 = smov [#allocation10]  }
  0x39   :  { %82 = dma.vmem_to_smem %s80_s25, 16, %s5976_s9, [#allocation11]  }
  0x3a   :  { %5961 = dma.done.wait [#allocation5], 6144  }
  0x3b   :  { %5962 = vsyncadd [#allocation5], 4294961152 }
  0x3c   :  { %5963 = dma.done.wait [#allocation8], 16384  }
  0x3d   :  { %5964 = vsyncadd [#allocation8], 4294950912 }
  0x3e   :  { %5965 = dma.done.wait [#allocation6], 16  }
  0x3f   :  { %5966 = vsyncadd [#allocation6], 4294967280 }
  0x40   :  { %5967 = dma.done.wait [#allocation11], 16  }
  0x41   :  { %5968 = vsyncadd [#allocation11], 4294967280 }
  0x42   :  { %97 = sfence }
  0x43   :  { %v107_v0 = vld [vmem:[%s7488_s1 + $0x8] sm:$0x3f]  ;;  %vm151_vm0 = vcmask 1045504   ;;  %v106_v1 = vld [vmem:[%s7488_s1] sm:$0x3f]  ;;  %v7501_v2 = vmov 0.0  }
  0x44   :  { %3668 = vmatprep.subr.msk.mxu0 %vm151_vm0, %v107_v0  ;;  %225 = vmatprep.mubr.f32.mxu0 %v7501_v2  ;;  %v98_v3 = vld [vmem:[%s7487_s0] sm:$0xff]  ;;  %vm126_vm1 = vcmask 48128   ;;  %v407_v4 = vld [vmem:[#allocation4 + $0x8] sm:$0xff]  ;;  %v409_v8 = vld [vmem:[#allocation4 + $0x18] sm:$0xff]  ;;  %v7503_v31 = vmov 0.0|0.0   ;;  %vm5979_vm2 = vmmov 0  }
  0x45   :  { %v410_v5 = vld [vmem:[#allocation4 + $0x20] sm:$0xff]  ;;  %3669 = vmatpush1.msk.msra.mxu0 %vm151_vm0, %v106_v1  ;;  %3879 = vmatprep.mubr.msk.f32.mxu1 %vm126_vm1, %v98_v3  ;;  %v413_v10 = vld [vmem:[#allocation4 + $0x38] sm:$0xff]  ;;  %v416_v11 = vld [vmem:[#allocation4 + $0x50] sm:$0xff]  ;;  %s5980_s2 = smov 96   ;;  %s5981_s16 = smov 64   ;;  %vm3184_vm3 = vcmask 261120  }
  0x46   :  { %v6106_v6 = vpack.c.bf16 %v410_v5, %v407_v4  ;;  %v406_v7 = vld [vmem:[#allocation4] sm:$0xff]  ;;  %3670 = vmatmul.mubr.msk.f32.vlgmr.msra.gmra.mrb[0].mxu0 %vm126_vm1, %v98_v3  ;;  %v412_v12 = vld [vmem:[#allocation4 + $0x30] sm:$0xff]  ;;  %v99_v13 = vld [vmem:[%s7487_s0 + $0x8] sm:$0xff]  ;;  %v6117_v14 = vpack.c.bf16 %v416_v11, %v413_v10  ;;  %s3459_s27 = sld [smem:[#allocation9]]  ;;  %s3701_s28 = sld [smem:[#allocation9 + $0x1]]  ;;  %vm3397_vm12 = vcmask 130112  }
  0x47   :  { %v6110_v9 = vpack.c.bf16 %v409_v8, %v406_v7  ;;  %231 = vmatprep.mubr.f32.mxu0 %v7501_v2  ;;  %v415_v15 = vld [vmem:[#allocation4 + $0x48] sm:$0xff]  ;;  %v422_v18 = vld [vmem:[#allocation4 + $0x80] sm:$0xff]  ;;  %v421_v21 = vld [vmem:[#allocation4 + $0x78] sm:$0xff]  ;;  %s3703_s5 = sld [smem:[#allocation9 + $0x2]]  ;;  %s3705_s29 = sld [smem:[#allocation9 + $0x3]] }
  0x48   :  { %7626 = vst [vmem:[#allocation16_spill] sm:$0xff] %v6106_v6  ;;  %4208 = vmatprep.subr.bf16.mxu0 %v6106_v6  ;;  %v419_v16 = vld [vmem:[#allocation4 + $0x68] sm:$0xff]  ;;  %v6120_v17 = vpack.c.bf16 %v415_v15, %v412_v12  ;;  %v418_v20 = vld [vmem:[#allocation4 + $0x60] sm:$0xff]  ;;  %v425_v22 = vld [vmem:[#allocation4 + $0x98] sm:$0xff]  ;;  %s3698_s15 = sld [smem:[#allocation10 + $0x1]]  ;;  %s3706_s17 = sld [smem:[#allocation10 + $0x3]] }
  0x49   :  { %4210 = vmatpush1.bf16.msra.mxu0 %v6110_v9  ;;  %v6123_v19 = vpack.c.bf16 %v422_v18, %v419_v16  ;;  %v428_v23 = vld [vmem:[#allocation4 + $0xb0] sm:$0xff]  ;;  %v6135_v26 = vpack.c.bf16 %v421_v21, %v418_v20  ;;  %v427_v30 = vld [vmem:[#allocation4 + $0xa8] sm:$0xff]  ;;  %v434_v34 = vld [vmem:[#allocation4 + $0xe0] sm:$0xff]  ;;  %s5989_s18 = smov 112  }
  0x4a   :  { %4212 = vmatprep.subr.bf16.mxu0 %v6117_v14  ;;  %3671 = vmatmul.mubr.msk.f32.gmra.mrb[2].mxu0 %vm126_vm1, %v99_v13  ;;  %v108_v24 = vld [vmem:[%s7488_s1 + $0x10] sm:$0x3f]  ;;  %v6139_v28 = vpack.c.bf16 %v428_v23, %v425_v22  ;;  %v411_v32 = vld [vmem:[#allocation4 + $0x28] sm:$0xff]  ;;  %v101_v36 = vld [vmem:[%s7487_s0 + $0x18] sm:$0xff] }
  0x4b   :  { %237 = vmatprep.mubr.f32.mxu0 %v7501_v2  ;;  %v100_v25 = vld [vmem:[%s7487_s0 + $0x10] sm:$0xff]  ;;  %3877 = vmatprep.subr.msk.mxu1 %vm151_vm0, %v108_v24  ;;  %v431_v33 = vld [vmem:[#allocation4 + $0xc8] sm:$0xff]  ;;  %v414_v37 = vld [vmem:[#allocation4 + $0x40] sm:$0xff] }
  0x4c   :  { %3878 = vmatpush3.msk.msra.mxu1 %vm151_vm0, %v108_v24  ;;  %v408_v27 = vld [vmem:[#allocation4 + $0x10] sm:$0xff]  ;;  %v417_v38 = vld [vmem:[#allocation4 + $0x58] sm:$0xff]  ;;  %v430_v40 = vld [vmem:[#allocation4 + $0xc0] sm:$0xff]  ;;  %v6158_v42 = vpack.c.bf16 %v434_v34, %v431_v33 }
  0x4d   :  { %4214 = vmatpush1.bf16.msra.mxu0 %v6120_v17  ;;  %v424_v29 = vld [vmem:[#allocation4 + $0x90] sm:$0xff]  ;;  %4239 = vmatprep.subr.bf16.mxu1 %v7503_v31  ;;  %v6144_v35 = vpack.c.bf16 %v411_v32, %v408_v27  ;;  %v6155_v41 = vpack.c.bf16 %v417_v38, %v414_v37  ;;  %v433_v43 = vld [vmem:[#allocation4 + $0xd8] sm:$0xff]  ;;  %v423_v45 = vld [vmem:[#allocation4 + $0x88] sm:$0xff] }
  0x4e   :  { %4216 = vmatprep.subr.bf16.mxu0 %v6123_v19  ;;  %3672 = vmatmul.mubr.msk.f32.gmra.mrb[4].mxu0 %vm126_vm1, %v100_v25  ;;  %v6152_v39 = vpack.c.bf16 %v427_v30, %v424_v29  ;;  %v420_v44 = vld [vmem:[#allocation4 + $0x70] sm:$0xff]  ;;  %v102_v46 = vld [vmem:[%s7487_s0 + $0x20] sm:$0xff]  ;;  %v437_v47 = vld [vmem:[#allocation4 + $0xf8] sm:$0xff]  ;;  %v6169_v49 = vpack.c.bf16 %v433_v43, %v430_v40 }
  0x4f   :  { %3880 = vmatmul.mubr.msk.f32.vlgmr.msra.gmra.mrb[0].mxu1 %vm126_vm1, %v99_v13  ;;  %243 = vmatprep.mubr.f32.mxu0 %v7501_v2  ;;  %v440_v48 = vld [vmem:[#allocation4 + $0x110] sm:$0xff]  ;;  %v103_v50 = vld [vmem:[%s7487_s0 + $0x28] sm:$0xff]  ;;  %v6175_v52 = vpack.c.bf16 %v423_v45, %v420_v44  ;;  %v426_v55 = vld [vmem:[#allocation4 + $0xa0] sm:$0xff] }
  0x50   :  { %3882 = vmatprep.mubr.msk.f32.mxu1 %vm126_vm1, %v100_v25  ;;  %4241 = vmatpush3.bf16.msra.mxu1 %v6144_v35  ;;  %v436_v51 = vld [vmem:[#allocation4 + $0xf0] sm:$0xff]  ;;  %v6178_v53 = vpack.c.bf16 %v440_v48, %v437_v47  ;;  %v439_v54 = vld [vmem:[#allocation4 + $0x108] sm:$0xff]  ;;  %v429_v56 = vld [vmem:[#allocation4 + $0xb8] sm:$0xff] }
  0x51   :  { %4218 = vmatpush1.bf16.msra.mxu0 %v6135_v26  ;;  %4242 = vmatprep.subr.bf16.mxu1 %v7503_v31  ;;  %v104_v57 = vld [vmem:[%s7487_s0 + $0x30] sm:$0xff]  ;;  %v443_v58 = vld [vmem:[#allocation4 + $0x128] sm:$0xff]  ;;  %v446_v59 = vld [vmem:[#allocation4 + $0x140] sm:$0xff]  ;;  %v6189_v60 = vpack.c.bf16 %v439_v54, %v436_v51  ;;  %v6192_v63 = vpack.c.bf16 %v429_v56, %v426_v55 }
  0x52   :  { %4220 = vmatprep.subr.bf16.mxu0 %v6139_v28  ;;  %3673 = vmatmul.mubr.msk.f32.gmra.mrb[6].mxu0 %vm126_vm1, %v101_v36  ;;  %v442_v61 = vld [vmem:[#allocation4 + $0x120] sm:$0xff]  ;;  %v445_v62 = vld [vmem:[#allocation4 + $0x138] sm:$0xff]  ;;  %v6195_v0 = vpack.c.bf16 %v446_v59, %v443_v58  ;;  %v432_v3 = vld [vmem:[#allocation4 + $0xd0] sm:$0xff] }
  0x53   :  { %3883 = vmatmul.mubr.msk.f32.gmra.mrb[2].mxu1 %vm126_vm1, %v101_v36  ;;  %249 = vmatprep.mubr.f32.mxu0 %v7501_v2  ;;  %v105_v1 = vld [vmem:[%s7487_s0 + $0x38] sm:$0xff]  ;;  %v435_v4 = vld [vmem:[#allocation4 + $0xe8] sm:$0xff]  ;;  %v452_v7 = vld [vmem:[#allocation4 + $0x170] sm:$0xff]  ;;  %v6207_v8 = vpack.c.bf16 %v445_v62, %v442_v61 }
  0x54   :  { %3885 = vmatprep.mubr.msk.f32.mxu1 %vm126_vm1, %v102_v46  ;;  %4244 = vmatpush3.bf16.msra.mxu1 %v6155_v41  ;;  %v449_v5 = vld [vmem:[#allocation4 + $0x158] sm:$0xff]  ;;  %v448_v10 = vld [vmem:[#allocation4 + $0x150] sm:$0xff]  ;;  %v6210_v11 = vpack.c.bf16 %v435_v4, %v432_v3  ;;  %v451_v13 = vld [vmem:[#allocation4 + $0x168] sm:$0xff] }
  0x55   :  { %4222 = vmatpush1.bf16.msra.mxu0 %v6152_v39  ;;  %4245 = vmatprep.subr.bf16.mxu1 %v7503_v31  ;;  %v6213_v12 = vpack.c.bf16 %v452_v7, %v449_v5  ;;  %v438_v15 = vld [vmem:[#allocation4 + $0x100] sm:$0xff]  ;;  %v441_v16 = vld [vmem:[#allocation4 + $0x118] sm:$0xff]  ;;  %v630_v18 = vld [vmem:[#allocation7 + $0x8] sm:$0xff]  ;;  %v6219_v21 = vpack.c.bf16 %v451_v13, %v448_v10 }
  0x56   :  { %4224 = vmatprep.subr.bf16.mxu0 %v6158_v42  ;;  %3674 = vmatmul.mubr.msk.f32.gmra.mrb[8].mxu0 %vm126_vm1, %v102_v46  ;;  %v634_v20 = vld [vmem:[#allocation7 + $0x28] sm:$0xff]  ;;  %v6222_v22 = vpack.c.bf16 %v441_v16, %v438_v15  ;;  %v444_v23 = vld [vmem:[#allocation4 + $0x130] sm:$0xff]  ;;  %v629_v27 = vld [vmem:[#allocation7] sm:$0xff] }
  0x57   :  { %3886 = vmatmul.mubr.msk.f32.gmra.mrb[4].mxu1 %vm126_vm1, %v103_v50  ;;  %255 = vmatprep.mubr.f32.mxu0 %v7501_v2  ;;  %v447_v24 = vld [vmem:[#allocation4 + $0x148] sm:$0xff]  ;;  %v6226_v25 = vpack.c.bf16 %v634_v20, %v630_v18  ;;  %v633_v29 = vld [vmem:[#allocation7 + $0x20] sm:$0xff]  ;;  %v453_v36 = vld [vmem:[#allocation4 + $0x178] sm:$0xff] }
  0x58   :  { %3888 = vmatprep.mubr.msk.f32.mxu1 %vm126_vm1, %v104_v57  ;;  %4247 = vmatpush3.bf16.msra.mxu1 %v6175_v52  ;;  %v638_v30 = vld [vmem:[#allocation7 + $0x48] sm:$0xff]  ;;  %v6232_v33 = vpack.c.bf16 %v447_v24, %v444_v23  ;;  %v450_v34 = vld [vmem:[#allocation4 + $0x160] sm:$0xff]  ;;  %v6234_v37 = vpack.c.bf16 %v633_v29, %v629_v27  ;;  %v632_v38 = vld [vmem:[#allocation7 + $0x18] sm:$0xff] }
  0x59   :  { %4226 = vmatpush1.bf16.msra.mxu0 %v6169_v49  ;;  %4248 = vmatprep.subr.bf16.mxu1 %v7503_v31  ;;  %v642_v32 = vld [vmem:[#allocation7 + $0x68] sm:$0xff]  ;;  %v637_v43 = vld [vmem:[#allocation7 + $0x40] sm:$0xff]  ;;  %v636_v45 = vld [vmem:[#allocation7 + $0x38] sm:$0xff]  ;;  %v6242_v48 = vpack.c.bf16 %v453_v36, %v450_v34 }
  0x5a   :  { %4228 = vmatprep.subr.bf16.mxu0 %v6178_v53  ;;  %3675 = vmatmul.mubr.msk.f32.gmra.mrb[10].mxu0 %vm126_vm1, %v103_v50  ;;  %v6238_v40 = vpack.c.bf16 %v642_v32, %v638_v30  ;;  %v641_v44 = vld [vmem:[#allocation7 + $0x60] sm:$0xff]  ;;  %v646_v46 = vld [vmem:[#allocation7 + $0x88] sm:$0xff]  ;;  %v631_v50 = vld [vmem:[#allocation7 + $0x10] sm:$0xff]  ;;  %v6248_v54 = vpack.c.bf16 %v636_v45, %v632_v38 }
  0x5b   :  { %3889 = vmatmul.mubr.msk.f32.gmra.mrb[6].mxu1 %vm126_vm1, %v105_v1  ;;  %261 = vmatprep.mubr.f32.mxu0 %v7501_v2  ;;  %v650_v47 = vld [vmem:[#allocation7 + $0xa8] sm:$0xff]  ;;  %v6245_v51 = vpack.c.bf16 %v641_v44, %v637_v43  ;;  %v635_v55 = vld [vmem:[#allocation7 + $0x30] sm:$0xff]  ;;  %v649_v58 = vld [vmem:[#allocation7 + $0xa0] sm:$0xff] }
  0x5c   :  { %3923 = vmatprep.mubr.msk.f32.mxu1 %vm5979_vm2, %v7501_v2  ;;  %4250 = vmatpush3.bf16.msra.mxu1 %v6192_v63  ;;  %v6251_v56 = vpack.c.bf16 %v650_v47, %v646_v46  ;;  %v640_v59 = vld [vmem:[#allocation7 + $0x58] sm:$0xff]  ;;  %v6255_v62 = vpack.c.bf16 %v635_v55, %v631_v50  ;;  %v639_v4 = vld [vmem:[#allocation7 + $0x50] sm:$0xff]  ;;  %v654_v23 = vld [vmem:[#allocation7 + $0xc8] sm:$0xff] }
  0x5d   :  { %4230 = vmatpush1.bf16.msra.mxu0 %v6189_v60  ;;  %4251 = vmatprep.subr.bf16.mxu1 %v7503_v31  ;;  %v644_v61 = vld [vmem:[#allocation7 + $0x78] sm:$0xff]  ;;  %v643_v5 = vld [vmem:[#allocation7 + $0x70] sm:$0xff]  ;;  %v658_v24 = vld [vmem:[#allocation7 + $0xe8] sm:$0xff] }
  0x5e   :  { %4232 = vmatprep.subr.bf16.mxu0 %v6195_v0  ;;  %3676 = vmatmul.mubr.msk.f32.gmra.mrb[12].mxu0 %vm126_vm1, %v104_v57  ;;  %v645_v57 = vld [vmem:[#allocation7 + $0x80] sm:$0xff]  ;;  %v6261_v3 = vpack.c.bf16 %v644_v61, %v640_v59  ;;  %v648_v7 = vld [vmem:[#allocation7 + $0x98] sm:$0xff]  ;;  %v6266_v13 = vpack.c.bf16 %v643_v5, %v639_v4  ;;  %v647_v16 = vld [vmem:[#allocation7 + $0x90] sm:$0xff]  ;;  %v6278_v29 = vpack.c.bf16 %v658_v24, %v654_v23 }
  0x5f   :  { %267 = vmatprep.mubr.f32.mxu0 %v7501_v2  ;;  %v652_v10 = vld [vmem:[#allocation7 + $0xb8] sm:$0xff]  ;;  %v651_v18 = vld [vmem:[#allocation7 + $0xb0] sm:$0xff]  ;;  %v653_v32 = vld [vmem:[#allocation7 + $0xc0] sm:$0xff] }
  0x60   :  { %4253 = vmatpush3.bf16.msra.mxu1 %v6210_v11  ;;  %v6270_v15 = vpack.c.bf16 %v652_v10, %v648_v7  ;;  %v6274_v20 = vpack.c.bf16 %v651_v18, %v647_v16  ;;  %v656_v27 = vld [vmem:[#allocation7 + $0xd8] sm:$0xff]  ;;  %7627 = vst [vmem:[#allocation17_spill] sm:$0xff] %v6278_v29  ;;  %v657_v34 = vld [vmem:[#allocation7 + $0xe0] sm:$0xff]  ;;  %v655_v43 = vld [vmem:[#allocation7 + $0xd0] sm:$0xff] }
  0x61   :  { %4234 = vmatpush1.bf16.msra.mxu0 %v6207_v8  ;;  %4254 = vmatprep.subr.bf16.mxu1 %v7503_v31  ;;  %v660_v30 = vld [vmem:[#allocation7 + $0xf8] sm:$0xff]  ;;  %v6282_v38 = vpack.c.bf16 %v657_v34, %v653_v32  ;;  %v659_v44 = vld [vmem:[#allocation7 + $0xf0] sm:$0xff]  ;;  %v662_v45 = vld [vmem:[#allocation7 + $0x108] sm:$0xff] }
  0x62   :  { %4236 = vmatprep.subr.bf16.mxu0 %v6213_v12  ;;  %3677 = vmatmul.mubr.msk.f32.gmra.mrb[14].mxu0 %vm126_vm1, %v105_v1  ;;  %v6258_v1 = vpack.c.bf16 %v649_v58, %v645_v57  ;;  %v6280_v36 = vpack.c.bf16 %v660_v30, %v656_v27  ;;  %v6285_v46 = vpack.c.bf16 %v659_v44, %v655_v43  ;;  %v666_v47 = vld [vmem:[#allocation7 + $0x128] sm:$0xff]  ;;  %v664_v50 = vld [vmem:[#allocation7 + $0x118] sm:$0xff]  ;;  %v661_v59 = vld [vmem:[#allocation7 + $0x100] sm:$0xff] }
  0x63   :  { %535 = vmatprep.mubr.f32.mxu0 %v7501_v2  ;;  %7629 = vst [vmem:[#allocation19_spill] sm:$0xff] %v6282_v38  ;;  %v668_v55 = vld [vmem:[#allocation7 + $0x138] sm:$0xff]  ;;  %v6289_v57 = vpack.c.bf16 %v666_v47, %v662_v45  ;;  %v665_v61 = vld [vmem:[#allocation7 + $0x120] sm:$0xff]  ;;  %v663_v4 = vld [vmem:[#allocation7 + $0x110] sm:$0xff] }
  0x64   :  { %4256 = vmatpush3.bf16.msra.mxu1 %v6222_v22  ;;  %7628 = vst [vmem:[#allocation18_spill] sm:$0xff] %v6280_v36  ;;  %7630 = vst [vmem:[#allocation20_spill] sm:$0xff] %v6285_v46  ;;  %v6291_v58 = vpack.c.bf16 %v668_v55, %v664_v50  ;;  %v6294_v5 = vpack.c.bf16 %v665_v61, %v661_v59  ;;  %v667_v7 = vld [vmem:[#allocation7 + $0x130] sm:$0xff]  ;;  %v670_v10 = vld [vmem:[#allocation7 + $0x148] sm:$0xff] }
  0x65   :  { %4238 = vmatpush1.bf16.msra.mxu0 %v6219_v21  ;;  %4257 = vmatprep.subr.bf16.mxu1 %v7503_v31  ;;  %7631 = vst [vmem:[#allocation21_spill] sm:$0xff] %v6289_v57  ;;  %v674_v16 = vld [vmem:[#allocation7 + $0x168] sm:$0xff]  ;;  %v6298_v18 = vpack.c.bf16 %v667_v7, %v663_v4  ;;  %v672_v24 = vld [vmem:[#allocation7 + $0x158] sm:$0xff]  ;;  %v669_v30 = vld [vmem:[#allocation7 + $0x140] sm:$0xff] }
  0x66   :  { %4264 = vmatprep.subr.bf16.mxu0 %v6226_v25  ;;  %7632 = vst [vmem:[#allocation22_spill] sm:$0xff] %v6291_v58  ;;  %7633 = vst [vmem:[#allocation23_spill] sm:$0xff] %v6294_v5  ;;  %v6300_v23 = vpack.c.bf16 %v674_v16, %v670_v10  ;;  %v676_v27 = vld [vmem:[#allocation7 + $0x178] sm:$0xff]  ;;  %v673_v34 = vld [vmem:[#allocation7 + $0x160] sm:$0xff] }
  0x67   :  { %7634 = vst [vmem:[#allocation24_spill] sm:$0xff] %v6298_v18  ;;  %v6302_v32 = vpack.c.bf16 %v676_v27, %v672_v24  ;;  %v671_v43 = vld [vmem:[#allocation7 + $0x150] sm:$0xff]  ;;  %v6305_v45 = vpack.c.bf16 %v673_v34, %v669_v30  ;;  %v678_v47 = vld [vmem:[#allocation7 + $0x188] sm:$0xff]  ;;  %v680_v55 = vld [vmem:[#allocation7 + $0x198] sm:$0xff] }
  0x68   :  { %536 = vmatmul.mubr.f32.vlgmr.msra.gmra.mrb[0].mxu0 %v7501_v2  ;;  %4259 = vmatpush3.bf16.msra.mxu1 %v6232_v33  ;;  %7635 = vst [vmem:[#allocation25_spill] sm:$0xff] %v6300_v23  ;;  %v675_v44 = vld [vmem:[#allocation7 + $0x170] sm:$0xff]  ;;  %v682_v50 = vld [vmem:[#allocation7 + $0x1a8] sm:$0xff]  ;;  %v684_v4 = vld [vmem:[#allocation7 + $0x1b8] sm:$0xff] }
  0x69   :  { %4266 = vmatpush1.bf16.msra.mxu0 %v6234_v37  ;;  %4260 = vmatprep.subr.bf16.mxu1 %v7503_v31  ;;  %7636 = vst [vmem:[#allocation26_spill] sm:$0xff] %v6302_v32  ;;  %7637 = vst [vmem:[#allocation27_spill] sm:$0xff] %v6305_v45  ;;  %v6309_v59 = vpack.c.bf16 %v675_v44, %v671_v43  ;;  %v6311_v61 = vpack.c.bf16 %v682_v50, %v678_v47  ;;  %v677_v7 = vld [vmem:[#allocation7 + $0x180] sm:$0xff]  ;;  %v679_v24 = vld [vmem:[#allocation7 + $0x190] sm:$0xff] }
  0x6a   :  { %4268 = vmatprep.subr.bf16.mxu0 %v6238_v40  ;;  %843 = vmatprep.mubr.f32.mxu0 %v7501_v2  ;;  %v681_v10 = vld [vmem:[#allocation7 + $0x1a0] sm:$0xff]  ;;  %v6314_v16 = vpack.c.bf16 %v684_v4, %v680_v55  ;;  %v683_v27 = vld [vmem:[#allocation7 + $0x1b0] sm:$0xff]  ;;  %v686_v43 = vld [vmem:[#allocation7 + $0x1c8] sm:$0xff] }
  0x6b   :  { %7638 = vst [vmem:[#allocation28_spill] sm:$0xff] %v6309_v59  ;;  %7639 = vst [vmem:[#allocation29_spill] sm:$0xff] %v6311_v61  ;;  %v6317_v30 = vpack.c.bf16 %v681_v10, %v677_v7  ;;  %v6321_v34 = vpack.c.bf16 %v683_v27, %v679_v24  ;;  %v690_v44 = vld [vmem:[#allocation7 + $0x1e8] sm:$0xff]  ;;  %v688_v47 = vld [vmem:[#allocation7 + $0x1d8] sm:$0xff] }
  0x6c   :  { %4262 = vmatpush3.bf16.msra.mxu1 %v6242_v48  ;;  %7640 = vst [vmem:[#allocation30_spill] sm:$0xff] %v6314_v16  ;;  %v6326_v50 = vpack.c.bf16 %v690_v44, %v686_v43  ;;  %v692_v55 = vld [vmem:[#allocation7 + $0x1f8] sm:$0xff]  ;;  %v685_v4 = vld [vmem:[#allocation7 + $0x1c0] sm:$0xff]  ;;  %v687_v24 = vld [vmem:[#allocation7 + $0x1d0] sm:$0xff] }
  0x6d   :  { %4270 = vmatpush1.bf16.msra.mxu0 %v6245_v51  ;;  %4328 = vmatprep.subr.bf16.mxu1 %v6248_v54  ;;  %7641 = vst [vmem:[#allocation31_spill] sm:$0xff] %v6317_v30  ;;  %7642 = vst [vmem:[#allocation32_spill] sm:$0xff] %v6321_v34  ;;  %v689_v7 = vld [vmem:[#allocation7 + $0x1e0] sm:$0xff]  ;;  %v6328_v10 = vpack.c.bf16 %v692_v55, %v688_v47  ;;  %v691_v27 = vld [vmem:[#allocation7 + $0x1f0] sm:$0xff] }
  0x6e   :  { %4272 = vmatprep.subr.bf16.mxu0 %v6251_v56  ;;  %7643 = vst [vmem:[#allocation33_spill] sm:$0xff] %v6326_v50  ;;  %v6333_v31 = vpack.c.bf16 %v691_v27, %v687_v24  ;;  %v698_v43 = vld [vmem:[#allocation7 + $0x228] sm:$0xff]  ;;  %v696_v44 = vld [vmem:[#allocation7 + $0x218] sm:$0xff]  ;;  %v693_v55 = vld [vmem:[#allocation7 + $0x200] sm:$0xff] }
  0x6f   :  { %3924 = vmatmul.mubr.f32.vlgmr.msra.gmra.mrb[8].mxu1 %v7501_v2  ;;  %7644 = vst [vmem:[#allocation34_spill] sm:$0xff] %v6328_v10  ;;  %v700_v47 = vld [vmem:[#allocation7 + $0x238] sm:$0xff]  ;;  %v695_v24 = vld [vmem:[#allocation7 + $0x210] sm:$0xff]  ;;  %vm5681_vm4 = vmpackc.low %vm3184_vm3, %vm3184_vm3 }
  0x70   :  { %4330 = vmatpush1.bf16.msra.mxu1 %v6255_v62  ;;  %914 = vmatprep.mubr.f32.mxu1 %v7501_v2  ;;  %v6330_v2 = vpack.c.bf16 %v689_v7, %v685_v4  ;;  %7646 = vst [vmem:[#allocation36_spill] sm:$0xff] %v6333_v31  ;;  %v697_v4 = vld [vmem:[#allocation7 + $0x220] sm:$0xff]  ;;  %v6340_v7 = vpack.c.bf16 %v700_v47, %v696_v44  ;;  %v699_v27 = vld [vmem:[#allocation7 + $0x230] sm:$0xff]  ;;  %v708_v44 = vld [vmem:[#allocation7 + $0x278] sm:$0xff] }
  0x71   :  { %4274 = vmatpush1.bf16.msra.mxu0 %v6258_v1  ;;  %4332 = vmatprep.subr.bf16.mxu1 %v6261_v3  ;;  %v701_v47 = vld [vmem:[#allocation7 + $0x240] sm:$0xff] }
  0x72   :  { %4276 = vmatprep.subr.bf16.mxu0 %v6278_v29  ;;  %7645 = vst [vmem:[#allocation35_spill] sm:$0xff] %v6330_v2  ;;  %7648 = vst [vmem:[#allocation38_spill] sm:$0xff] %v6340_v7 }
  0x74   :  { %4334 = vmatpush1.bf16.msra.mxu1 %v6266_v13 }
  0x75   :  { %4336 = vmatprep.subr.bf16.mxu1 %v6270_v15  ;;  %4278 = vmatpush1.bf16.msra.mxu0 %v6282_v38 }
  0x76   :  { %4280 = vmatprep.subr.bf16.mxu0 %v6289_v57 }
  0x78   :  { %4338 = vmatpush1.bf16.msra.mxu1 %v6274_v20 }
  0x79   :  { %4340 = vmatprep.subr.bf16.mxu1 %v6280_v36  ;;  %4282 = vmatpush1.bf16.msra.mxu0 %v6294_v5 }
  0x7a   :  { %4284 = vmatprep.subr.bf16.mxu0 %v6300_v23 }
  0x7c   :  { %4342 = vmatpush1.bf16.msra.mxu1 %v6285_v46 }
  0x7d   :  { %4344 = vmatprep.subr.bf16.mxu1 %v6291_v58  ;;  %4286 = vmatpush1.bf16.msra.mxu0 %v6305_v45 }
  0x7e   :  { %4288 = vmatprep.subr.bf16.mxu0 %v6311_v61  ;;  %v744_v61 = vld [vmem:[#allocation7 + $0x398] sm:$0xff] }
  0x80   :  { %4346 = vmatpush1.bf16.msra.mxu1 %v6298_v18 }
  0x81   :  { %4348 = vmatprep.subr.bf16.mxu1 %v6302_v32  ;;  %4290 = vmatpush1.bf16.msra.mxu0 %v6317_v30 }
  0x82   :  { %4292 = vmatprep.subr.bf16.mxu0 %v6326_v50 }
  0x84   :  { %4350 = vmatpush1.bf16.msra.mxu1 %v6309_v59  ;;  %v748_v59 = vld [vmem:[#allocation7 + $0x3b8] sm:$0xff] }
  0x85   :  { %4352 = vmatprep.subr.bf16.mxu1 %v6314_v16  ;;  %4294 = vmatpush1.bf16.msra.mxu0 %v6330_v2  ;;  %v6342_v16 = vpack.c.bf16 %v697_v4, %v693_v55  ;;  %v705_v55 = vld [vmem:[#allocation7 + $0x260] sm:$0xff] }
  0x86   :  { %v6354_v50 = vpack.c.bf16 %v705_v55, %v701_v47  ;;  %v713_v47 = vld [vmem:[#allocation7 + $0x2a0] sm:$0xff] }
  0x87   :  { %7649 = vst [vmem:[#allocation39_spill] sm:$0xff] %v6342_v16 }
  0x88   :  { %4354 = vmatpush1.bf16.msra.mxu1 %v6321_v34  ;;  %v694_v34 = vld [vmem:[#allocation7 + $0x208] sm:$0xff]  ;;  %7653 = vst [vmem:[#allocation43_spill] sm:$0xff] %v6354_v50 }
  0x89   :  { %4356 = vmatprep.subr.bf16.mxu1 %v6328_v10  ;;  %v6338_v30 = vpack.c.bf16 %v698_v43, %v694_v34  ;;  %v6345_v10 = vpack.c.bf16 %v699_v27, %v695_v24  ;;  %v706_v34 = vld [vmem:[#allocation7 + $0x268] sm:$0xff]  ;;  %v704_v43 = vld [vmem:[#allocation7 + $0x258] sm:$0xff]  ;;  %v703_v24 = vld [vmem:[#allocation7 + $0x250] sm:$0xff] }
  0x8a   :  { %v6352_v4 = vpack.c.bf16 %v708_v44, %v704_v43  ;;  %v707_v27 = vld [vmem:[#allocation7 + $0x270] sm:$0xff]  ;;  %v716_v43 = vld [vmem:[#allocation7 + $0x2b8] sm:$0xff]  ;;  %v709_v44 = vld [vmem:[#allocation7 + $0x280] sm:$0xff] }
  0x8b   :  { %7647 = vst [vmem:[#allocation37_spill] sm:$0xff] %v6338_v30  ;;  %4296 = vmatprep.subr.bf16.mxu0 %v6338_v30  ;;  %7650 = vst [vmem:[#allocation40_spill] sm:$0xff] %v6345_v10  ;;  %v6366_v30 = vpack.c.bf16 %v713_v47, %v709_v44  ;;  %v721_v44 = vld [vmem:[#allocation7 + $0x2e0] sm:$0xff] }
  0x8c   :  { %4358 = vmatpush1.bf16.msra.mxu1 %v6333_v31  ;;  %4298 = vmatpush1.bf16.msra.mxu0 %v6342_v16  ;;  %v702_v31 = vld [vmem:[#allocation7 + $0x248] sm:$0xff]  ;;  %7652 = vst [vmem:[#allocation42_spill] sm:$0xff] %v6352_v4 }
  0x8d   :  { %4360 = vmatprep.subr.bf16.mxu1 %v6340_v7  ;;  %v6350_v2 = vpack.c.bf16 %v706_v34, %v702_v31  ;;  %v6357_v7 = vpack.c.bf16 %v707_v27, %v703_v24  ;;  %v714_v31 = vld [vmem:[#allocation7 + $0x2a8] sm:$0xff]  ;;  %v712_v34 = vld [vmem:[#allocation7 + $0x298] sm:$0xff]  ;;  %7657 = vst [vmem:[#allocation47_spill] sm:$0xff] %v6366_v30  ;;  %v711_v24 = vld [vmem:[#allocation7 + $0x290] sm:$0xff] }
  0x8e   :  { %v6364_v55 = vpack.c.bf16 %v716_v43, %v712_v34  ;;  %v715_v27 = vld [vmem:[#allocation7 + $0x2b0] sm:$0xff]  ;;  %v724_v34 = vld [vmem:[#allocation7 + $0x2f8] sm:$0xff]  ;;  %v717_v43 = vld [vmem:[#allocation7 + $0x2c0] sm:$0xff] }
  0x8f   :  { %7651 = vst [vmem:[#allocation41_spill] sm:$0xff] %v6350_v2  ;;  %4300 = vmatprep.subr.bf16.mxu0 %v6350_v2  ;;  %7654 = vst [vmem:[#allocation44_spill] sm:$0xff] %v6357_v7  ;;  %v6378_v2 = vpack.c.bf16 %v721_v44, %v717_v43  ;;  %v729_v43 = vld [vmem:[#allocation7 + $0x320] sm:$0xff] }
  0x90   :  { %4362 = vmatpush1.bf16.msra.mxu1 %v6345_v10  ;;  %4302 = vmatpush1.bf16.msra.mxu0 %v6354_v50  ;;  %v710_v10 = vld [vmem:[#allocation7 + $0x288] sm:$0xff]  ;;  %7656 = vst [vmem:[#allocation46_spill] sm:$0xff] %v6364_v55 }
  0x91   :  { %4364 = vmatprep.subr.bf16.mxu1 %v6352_v4  ;;  %v6362_v16 = vpack.c.bf16 %v714_v31, %v710_v10  ;;  %v6369_v4 = vpack.c.bf16 %v715_v27, %v711_v24  ;;  %v722_v10 = vld [vmem:[#allocation7 + $0x2e8] sm:$0xff]  ;;  %v720_v31 = vld [vmem:[#allocation7 + $0x2d8] sm:$0xff]  ;;  %7661 = vst [vmem:[#allocation51_spill] sm:$0xff] %v6378_v2  ;;  %v719_v24 = vld [vmem:[#allocation7 + $0x2d0] sm:$0xff] }
  0x92   :  { %v6376_v47 = vpack.c.bf16 %v724_v34, %v720_v31  ;;  %v723_v27 = vld [vmem:[#allocation7 + $0x2f0] sm:$0xff]  ;;  %v732_v31 = vld [vmem:[#allocation7 + $0x338] sm:$0xff]  ;;  %v725_v34 = vld [vmem:[#allocation7 + $0x300] sm:$0xff] }
  0x93   :  { %7655 = vst [vmem:[#allocation45_spill] sm:$0xff] %v6362_v16  ;;  %4304 = vmatprep.subr.bf16.mxu0 %v6362_v16  ;;  %7658 = vst [vmem:[#allocation48_spill] sm:$0xff] %v6369_v4  ;;  %v6390_v16 = vpack.c.bf16 %v729_v43, %v725_v34  ;;  %v737_v34 = vld [vmem:[#allocation7 + $0x360] sm:$0xff] }
  0x94   :  { %4366 = vmatpush1.bf16.msra.mxu1 %v6357_v7  ;;  %4306 = vmatpush1.bf16.msra.mxu0 %v6366_v30  ;;  %v718_v7 = vld [vmem:[#allocation7 + $0x2c8] sm:$0xff]  ;;  %7660 = vst [vmem:[#allocation50_spill] sm:$0xff] %v6376_v47 }
  0x95   :  { %4368 = vmatprep.subr.bf16.mxu1 %v6364_v55  ;;  %v6374_v50 = vpack.c.bf16 %v722_v10, %v718_v7  ;;  %v6381_v55 = vpack.c.bf16 %v723_v27, %v719_v24  ;;  %v730_v7 = vld [vmem:[#allocation7 + $0x328] sm:$0xff]  ;;  %v728_v10 = vld [vmem:[#allocation7 + $0x318] sm:$0xff]  ;;  %7665 = vst [vmem:[#allocation55_spill] sm:$0xff] %v6390_v16  ;;  %v727_v24 = vld [vmem:[#allocation7 + $0x310] sm:$0xff] }
  0x96   :  { %v6388_v44 = vpack.c.bf16 %v732_v31, %v728_v10  ;;  %v731_v27 = vld [vmem:[#allocation7 + $0x330] sm:$0xff]  ;;  %v740_v10 = vld [vmem:[#allocation7 + $0x378] sm:$0xff]  ;;  %v733_v31 = vld [vmem:[#allocation7 + $0x340] sm:$0xff] }
  0x97   :  { %7659 = vst [vmem:[#allocation49_spill] sm:$0xff] %v6374_v50  ;;  %4308 = vmatprep.subr.bf16.mxu0 %v6374_v50  ;;  %7662 = vst [vmem:[#allocation52_spill] sm:$0xff] %v6381_v55  ;;  %v6402_v50 = vpack.c.bf16 %v737_v34, %v733_v31  ;;  %v743_v31 = vld [vmem:[#allocation7 + $0x390] sm:$0xff] }
  0x98   :  { %4370 = vmatpush1.bf16.msra.mxu1 %v6369_v4  ;;  %4310 = vmatpush1.bf16.msra.mxu0 %v6378_v2  ;;  %v726_v4 = vld [vmem:[#allocation7 + $0x308] sm:$0xff]  ;;  %7664 = vst [vmem:[#allocation54_spill] sm:$0xff] %v6388_v44 }
  0x99   :  { %4372 = vmatprep.subr.bf16.mxu1 %v6376_v47  ;;  %v6386_v30 = vpack.c.bf16 %v730_v7, %v726_v4  ;;  %v6393_v47 = vpack.c.bf16 %v731_v27, %v727_v24  ;;  %v738_v4 = vld [vmem:[#allocation7 + $0x368] sm:$0xff]  ;;  %v736_v7 = vld [vmem:[#allocation7 + $0x358] sm:$0xff]  ;;  %7669 = vst [vmem:[#allocation59_spill] sm:$0xff] %v6402_v50  ;;  %v735_v24 = vld [vmem:[#allocation7 + $0x350] sm:$0xff] }
  0x9a   :  { %v6400_v43 = vpack.c.bf16 %v740_v10, %v736_v7  ;;  %v739_v27 = vld [vmem:[#allocation7 + $0x370] sm:$0xff]  ;;  %v741_v7 = vld [vmem:[#allocation7 + $0x380] sm:$0xff] }
  0x9b   :  { %7663 = vst [vmem:[#allocation53_spill] sm:$0xff] %v6386_v30  ;;  %4312 = vmatprep.subr.bf16.mxu0 %v6386_v30  ;;  %7666 = vst [vmem:[#allocation56_spill] sm:$0xff] %v6393_v47  ;;  %v742_v30 = vld [vmem:[#allocation7 + $0x388] sm:$0xff]  ;;  %v745_v10 = vld [vmem:[#allocation7 + $0x3a0] sm:$0xff] }
  0x9c   :  { %4374 = vmatpush1.bf16.msra.mxu1 %v6381_v55  ;;  %4314 = vmatpush1.bf16.msra.mxu0 %v6390_v16  ;;  %v734_v55 = vld [vmem:[#allocation7 + $0x348] sm:$0xff]  ;;  %7668 = vst [vmem:[#allocation58_spill] sm:$0xff] %v6400_v43  ;;  %v6405_v16 = vpack.c.bf16 %v739_v27, %v735_v24  ;;  %v6414_v34 = vpack.c.bf16 %v745_v10, %v741_v7  ;;  %v747_v24 = vld [vmem:[#allocation7 + $0x3b0] sm:$0xff] }
  0x9d   :  { %4376 = vmatprep.subr.bf16.mxu1 %v6388_v44  ;;  %v6398_v2 = vpack.c.bf16 %v738_v4, %v734_v55  ;;  %v746_v44 = vld [vmem:[#allocation7 + $0x3a8] sm:$0xff]  ;;  %v6411_v4 = vpack.c.bf16 %v748_v59, %v744_v61  ;;  %v752_v59 = vld [vmem:[#allocation7 + $0x3d8] sm:$0xff]  ;;  %v755_v7 = vld [vmem:[#allocation7 + $0x3f0] sm:$0xff] }
  0x9e   :  { %7670 = vst [vmem:[#allocation60_spill] sm:$0xff] %v6405_v16  ;;  %v6409_v55 = vpack.c.bf16 %v746_v44, %v742_v30  ;;  %7673 = vst [vmem:[#allocation63_spill] sm:$0xff] %v6414_v34  ;;  %v750_v27 = vld [vmem:[#allocation7 + $0x3c8] sm:$0xff]  ;;  %v756_v61 = vld [vmem:[#allocation7 + $0x3f8] sm:$0xff] }
  0x9f   :  { %7667 = vst [vmem:[#allocation57_spill] sm:$0xff] %v6398_v2  ;;  %4316 = vmatprep.subr.bf16.mxu0 %v6398_v2  ;;  %7672 = vst [vmem:[#allocation62_spill] sm:$0xff] %v6411_v4  ;;  %v754_v2 = vld [vmem:[#allocation7 + $0x3e8] sm:$0xff]  ;;  %v749_v44 = vld [vmem:[#allocation7 + $0x3c0] sm:$0xff] }
  0xa0   :  { %4378 = vmatpush1.bf16.msra.mxu1 %v6393_v47  ;;  %4318 = vmatpush1.bf16.msra.mxu0 %v6402_v50  ;;  %7671 = vst [vmem:[#allocation61_spill] sm:$0xff] %v6409_v55  ;;  %v6420_v30 = vpack.c.bf16 %v754_v2, %v750_v27  ;;  %v6422_v50 = vpack.c.bf16 %v756_v61, %v752_v59  ;;  %v753_v47 = vld [vmem:[#allocation7 + $0x3e0] sm:$0xff]  ;;  %v7679_v2 = vmov 0.0|0.0  }
  0xa1   :  { %4380 = vmatprep.subr.bf16.mxu1 %v6400_v43  ;;  %4320 = vmatprep.subr.bf16.mxu0 %v6409_v55  ;;  %v6418_v43 = vpack.c.bf16 %v747_v24, %v743_v31  ;;  %v6425_v10 = vpack.c.bf16 %v753_v47, %v749_v44  ;;  %v7579_v24 = vlaneseq }
  0xa2   :  { %7675 = vst [vmem:[#allocation65_spill] sm:$0xff] %v6420_v30  ;;  %7676 = vst [vmem:[#allocation66_spill] sm:$0xff] %v6422_v50 }
  0xa3   :  { %7674 = vst [vmem:[#allocation64_spill] sm:$0xff] %v6418_v43  ;;  %7677 = vst [vmem:[#allocation67_spill] sm:$0xff] %v6425_v10  ;;  %v6437_v47 = vshrl.u32 %v7579_v24, 7 }
  0xa4   :  { %4382 = vmatpush1.bf16.msra.mxu1 %v6405_v16  ;;  %v751_v16 = vld [vmem:[#allocation7 + $0x3d0] sm:$0xff]  ;;  %4322 = vmatpush1.bf16.msra.mxu0 %v6414_v34 }
  0xa5   :  { %4384 = vmatprep.subr.bf16.mxu1 %v6411_v4  ;;  %4324 = vmatprep.subr.bf16.mxu0 %v6420_v30  ;;  %v6429_v31 = vpack.c.bf16 %v755_v7, %v751_v16  ;;  %7680 = vst [vmem:[#allocation69_spill] sm:$0xff] %v6437_v47  ;;  %v6440_v27 = vsub.s32 2, %v6437_v47  ;;  %v109_v16 = vld [vmem:[%s7490_s3] sm:$0x7] }
  0xa7   :  { %7678 = vst [vmem:[#allocation68_spill] sm:$0xff] %v6429_v31  ;;  %v122_v59 = vrot.slane %v109_v16, %v6440_v27 }
  0xa8   :  { %4386 = vmatpush1.bf16.msra.mxu1 %v6418_v43  ;;  %4326 = vmatpush1.bf16.msra.mxu0 %v6425_v10 }
  0xa9   :  { %4388 = vmatprep.subr.bf16.mxu1 %v6422_v50  ;;  %4392 = vmatprep.subr.bf16.mxu0 %v6106_v6 }
  0xac   :  { %4390 = vmatpush1.bf16.msra.mxu1 %v6429_v31 }
  0xad   :  { %4423 = vmatprep.subr.bf16.mxu1 %v7679_v2 }
 0x122   :  { %v3881_v61 = vpop.f32.mrb[0].mxu1 }
 0x123   :  { %v6446_v44 = vadd.f32 %v3881_v61, %v122_v59  ;;  %v340_v7 = vpop.f32.mrb[1].mxu1  ;;  %v6459_v61 = vsub.s32 0, %v6437_v47 }
 0x125   :  { %7681 = vst [vmem:[#allocation70_spill] sm:$0xff] %v6446_v44  ;;  %7687 = vst [vmem:[#allocation76_spill] sm:$0xff] %v6459_v61 }
 0x126   :  { %v3884_v6 = vpop.f32.mrb[2].mxu1 }
 0x127   :  { %v6448_v31 = vadd.f32 %v3884_v6, %v122_v59  ;;  %v350_v10 = vpop.f32.mrb[3].mxu1  ;;  %v454_v6 = vld [vmem:[%s7491_s4] sm:$0x7] }
 0x128   :  { %v6450_v50 = vadd.f32 %v350_v10, %v122_v59  ;;  %v6467_v10 = vsub.s32 1, %v6437_v47 }
 0x129   :  { %7682 = vst [vmem:[#allocation71_spill] sm:$0xff] %v6448_v31 }
 0x12a   :  { %7683 = vst [vmem:[#allocation72_spill] sm:$0xff] %v6450_v50  ;;  %v3887_v24 = vpop.f32.mrb[4].mxu1  ;;  %7689 = vst [vmem:[#allocation78_spill] sm:$0xff] %v6467_v10 }
 0x12b   :  { %v6452_v30 = vadd.f32 %v3887_v24, %v122_v59  ;;  %v360_v43 = vpop.f32.mrb[5].mxu1  ;;  %v114_v24 = vrot.slane %v109_v16, %v6459_v61 }
 0x12c   :  { %v6454_v34 = vadd.f32 %v360_v43, %v122_v59  ;;  %v459_v43 = vrot.slane %v454_v6, %v6459_v61 }
 0x12d   :  { %7684 = vst [vmem:[#allocation73_spill] sm:$0xff] %v6452_v30 }
 0x12e   :  { %7685 = vst [vmem:[#allocation74_spill] sm:$0xff] %v6454_v34  ;;  %v3890_v4 = vpop.f32.mrb[6].mxu1  ;;  %v6473_v30 = vadd.f32 %v459_v43, %v114_v24 }
 0x12f   :  { %v6456_v55 = vadd.f32 %v3890_v4, %v122_v59  ;;  %v370_v45 = vpop.f32.mrb[7].mxu1  ;;  %v118_v4 = vrot.slane %v109_v16, %v6467_v10  ;;  %v6480_v16 = vrot.slane %v454_v6, %v6440_v27 }
 0x130   :  { %v6461_v44 = vadd.f32 %v370_v45, %v122_v59  ;;  %7690 = vst [vmem:[#allocation79_spill] sm:$0xff] %v6473_v30 }
 0x131   :  { %7686 = vst [vmem:[#allocation75_spill] sm:$0xff] %v6456_v55  ;;  %v463_v55 = vrot.slane %v454_v6, %v6467_v10  ;;  %v7697_v6 = vld [vmem:[#allocation28_spill] sm:$0xff] }
 0x132   :  { %7688 = vst [vmem:[#allocation77_spill] sm:$0xff] %v6461_v44 }
 0x133   :  { %v6475_v45 = vadd.f32 %v463_v55, %v118_v4  ;;  %v341_v4 = vadd.f32 %v340_v7, %v122_v59  ;;  %v7694_v59 = vld [vmem:[#allocation25_spill] sm:$0xff]  ;;  %v7695_v7 = vld [vmem:[#allocation26_spill] sm:$0xff] }
 0x135   :  { %7691 = vst [vmem:[#allocation80_spill] sm:$0xff] %v6475_v45 }
 0x13b   :  { %v537_v34 = vpop.f32.mrb[0].mxu0 }
 0x13c   :  { %v5700_v44 = vadd.f32 %v6473_v30, %v537_v34  ;;  %v539_v31 = vpop.f32.mrb[1].mxu0 }
 0x13d   :  { %v5702_v47 = vadd.f32 %v6475_v45, %v539_v31 }
 0x13e   :  { %v613_v50 = vmul.f32 0.5, %v5700_v44 }
 0x13f   :  { %v618_v32 = vmul.f32 0.5, %v5702_v47 }
 0x140   :  { %5775 = vtanh.f32 %v613_v50 }
 0x141   :  { %5777 = vtanh.f32 %v618_v32 }
 0x142   :  { %v608_v23 = vpop.f32.mrb[8].mxu1 }
 0x143   :  { %v3925_v18 = vpop.f32.mrb[9].mxu1  ;;  %v609_v43 = vadd.f32 %v608_v23, %v6480_v16  ;;  %v7692_v23 = vmov 0.0  }
 0x14a   :  { %v5776_v10 = vpop.eup %5775 }
 0x14b   :  { %v615_v24 = vmul.f32 0.5, %v5776_v10  ;;  %v5778_v34 = vpop.eup %5777  ;;  %v7698_v10 = vld [vmem:[#allocation29_spill] sm:$0xff] }
 0x14c   :  { %v620_v44 = vmul.f32 0.5, %v5778_v34  ;;  %v7704_v34 = vld [vmem:[#allocation35_spill] sm:$0xff] }
 0x14d   :  { %v616_v55 = vadd.f32 0.5, %v615_v24  ;;  %v7700_v24 = vld [vmem:[#allocation31_spill] sm:$0xff] }
 0x14e   :  { %v621_v31 = vadd.f32 0.5, %v620_v44  ;;  %v7705_v44 = vld [vmem:[#allocation36_spill] sm:$0xff] }
 0x14f   :  { %v622_v61 = vmul.f32 %v616_v55, %v609_v43  ;;  %v7701_v43 = vld [vmem:[#allocation32_spill] sm:$0xff]  ;;  %v7702_v55 = vld [vmem:[#allocation33_spill] sm:$0xff] }
 0x150   :  { %v625_v50 = vsub.f32 1.0, %v621_v31  ;;  %v627_v45 = vmul.f32 0.0, %v621_v31  ;;  %v7706_v31 = vld [vmem:[#allocation37_spill] sm:$0xff] }
 0x151   :  { %v623_v30 = vadd.f32 %v622_v61, %v341_v4  ;;  %v7696_v61 = vld [vmem:[#allocation27_spill] sm:$0xff]  ;;  %v7703_v4 = vld [vmem:[#allocation34_spill] sm:$0xff] }
 0x153   :  { %5779 = vtanh.f32 %v623_v30  ;;  %v7693_v30 = vld [vmem:[#allocation24_spill] sm:$0xff] }
 0x15d   :  { %v5780_v47 = vpop.eup %5779 }
 0x15e   :  { %v626_v18 = vmul.f32 %v5780_v47, %v625_v50  ;;  %v7707_v50 = vld [vmem:[#allocation38_spill] sm:$0xff]  ;;  %v7708_v47 = vld [vmem:[#allocation39_spill] sm:$0xff] }
 0x160   :  { %v6483_v32 = vadd.f32 %v627_v45, %v626_v18  ;;  %v7699_v45 = vld [vmem:[#allocation30_spill] sm:$0xff]  ;;  %v7709_v18 = vld [vmem:[#allocation40_spill] sm:$0xff] }
 0x162   :  { %844 = vmatmul.mubr.f32.vlgmr.msra.gmra.mrb[16].mxu0 %v6483_v32  ;;  %915 = vmatmul.mubr.f32.vlgmr.msra.gmra.mrb[10].mxu1 %v6483_v32 }
 0x163   :  { %4394 = vmatpush1.bf16.msra.mxu0 %v6110_v9  ;;  %4425 = vmatpush3.bf16.msra.mxu1 %v6144_v35 }
 0x164   :  { %4396 = vmatprep.subr.bf16.mxu0 %v6117_v14  ;;  %4426 = vmatprep.subr.bf16.mxu1 %v7679_v2 }
 0x165   :  { %1003 = vmatprep.mubr.f32.mxu0 %v7692_v23  ;;  %3958 = vmatprep.mubr.msk.f32.mxu1 %vm5979_vm2, %v7692_v23 }
 0x167   :  { %4398 = vmatpush1.bf16.msra.mxu0 %v6120_v17  ;;  %4428 = vmatpush3.bf16.msra.mxu1 %v6155_v41 }
 0x168   :  { %4400 = vmatprep.subr.bf16.mxu0 %v6123_v19  ;;  %4429 = vmatprep.subr.bf16.mxu1 %v7679_v2 }
 0x16b   :  { %4402 = vmatpush1.bf16.msra.mxu0 %v6135_v26  ;;  %4431 = vmatpush3.bf16.msra.mxu1 %v6175_v52 }
 0x16c   :  { %4404 = vmatprep.subr.bf16.mxu0 %v6139_v28  ;;  %4432 = vmatprep.subr.bf16.mxu1 %v7679_v2 }
 0x16f   :  { %4406 = vmatpush1.bf16.msra.mxu0 %v6152_v39  ;;  %4434 = vmatpush3.bf16.msra.mxu1 %v6192_v63 }
 0x170   :  { %4408 = vmatprep.subr.bf16.mxu0 %v6158_v42  ;;  %4435 = vmatprep.subr.bf16.mxu1 %v7679_v2 }
 0x173   :  { %4410 = vmatpush1.bf16.msra.mxu0 %v6169_v49  ;;  %4437 = vmatpush3.bf16.msra.mxu1 %v6210_v11 }
 0x174   :  { %4412 = vmatprep.subr.bf16.mxu0 %v6178_v53  ;;  %4438 = vmatprep.subr.bf16.mxu1 %v7679_v2 }
 0x177   :  { %4414 = vmatpush1.bf16.msra.mxu0 %v6189_v60  ;;  %4440 = vmatpush3.bf16.msra.mxu1 %v6222_v22 }
 0x178   :  { %4416 = vmatprep.subr.bf16.mxu0 %v6195_v0  ;;  %4441 = vmatprep.subr.bf16.mxu1 %v7679_v2 }
 0x17b   :  { %4418 = vmatpush1.bf16.msra.mxu0 %v6207_v8  ;;  %4443 = vmatpush3.bf16.msra.mxu1 %v6232_v33 }
 0x17c   :  { %4420 = vmatprep.subr.bf16.mxu0 %v6213_v12  ;;  %4444 = vmatprep.subr.bf16.mxu1 %v7679_v2 }
 0x17f   :  { %4422 = vmatpush1.bf16.msra.mxu0 %v6219_v21  ;;  %4446 = vmatpush3.bf16.msra.mxu1 %v6242_v48 }
 0x180   :  { %4448 = vmatprep.subr.bf16.mxu0 %v6226_v25  ;;  %4512 = vmatprep.subr.bf16.mxu1 %v6248_v54 }
 0x182   :  { %1004 = vmatmul.mubr.f32.vlgmr.msra.gmra.mrb[2].mxu0 %v6483_v32  ;;  %3959 = vmatmul.mubr.f32.vlgmr.msra.gmra.mrb[12].mxu1 %v6483_v32 }
 0x183   :  { %4450 = vmatpush1.bf16.msra.mxu0 %v6234_v37  ;;  %4514 = vmatpush1.bf16.msra.mxu1 %v6255_v62 }
 0x184   :  { %4452 = vmatprep.subr.bf16.mxu0 %v6238_v40  ;;  %4516 = vmatprep.subr.bf16.mxu1 %v6261_v3 }
 0x187   :  { %4454 = vmatpush1.bf16.msra.mxu0 %v6245_v51  ;;  %4518 = vmatpush1.bf16.msra.mxu1 %v6266_v13 }
 0x188   :  { %4456 = vmatprep.subr.bf16.mxu0 %v6251_v56  ;;  %4520 = vmatprep.subr.bf16.mxu1 %v6270_v15 }
 0x18b   :  { %4458 = vmatpush1.bf16.msra.mxu0 %v6258_v1  ;;  %4522 = vmatpush1.bf16.msra.mxu1 %v6274_v20 }
 0x18c   :  { %4460 = vmatprep.subr.bf16.mxu0 %v6278_v29  ;;  %4524 = vmatprep.subr.bf16.mxu1 %v6280_v36 }
 0x18f   :  { %4462 = vmatpush1.bf16.msra.mxu0 %v6282_v38  ;;  %4526 = vmatpush1.bf16.msra.mxu1 %v6285_v46 }
 0x190   :  { %4464 = vmatprep.subr.bf16.mxu0 %v6289_v57  ;;  %4528 = vmatprep.subr.bf16.mxu1 %v6291_v58 }
 0x193   :  { %4466 = vmatpush1.bf16.msra.mxu0 %v6294_v5  ;;  %4530 = vmatpush1.bf16.msra.mxu1 %v7693_v30 }
 0x194   :  { %4468 = vmatprep.subr.bf16.mxu0 %v7694_v59  ;;  %4532 = vmatprep.subr.bf16.mxu1 %v7695_v7 }
 0x197   :  { %4470 = vmatpush1.bf16.msra.mxu0 %v7696_v61  ;;  %4534 = vmatpush1.bf16.msra.mxu1 %v7697_v6  ;;  %v7743_v61 = vld [vmem:[#allocation69_spill] sm:$0xff] }
 0x198   :  { %4472 = vmatprep.subr.bf16.mxu0 %v7698_v10  ;;  %4536 = vmatprep.subr.bf16.mxu1 %v7699_v45  ;;  %v7710_v45 = vld [vmem:[#allocation41_spill] sm:$0xff]  ;;  %v773_v7 = vsub.s32 3, %v7743_v61 }
 0x19b   :  { %4474 = vmatpush1.bf16.msra.mxu0 %v7700_v24  ;;  %4538 = vmatpush1.bf16.msra.mxu1 %v7701_v43  ;;  %v7711_v24 = vld [vmem:[#allocation42_spill] sm:$0xff]  ;;  %v7712_v43 = vld [vmem:[#allocation43_spill] sm:$0xff] }
 0x19c   :  { %4476 = vmatprep.subr.bf16.mxu0 %v7702_v55  ;;  %4540 = vmatprep.subr.bf16.mxu1 %v7703_v4  ;;  %v7713_v55 = vld [vmem:[#allocation44_spill] sm:$0xff]  ;;  %v7714_v4 = vld [vmem:[#allocation45_spill] sm:$0xff] }
 0x19f   :  { %4478 = vmatpush1.bf16.msra.mxu0 %v7704_v34  ;;  %4542 = vmatpush1.bf16.msra.mxu1 %v7705_v44  ;;  %v7715_v34 = vld [vmem:[#allocation46_spill] sm:$0xff]  ;;  %v7716_v44 = vld [vmem:[#allocation47_spill] sm:$0xff] }
 0x1a0   :  { %4480 = vmatprep.subr.bf16.mxu0 %v7706_v31  ;;  %4544 = vmatprep.subr.bf16.mxu1 %v7707_v50  ;;  %v7717_v31 = vld [vmem:[#allocation48_spill] sm:$0xff]  ;;  %v7718_v50 = vld [vmem:[#allocation49_spill] sm:$0xff] }
 0x1a3   :  { %4482 = vmatpush1.bf16.msra.mxu0 %v7708_v47  ;;  %4546 = vmatpush1.bf16.msra.mxu1 %v7709_v18  ;;  %v7719_v47 = vld [vmem:[#allocation50_spill] sm:$0xff]  ;;  %v7720_v18 = vld [vmem:[#allocation51_spill] sm:$0xff] }
 0x1a4   :  { %4484 = vmatprep.subr.bf16.mxu0 %v7710_v45  ;;  %4548 = vmatprep.subr.bf16.mxu1 %v7711_v24  ;;  %v7721_v45 = vld [vmem:[#allocation52_spill] sm:$0xff]  ;;  %v7722_v24 = vld [vmem:[#allocation53_spill] sm:$0xff] }
 0x1a7   :  { %4486 = vmatpush1.bf16.msra.mxu0 %v7712_v43  ;;  %4550 = vmatpush1.bf16.msra.mxu1 %v7713_v55  ;;  %v7723_v43 = vld [vmem:[#allocation54_spill] sm:$0xff]  ;;  %v7724_v55 = vld [vmem:[#allocation55_spill] sm:$0xff] }
 0x1a8   :  { %4488 = vmatprep.subr.bf16.mxu0 %v7714_v4  ;;  %4552 = vmatprep.subr.bf16.mxu1 %v7715_v34  ;;  %v7725_v4 = vld [vmem:[#allocation56_spill] sm:$0xff]  ;;  %v7726_v34 = vld [vmem:[#allocation57_spill] sm:$0xff] }
 0x1ab   :  { %4490 = vmatpush1.bf16.msra.mxu0 %v7716_v44  ;;  %4554 = vmatpush1.bf16.msra.mxu1 %v7717_v31  ;;  %v7727_v44 = vld [vmem:[#allocation58_spill] sm:$0xff]  ;;  %v7728_v31 = vld [vmem:[#allocation59_spill] sm:$0xff] }
 0x1ac   :  { %4492 = vmatprep.subr.bf16.mxu0 %v7718_v50  ;;  %4556 = vmatprep.subr.bf16.mxu1 %v7719_v47  ;;  %v7729_v50 = vld [vmem:[#allocation60_spill] sm:$0xff]  ;;  %v7730_v47 = vld [vmem:[#allocation61_spill] sm:$0xff] }
 0x1af   :  { %4494 = vmatpush1.bf16.msra.mxu0 %v7720_v18  ;;  %4558 = vmatpush1.bf16.msra.mxu1 %v7721_v45  ;;  %v7731_v18 = vld [vmem:[#allocation62_spill] sm:$0xff]  ;;  %v7732_v45 = vld [vmem:[#allocation63_spill] sm:$0xff] }
 0x1b0   :  { %4496 = vmatprep.subr.bf16.mxu0 %v7722_v24  ;;  %4560 = vmatprep.subr.bf16.mxu1 %v7723_v43  ;;  %v7733_v24 = vld [vmem:[#allocation64_spill] sm:$0xff]  ;;  %v7734_v43 = vld [vmem:[#allocation65_spill] sm:$0xff] }
 0x1b3   :  { %4498 = vmatpush1.bf16.msra.mxu0 %v7724_v55  ;;  %4562 = vmatpush1.bf16.msra.mxu1 %v7725_v4  ;;  %v7735_v55 = vld [vmem:[#allocation66_spill] sm:$0xff]  ;;  %v7736_v4 = vld [vmem:[#allocation67_spill] sm:$0xff] }
 0x1b4   :  { %4500 = vmatprep.subr.bf16.mxu0 %v7726_v34  ;;  %4564 = vmatprep.subr.bf16.mxu1 %v7727_v44  ;;  %v7737_v34 = vld [vmem:[#allocation68_spill] sm:$0xff] }
 0x1b5   :  { %v7738_v44 = vld [vmem:[#allocation16_spill] sm:$0xff] }
 0x1b7   :  { %4502 = vmatpush1.bf16.msra.mxu0 %v7728_v31  ;;  %4566 = vmatpush1.bf16.msra.mxu1 %v7729_v50 }
 0x1b8   :  { %4504 = vmatprep.subr.bf16.mxu0 %v7730_v47  ;;  %4568 = vmatprep.subr.bf16.mxu1 %v7731_v18  ;;  %v757_v18 = vld [vmem:[%s7493_s6] sm:$0xf]  ;;  %s5987_s6 = smov 16  }
 0x1b9   :  { %v7739_v47 = vld [vmem:[#allocation76_spill] sm:$0xff]  ;;  %v6600_v59 = vrot.slane %v757_v18, %v773_v7  ;;  %v6603_v5 = vrot.slane %v757_v18, %v6440_v27 }
 0x1bb   :  { %4506 = vmatpush1.bf16.msra.mxu0 %v7732_v45  ;;  %4570 = vmatpush1.bf16.msra.mxu1 %v7733_v24  ;;  %v6592_v45 = vrot.slane %v757_v18, %v7739_v47  ;;  %7744 = vst [vmem:[#allocation81_spill] sm:$0xff] %v6600_v59 }
 0x1bc   :  { %4508 = vmatprep.subr.bf16.mxu0 %v7734_v43  ;;  %4572 = vmatprep.subr.bf16.mxu1 %v7735_v55  ;;  %v7741_v43 = vld [vmem:[#allocation78_spill] sm:$0xff] }
 0x1bd   :  { %7740 = vst [vmem:[#allocation76_spill] sm:$0xff] %v6592_v45  ;;  %v6595_v31 = vrot.slane %v757_v18, %v7741_v43 }
 0x1bf   :  { %4510 = vmatpush1.bf16.msra.mxu0 %v7736_v4  ;;  %4574 = vmatpush1.bf16.msra.mxu1 %v7737_v34  ;;  %7742 = vst [vmem:[#allocation78_spill] sm:$0xff] %v6595_v31 }
 0x1c0   :  { %4576 = vmatprep.subr.bf16.mxu0 %v7738_v44  ;;  %4607 = vmatprep.subr.bf16.mxu1 %v7679_v2 }
 0x235   :  { %v845_v24 = vpop.f32.mrb[16].mxu0  ;;  %v916_v50 = vpop.f32.mrb[10].mxu1 }
 0x236   :  { %v846_v4 = vadd.f32 %v845_v24, %v6592_v45  ;;  %v847_v55 = vpop.f32.mrb[17].mxu0  ;;  %v918_v34 = vpop.f32.mrb[11].mxu1  ;;  %v917_v45 = vadd.f32 %v916_v50, %v6603_v5 }
 0x237   :  { %v848_v44 = vadd.f32 %v847_v55, %v6595_v31  ;;  %v919_v43 = vadd.f32 %v918_v34, %v6600_v59  ;;  %v7745_v31 = vld [vmem:[#allocation79_spill] sm:$0xff] }
 0x238   :  { %v921_v10 = vmul.f32 0.5, %v846_v4 }
 0x239   :  { %v925_v6 = vmul.f32 0.5, %v848_v44 }
 0x23a   :  { %5781 = vtanh.f32 %v921_v10 }
 0x23b   :  { %5783 = vtanh.f32 %v925_v6 }
 0x244   :  { %v5782_v47 = vpop.eup %5781 }
 0x245   :  { %v923_v30 = vmul.f32 0.5, %v5782_v47  ;;  %v5784_v58 = vpop.eup %5783 }
 0x246   :  { %v927_v10 = vmul.f32 0.5, %v5784_v58 }
 0x247   :  { %v924_v24 = vadd.f32 0.5, %v923_v30  ;;  %v7746_v30 = vld [vmem:[#allocation80_spill] sm:$0xff] }
 0x248   :  { %v928_v44 = vadd.f32 0.5, %v927_v10 }
 0x249   :  { %v929_v4 = vmul.f32 %v924_v24, %v919_v43 }
 0x24a   :  { %v932_v7 = vsub.f32 1.0, %v928_v44  ;;  %v934_v34 = vmul.f32 0.0, %v928_v44 }
 0x24b   :  { %v930_v55 = vadd.f32 %v929_v4, %v917_v45  ;;  %v7747_v4 = vld [vmem:[#allocation70_spill] sm:$0xff] }
 0x24d   :  { %5785 = vtanh.f32 %v930_v55 }
 0x255   :  { %v1005_v61 = vpop.f32.mrb[2].mxu0  ;;  %v1076_v6 = vpop.f32.mrb[12].mxu1 }
 0x256   :  { %v5704_v57 = vadd.f32 %v7745_v31, %v1005_v61  ;;  %v1007_v47 = vpop.f32.mrb[3].mxu0  ;;  %v3960_v46 = vpop.f32.mrb[13].mxu1  ;;  %v1077_v61 = vadd.f32 %v1076_v6, %v6480_v16  ;;  %v7750_v6 = vld [vmem:[#allocation21_spill] sm:$0xff] }
 0x257   :  { %v5786_v27 = vpop.eup %5785  ;;  %v5706_v59 = vadd.f32 %v7746_v30, %v1007_v47 }
 0x258   :  { %v1081_v18 = vmul.f32 0.5, %v5704_v57  ;;  %v933_v38 = vmul.f32 %v5786_v27, %v932_v7 }
 0x259   :  { %v1086_v58 = vmul.f32 0.5, %v5706_v59  ;;  %v7749_v59 = vld [vmem:[#allocation20_spill] sm:$0xff] }
 0x25a   :  { %5787 = vtanh.f32 %v1081_v18  ;;  %v6609_v50 = vadd.f32 %v934_v34, %v933_v38  ;;  %v7751_v34 = vld [vmem:[#allocation22_spill] sm:$0xff] }
 0x25b   :  { %5789 = vtanh.f32 %v1086_v58  ;;  %v7752_v58 = vld [vmem:[#allocation23_spill] sm:$0xff] }
 0x25c   :  { %1161 = vmatprep.mubr.f32.mxu0 %v6609_v50  ;;  %1232 = vmatprep.mubr.f32.mxu1 %v6609_v50 }
 0x264   :  { %v5788_v45 = vpop.eup %5787 }
 0x265   :  { %v1083_v43 = vmul.f32 0.5, %v5788_v45  ;;  %v5790_v57 = vpop.eup %5789  ;;  %v7753_v45 = vld [vmem:[#allocation24_spill] sm:$0xff] }
 0x266   :  { %v1088_v10 = vmul.f32 0.5, %v5790_v57  ;;  %v7758_v57 = vld [vmem:[#allocation29_spill] sm:$0xff] }
 0x267   :  { %v1084_v46 = vadd.f32 0.5, %v1083_v43  ;;  %v7754_v43 = vld [vmem:[#allocation25_spill] sm:$0xff] }
 0x268   :  { %v1089_v44 = vadd.f32 0.5, %v1088_v10  ;;  %v7761_v10 = vld [vmem:[#allocation32_spill] sm:$0xff] }
 0x269   :  { %v1090_v24 = vmul.f32 %v1084_v46, %v1077_v61  ;;  %v7755_v61 = vld [vmem:[#allocation26_spill] sm:$0xff]  ;;  %v7756_v46 = vld [vmem:[#allocation27_spill] sm:$0xff] }
 0x26a   :  { %v1093_v38 = vsub.f32 1.0, %v1089_v44  ;;  %v1095_v27 = vmul.f32 %v1089_v44, %v6483_v32  ;;  %v7748_v32 = vld [vmem:[#allocation19_spill] sm:$0xff]  ;;  %v7762_v44 = vld [vmem:[#allocation33_spill] sm:$0xff] }
 0x26b   :  { %v1091_v55 = vadd.f32 %v1090_v24, %v7747_v4  ;;  %v7757_v24 = vld [vmem:[#allocation28_spill] sm:$0xff]  ;;  %v7759_v4 = vld [vmem:[#allocation30_spill] sm:$0xff] }
 0x26d   :  { %5791 = vtanh.f32 %v1091_v55  ;;  %v7760_v55 = vld [vmem:[#allocation31_spill] sm:$0xff] }
 0x277   :  { %v5792_v7 = vpop.eup %5791 }
 0x278   :  { %v1094_v47 = vmul.f32 %v5792_v7, %v1093_v38  ;;  %v7763_v38 = vld [vmem:[#allocation34_spill] sm:$0xff]  ;;  %v7764_v7 = vld [vmem:[#allocation35_spill] sm:$0xff] }
 0x27a   :  { %v6616_v18 = vadd.f32 %v1095_v27, %v1094_v47  ;;  %v7765_v47 = vld [vmem:[#allocation36_spill] sm:$0xff]  ;;  %v7766_v27 = vld [vmem:[#allocation37_spill] sm:$0xff] }
 0x27c   :  { %1162 = vmatmul.mubr.f32.vlgmr.msra.gmra.mrb[18].mxu0 %v6616_v18  ;;  %1233 = vmatmul.mubr.f32.vlgmr.msra.gmra.mrb[14].mxu1 %v6616_v18 }
 0x27d   :  { %4578 = vmatpush1.bf16.msra.mxu0 %v6110_v9  ;;  %4609 = vmatpush3.bf16.msra.mxu1 %v6144_v35 }
 0x27e   :  { %4580 = vmatprep.subr.bf16.mxu0 %v6117_v14  ;;  %4610 = vmatprep.subr.bf16.mxu1 %v7679_v2 }
 0x27f   :  { %1321 = vmatprep.mubr.f32.mxu0 %v7692_v23  ;;  %3993 = vmatprep.mubr.msk.f32.mxu1 %vm5979_vm2, %v7692_v23 }
 0x281   :  { %4582 = vmatpush1.bf16.msra.mxu0 %v6120_v17  ;;  %4612 = vmatpush3.bf16.msra.mxu1 %v6155_v41 }
 0x282   :  { %4584 = vmatprep.subr.bf16.mxu0 %v6123_v19  ;;  %4613 = vmatprep.subr.bf16.mxu1 %v7679_v2 }
 0x285   :  { %4586 = vmatpush1.bf16.msra.mxu0 %v6135_v26  ;;  %4615 = vmatpush3.bf16.msra.mxu1 %v6175_v52 }
 0x286   :  { %4588 = vmatprep.subr.bf16.mxu0 %v6139_v28  ;;  %4616 = vmatprep.subr.bf16.mxu1 %v7679_v2 }
 0x289   :  { %4590 = vmatpush1.bf16.msra.mxu0 %v6152_v39  ;;  %4618 = vmatpush3.bf16.msra.mxu1 %v6192_v63 }
 0x28a   :  { %4592 = vmatprep.subr.bf16.mxu0 %v6158_v42  ;;  %4619 = vmatprep.subr.bf16.mxu1 %v7679_v2 }
 0x28d   :  { %4594 = vmatpush1.bf16.msra.mxu0 %v6169_v49  ;;  %4621 = vmatpush3.bf16.msra.mxu1 %v6210_v11 }
 0x28e   :  { %4596 = vmatprep.subr.bf16.mxu0 %v6178_v53  ;;  %4622 = vmatprep.subr.bf16.mxu1 %v7679_v2 }
 0x291   :  { %4598 = vmatpush1.bf16.msra.mxu0 %v6189_v60  ;;  %4624 = vmatpush3.bf16.msra.mxu1 %v6222_v22 }
 0x292   :  { %4600 = vmatprep.subr.bf16.mxu0 %v6195_v0  ;;  %4625 = vmatprep.subr.bf16.mxu1 %v7679_v2 }
 0x295   :  { %4602 = vmatpush1.bf16.msra.mxu0 %v6207_v8  ;;  %4627 = vmatpush3.bf16.msra.mxu1 %v6232_v33 }
 0x296   :  { %4604 = vmatprep.subr.bf16.mxu0 %v6213_v12  ;;  %4628 = vmatprep.subr.bf16.mxu1 %v7679_v2 }
 0x299   :  { %4606 = vmatpush1.bf16.msra.mxu0 %v6219_v21  ;;  %4630 = vmatpush3.bf16.msra.mxu1 %v6242_v48 }
 0x29a   :  { %4632 = vmatprep.subr.bf16.mxu0 %v6226_v25  ;;  %4696 = vmatprep.subr.bf16.mxu1 %v6248_v54 }
 0x29c   :  { %1322 = vmatmul.mubr.f32.vlgmr.msra.gmra.mrb[4].mxu0 %v6616_v18  ;;  %3994 = vmatmul.mubr.f32.vlgmr.msra.gmra.mrb[16].mxu1 %v6616_v18 }
 0x29d   :  { %4634 = vmatpush1.bf16.msra.mxu0 %v6234_v37  ;;  %4698 = vmatpush1.bf16.msra.mxu1 %v6255_v62 }
 0x29e   :  { %4636 = vmatprep.subr.bf16.mxu0 %v6238_v40  ;;  %4700 = vmatprep.subr.bf16.mxu1 %v6261_v3 }
 0x2a1   :  { %4638 = vmatpush1.bf16.msra.mxu0 %v6245_v51  ;;  %4702 = vmatpush1.bf16.msra.mxu1 %v6266_v13 }
 0x2a2   :  { %4640 = vmatprep.subr.bf16.mxu0 %v6251_v56  ;;  %4704 = vmatprep.subr.bf16.mxu1 %v6270_v15 }
 0x2a5   :  { %4642 = vmatpush1.bf16.msra.mxu0 %v6258_v1  ;;  %4706 = vmatpush1.bf16.msra.mxu1 %v6274_v20 }
 0x2a6   :  { %4644 = vmatprep.subr.bf16.mxu0 %v6278_v29  ;;  %4708 = vmatprep.subr.bf16.mxu1 %v6280_v36 }
 0x2a9   :  { %4646 = vmatpush1.bf16.msra.mxu0 %v7748_v32  ;;  %4710 = vmatpush1.bf16.msra.mxu1 %v7749_v59 }
 0x2aa   :  { %4648 = vmatprep.subr.bf16.mxu0 %v7750_v6  ;;  %4712 = vmatprep.subr.bf16.mxu1 %v7751_v34 }
 0x2ad   :  { %4650 = vmatpush1.bf16.msra.mxu0 %v7752_v58  ;;  %4714 = vmatpush1.bf16.msra.mxu1 %v7753_v45  ;;  %v7801_v58 = vld [vmem:[#allocation81_spill] sm:$0xff] }
 0x2ae   :  { %4652 = vmatprep.subr.bf16.mxu0 %v7754_v43  ;;  %4716 = vmatprep.subr.bf16.mxu1 %v7755_v61 }
 0x2b1   :  { %4654 = vmatpush1.bf16.msra.mxu0 %v7756_v46  ;;  %4718 = vmatpush1.bf16.msra.mxu1 %v7757_v24  ;;  %v7767_v46 = vld [vmem:[#allocation38_spill] sm:$0xff]  ;;  %v7768_v24 = vld [vmem:[#allocation39_spill] sm:$0xff] }
 0x2b2   :  { %4656 = vmatprep.subr.bf16.mxu0 %v7758_v57  ;;  %4720 = vmatprep.subr.bf16.mxu1 %v7759_v4  ;;  %v7769_v57 = vld [vmem:[#allocation40_spill] sm:$0xff]  ;;  %v7770_v4 = vld [vmem:[#allocation41_spill] sm:$0xff] }
 0x2b5   :  { %4658 = vmatpush1.bf16.msra.mxu0 %v7760_v55  ;;  %4722 = vmatpush1.bf16.msra.mxu1 %v7761_v10  ;;  %v7771_v55 = vld [vmem:[#allocation42_spill] sm:$0xff]  ;;  %v7772_v10 = vld [vmem:[#allocation43_spill] sm:$0xff] }
 0x2b6   :  { %4660 = vmatprep.subr.bf16.mxu0 %v7762_v44  ;;  %4724 = vmatprep.subr.bf16.mxu1 %v7763_v38  ;;  %v7773_v44 = vld [vmem:[#allocation44_spill] sm:$0xff]  ;;  %v7774_v38 = vld [vmem:[#allocation45_spill] sm:$0xff] }
 0x2b9   :  { %4662 = vmatpush1.bf16.msra.mxu0 %v7764_v7  ;;  %4726 = vmatpush1.bf16.msra.mxu1 %v7765_v47  ;;  %v7775_v7 = vld [vmem:[#allocation46_spill] sm:$0xff]  ;;  %v7776_v47 = vld [vmem:[#allocation47_spill] sm:$0xff] }
 0x2ba   :  { %4664 = vmatprep.subr.bf16.mxu0 %v7766_v27  ;;  %4728 = vmatprep.subr.bf16.mxu1 %v7767_v46  ;;  %v7777_v27 = vld [vmem:[#allocation48_spill] sm:$0xff]  ;;  %v7778_v46 = vld [vmem:[#allocation49_spill] sm:$0xff] }
 0x2bd   :  { %4666 = vmatpush1.bf16.msra.mxu0 %v7768_v24  ;;  %4730 = vmatpush1.bf16.msra.mxu1 %v7769_v57  ;;  %v7779_v24 = vld [vmem:[#allocation50_spill] sm:$0xff]  ;;  %v7780_v57 = vld [vmem:[#allocation51_spill] sm:$0xff] }
 0x2be   :  { %4668 = vmatprep.subr.bf16.mxu0 %v7770_v4  ;;  %4732 = vmatprep.subr.bf16.mxu1 %v7771_v55  ;;  %v7781_v4 = vld [vmem:[#allocation52_spill] sm:$0xff]  ;;  %v7782_v55 = vld [vmem:[#allocation53_spill] sm:$0xff] }
 0x2c1   :  { %4670 = vmatpush1.bf16.msra.mxu0 %v7772_v10  ;;  %4734 = vmatpush1.bf16.msra.mxu1 %v7773_v44  ;;  %v7783_v10 = vld [vmem:[#allocation54_spill] sm:$0xff]  ;;  %v7784_v44 = vld [vmem:[#allocation55_spill] sm:$0xff] }
 0x2c2   :  { %4672 = vmatprep.subr.bf16.mxu0 %v7774_v38  ;;  %4736 = vmatprep.subr.bf16.mxu1 %v7775_v7  ;;  %v7785_v38 = vld [vmem:[#allocation56_spill] sm:$0xff]  ;;  %v7786_v7 = vld [vmem:[#allocation57_spill] sm:$0xff] }
 0x2c5   :  { %4674 = vmatpush1.bf16.msra.mxu0 %v7776_v47  ;;  %4738 = vmatpush1.bf16.msra.mxu1 %v7777_v27  ;;  %v7787_v47 = vld [vmem:[#allocation58_spill] sm:$0xff]  ;;  %v7788_v27 = vld [vmem:[#allocation59_spill] sm:$0xff] }
 0x2c6   :  { %4676 = vmatprep.subr.bf16.mxu0 %v7778_v46  ;;  %4740 = vmatprep.subr.bf16.mxu1 %v7779_v24  ;;  %v7789_v46 = vld [vmem:[#allocation60_spill] sm:$0xff]  ;;  %v7790_v24 = vld [vmem:[#allocation61_spill] sm:$0xff] }
 0x2c9   :  { %4678 = vmatpush1.bf16.msra.mxu0 %v7780_v57  ;;  %4742 = vmatpush1.bf16.msra.mxu1 %v7781_v4  ;;  %v7791_v57 = vld [vmem:[#allocation62_spill] sm:$0xff]  ;;  %v7792_v4 = vld [vmem:[#allocation63_spill] sm:$0xff] }
 0x2ca   :  { %4680 = vmatprep.subr.bf16.mxu0 %v7782_v55  ;;  %4744 = vmatprep.subr.bf16.mxu1 %v7783_v10  ;;  %v7793_v55 = vld [vmem:[#allocation64_spill] sm:$0xff]  ;;  %v7794_v10 = vld [vmem:[#allocation65_spill] sm:$0xff] }
 0x2cd   :  { %4682 = vmatpush1.bf16.msra.mxu0 %v7784_v44  ;;  %4746 = vmatpush1.bf16.msra.mxu1 %v7785_v38  ;;  %v7795_v44 = vld [vmem:[#allocation66_spill] sm:$0xff]  ;;  %v7796_v38 = vld [vmem:[#allocation67_spill] sm:$0xff] }
 0x2ce   :  { %4684 = vmatprep.subr.bf16.mxu0 %v7786_v7  ;;  %4748 = vmatprep.subr.bf16.mxu1 %v7787_v47  ;;  %v7797_v7 = vld [vmem:[#allocation68_spill] sm:$0xff] }
 0x2cf   :  { %v7798_v47 = vld [vmem:[#allocation16_spill] sm:$0xff] }
 0x2d1   :  { %4686 = vmatpush1.bf16.msra.mxu0 %v7788_v27  ;;  %4750 = vmatpush1.bf16.msra.mxu1 %v7789_v46  ;;  %v7799_v27 = vld [vmem:[#allocation76_spill] sm:$0xff] }
 0x2d2   :  { %4688 = vmatprep.subr.bf16.mxu0 %v7790_v24  ;;  %4752 = vmatprep.subr.bf16.mxu1 %v7791_v57 }
 0x2d5   :  { %4690 = vmatpush1.bf16.msra.mxu0 %v7792_v4  ;;  %4754 = vmatpush1.bf16.msra.mxu1 %v7793_v55  ;;  %v7800_v55 = vld [vmem:[#allocation78_spill] sm:$0xff] }
 0x2d6   :  { %4692 = vmatprep.subr.bf16.mxu0 %v7794_v10  ;;  %4756 = vmatprep.subr.bf16.mxu1 %v7795_v44 }
 0x2d9   :  { %4694 = vmatpush1.bf16.msra.mxu0 %v7796_v38  ;;  %4758 = vmatpush1.bf16.msra.mxu1 %v7797_v7 }
 0x2da   :  { %4760 = vmatprep.subr.bf16.mxu0 %v7798_v47  ;;  %4791 = vmatprep.subr.bf16.mxu1 %v7679_v2 }
 0x34f   :  { %v1163_v46 = vpop.f32.mrb[18].mxu0  ;;  %v1234_v24 = vpop.f32.mrb[14].mxu1 }
 0x350   :  { %v1164_v57 = vadd.f32 %v1163_v46, %v7799_v27  ;;  %v1165_v61 = vpop.f32.mrb[19].mxu0  ;;  %v1236_v4 = vpop.f32.mrb[15].mxu1  ;;  %v1235_v47 = vadd.f32 %v1234_v24, %v6603_v5 }
 0x351   :  { %v1166_v45 = vadd.f32 %v1165_v61, %v7800_v55  ;;  %v1237_v7 = vadd.f32 %v1236_v4, %v7801_v58 }
 0x352   :  { %v1239_v43 = vmul.f32 0.5, %v1164_v57 }
 0x353   :  { %v1243_v10 = vmul.f32 0.5, %v1166_v45 }
 0x354   :  { %5793 = vtanh.f32 %v1239_v43 }
 0x355   :  { %5795 = vtanh.f32 %v1243_v10 }
 0x35e   :  { %v5794_v44 = vpop.eup %5793 }
 0x35f   :  { %v1241_v38 = vmul.f32 0.5, %v5794_v44  ;;  %v5796_v59 = vpop.eup %5795 }
 0x360   :  { %v1245_v46 = vmul.f32 0.5, %v5796_v59 }
 0x361   :  { %v1242_v34 = vadd.f32 0.5, %v1241_v38 }
 0x362   :  { %v1246_v27 = vadd.f32 0.5, %v1245_v46 }
 0x363   :  { %v1247_v6 = vmul.f32 %v1242_v34, %v1237_v7 }
 0x364   :  { %v1250_v29 = vsub.f32 1.0, %v1246_v27  ;;  %v1252_v4 = vmul.f32 %v1246_v27, %v6609_v50 }
 0x365   :  { %v1248_v32 = vadd.f32 %v1247_v6, %v1235_v47  ;;  %v7802_v47 = vld [vmem:[#allocation72_spill] sm:$0xff] }
 0x367   :  { %5797 = vtanh.f32 %v1248_v32 }
 0x36f   :  { %v1323_v36 = vpop.f32.mrb[4].mxu0  ;;  %v1394_v57 = vpop.f32.mrb[16].mxu1 }
 0x370   :  { %v5708_v43 = vadd.f32 %v7745_v31, %v1323_v36  ;;  %v1325_v45 = vpop.f32.mrb[5].mxu0  ;;  %v3995_v61 = vpop.f32.mrb[17].mxu1  ;;  %v1395_v6 = vadd.f32 %v1394_v57, %v6480_v16  ;;  %v7804_v57 = vld [vmem:[#allocation18_spill] sm:$0xff] }
 0x371   :  { %v5798_v10 = vpop.eup %5797  ;;  %v5710_v24 = vadd.f32 %v7746_v30, %v1325_v45 }
 0x372   :  { %v1399_v44 = vmul.f32 0.5, %v5708_v43  ;;  %v1251_v55 = vmul.f32 %v5798_v10, %v1250_v29 }
 0x373   :  { %v1404_v32 = vmul.f32 0.5, %v5710_v24  ;;  %v7807_v24 = vld [vmem:[#allocation21_spill] sm:$0xff] }
 0x374   :  { %5799 = vtanh.f32 %v1399_v44  ;;  %v6728_v34 = vadd.f32 %v1252_v4, %v1251_v55  ;;  %v7805_v44 = vld [vmem:[#allocation19_spill] sm:$0xff]  ;;  %v7806_v4 = vld [vmem:[#allocation20_spill] sm:$0xff] }
 0x375   :  { %5801 = vtanh.f32 %v1404_v32  ;;  %v7808_v32 = vld [vmem:[#allocation22_spill] sm:$0xff] }
 0x376   :  { %1479 = vmatprep.mubr.f32.mxu0 %v6728_v34  ;;  %1550 = vmatprep.mubr.f32.mxu1 %v6728_v34 }
 0x37e   :  { %v5800_v59 = vpop.eup %5799 }
 0x37f   :  { %v1401_v36 = vmul.f32 0.5, %v5800_v59  ;;  %v5802_v29 = vpop.eup %5801  ;;  %v7809_v59 = vld [vmem:[#allocation23_spill] sm:$0xff] }
 0x380   :  { %v1406_v27 = vmul.f32 0.5, %v5802_v29  ;;  %v7814_v29 = vld [vmem:[#allocation28_spill] sm:$0xff] }
 0x381   :  { %v1402_v38 = vadd.f32 0.5, %v1401_v36  ;;  %v7810_v36 = vld [vmem:[#allocation24_spill] sm:$0xff] }
 0x382   :  { %v1407_v46 = vadd.f32 0.5, %v1406_v27  ;;  %v7817_v27 = vld [vmem:[#allocation31_spill] sm:$0xff] }
 0x383   :  { %v1408_v7 = vmul.f32 %v1402_v38, %v1395_v6  ;;  %v7811_v6 = vld [vmem:[#allocation25_spill] sm:$0xff]  ;;  %v7812_v38 = vld [vmem:[#allocation26_spill] sm:$0xff] }
 0x384   :  { %v1411_v55 = vsub.f32 1.0, %v1407_v46  ;;  %v1413_v61 = vmul.f32 %v1407_v46, %v6616_v18  ;;  %v7803_v18 = vld [vmem:[#allocation17_spill] sm:$0xff]  ;;  %v7818_v46 = vld [vmem:[#allocation32_spill] sm:$0xff] }
 0x385   :  { %v1409_v50 = vadd.f32 %v1408_v7, %v7802_v47  ;;  %v7813_v7 = vld [vmem:[#allocation27_spill] sm:$0xff]  ;;  %v7815_v47 = vld [vmem:[#allocation29_spill] sm:$0xff] }
 0x387   :  { %5803 = vtanh.f32 %v1409_v50  ;;  %v7816_v50 = vld [vmem:[#allocation30_spill] sm:$0xff] }
 0x391   :  { %v5804_v43 = vpop.eup %5803 }
 0x392   :  { %v1412_v45 = vmul.f32 %v5804_v43, %v1411_v55  ;;  %v7819_v55 = vld [vmem:[#allocation33_spill] sm:$0xff]  ;;  %v7820_v43 = vld [vmem:[#allocation34_spill] sm:$0xff] }
 0x394   :  { %v6735_v10 = vadd.f32 %v1413_v61, %v1412_v45  ;;  %v7821_v45 = vld [vmem:[#allocation35_spill] sm:$0xff]  ;;  %v7822_v61 = vld [vmem:[#allocation36_spill] sm:$0xff] }
 0x396   :  { %1480 = vmatmul.mubr.f32.vlgmr.msra.gmra.mrb[20].mxu0 %v6735_v10  ;;  %1551 = vmatmul.mubr.f32.vlgmr.msra.gmra.mrb[18].mxu1 %v6735_v10 }
 0x397   :  { %4762 = vmatpush1.bf16.msra.mxu0 %v6110_v9  ;;  %4793 = vmatpush3.bf16.msra.mxu1 %v6144_v35 }
 0x398   :  { %4764 = vmatprep.subr.bf16.mxu0 %v6117_v14  ;;  %4794 = vmatprep.subr.bf16.mxu1 %v7679_v2 }
 0x399   :  { %1639 = vmatprep.mubr.f32.mxu0 %v7692_v23  ;;  %4028 = vmatprep.mubr.msk.f32.mxu1 %vm5979_vm2, %v7692_v23 }
 0x39b   :  { %4766 = vmatpush1.bf16.msra.mxu0 %v6120_v17  ;;  %4796 = vmatpush3.bf16.msra.mxu1 %v6155_v41 }
 0x39c   :  { %4768 = vmatprep.subr.bf16.mxu0 %v6123_v19  ;;  %4797 = vmatprep.subr.bf16.mxu1 %v7679_v2 }
 0x39f   :  { %4770 = vmatpush1.bf16.msra.mxu0 %v6135_v26  ;;  %4799 = vmatpush3.bf16.msra.mxu1 %v6175_v52 }
 0x3a0   :  { %4772 = vmatprep.subr.bf16.mxu0 %v6139_v28  ;;  %4800 = vmatprep.subr.bf16.mxu1 %v7679_v2 }
 0x3a3   :  { %4774 = vmatpush1.bf16.msra.mxu0 %v6152_v39  ;;  %4802 = vmatpush3.bf16.msra.mxu1 %v6192_v63 }
 0x3a4   :  { %4776 = vmatprep.subr.bf16.mxu0 %v6158_v42  ;;  %4803 = vmatprep.subr.bf16.mxu1 %v7679_v2 }
 0x3a7   :  { %4778 = vmatpush1.bf16.msra.mxu0 %v6169_v49  ;;  %4805 = vmatpush3.bf16.msra.mxu1 %v6210_v11 }
 0x3a8   :  { %4780 = vmatprep.subr.bf16.mxu0 %v6178_v53  ;;  %4806 = vmatprep.subr.bf16.mxu1 %v7679_v2 }
 0x3ab   :  { %4782 = vmatpush1.bf16.msra.mxu0 %v6189_v60  ;;  %4808 = vmatpush3.bf16.msra.mxu1 %v6222_v22 }
 0x3ac   :  { %4784 = vmatprep.subr.bf16.mxu0 %v6195_v0  ;;  %4809 = vmatprep.subr.bf16.mxu1 %v7679_v2 }
 0x3af   :  { %4786 = vmatpush1.bf16.msra.mxu0 %v6207_v8  ;;  %4811 = vmatpush3.bf16.msra.mxu1 %v6232_v33 }
 0x3b0   :  { %4788 = vmatprep.subr.bf16.mxu0 %v6213_v12  ;;  %4812 = vmatprep.subr.bf16.mxu1 %v7679_v2 }
 0x3b3   :  { %4790 = vmatpush1.bf16.msra.mxu0 %v6219_v21  ;;  %4814 = vmatpush3.bf16.msra.mxu1 %v6242_v48 }
 0x3b4   :  { %4816 = vmatprep.subr.bf16.mxu0 %v6226_v25  ;;  %4880 = vmatprep.subr.bf16.mxu1 %v6248_v54 }
 0x3b6   :  { %1640 = vmatmul.mubr.f32.vlgmr.msra.gmra.mrb[6].mxu0 %v6735_v10  ;;  %4029 = vmatmul.mubr.f32.vlgmr.msra.gmra.mrb[20].mxu1 %v6735_v10 }
 0x3b7   :  { %4818 = vmatpush1.bf16.msra.mxu0 %v6234_v37  ;;  %4882 = vmatpush1.bf16.msra.mxu1 %v6255_v62 }
 0x3b8   :  { %4820 = vmatprep.subr.bf16.mxu0 %v6238_v40  ;;  %4884 = vmatprep.subr.bf16.mxu1 %v6261_v3 }
 0x3bb   :  { %4822 = vmatpush1.bf16.msra.mxu0 %v6245_v51  ;;  %4886 = vmatpush1.bf16.msra.mxu1 %v6266_v13 }
 0x3bc   :  { %4824 = vmatprep.subr.bf16.mxu0 %v6251_v56  ;;  %4888 = vmatprep.subr.bf16.mxu1 %v6270_v15 }
 0x3bf   :  { %4826 = vmatpush1.bf16.msra.mxu0 %v6258_v1  ;;  %4890 = vmatpush1.bf16.msra.mxu1 %v6274_v20 }
 0x3c0   :  { %4828 = vmatprep.subr.bf16.mxu0 %v7803_v18  ;;  %4892 = vmatprep.subr.bf16.mxu1 %v7804_v57 }
 0x3c3   :  { %4830 = vmatpush1.bf16.msra.mxu0 %v7805_v44  ;;  %4894 = vmatpush1.bf16.msra.mxu1 %v7806_v4 }
 0x3c4   :  { %4832 = vmatprep.subr.bf16.mxu0 %v7807_v24  ;;  %4896 = vmatprep.subr.bf16.mxu1 %v7808_v32 }
 0x3c7   :  { %4834 = vmatpush1.bf16.msra.mxu0 %v7809_v59  ;;  %4898 = vmatpush1.bf16.msra.mxu1 %v7810_v36 }
 0x3c8   :  { %4836 = vmatprep.subr.bf16.mxu0 %v7811_v6  ;;  %4900 = vmatprep.subr.bf16.mxu1 %v7812_v38  ;;  %v7823_v38 = vld [vmem:[#allocation37_spill] sm:$0xff] }
 0x3cb   :  { %4838 = vmatpush1.bf16.msra.mxu0 %v7813_v7  ;;  %4902 = vmatpush1.bf16.msra.mxu1 %v7814_v29  ;;  %v7824_v7 = vld [vmem:[#allocation38_spill] sm:$0xff]  ;;  %v7825_v29 = vld [vmem:[#allocation39_spill] sm:$0xff] }
 0x3cc   :  { %4840 = vmatprep.subr.bf16.mxu0 %v7815_v47  ;;  %4904 = vmatprep.subr.bf16.mxu1 %v7816_v50  ;;  %v7826_v47 = vld [vmem:[#allocation40_spill] sm:$0xff]  ;;  %v7827_v50 = vld [vmem:[#allocation41_spill] sm:$0xff] }
 0x3cf   :  { %4842 = vmatpush1.bf16.msra.mxu0 %v7817_v27  ;;  %4906 = vmatpush1.bf16.msra.mxu1 %v7818_v46  ;;  %v7828_v27 = vld [vmem:[#allocation42_spill] sm:$0xff]  ;;  %v7829_v46 = vld [vmem:[#allocation43_spill] sm:$0xff] }
 0x3d0   :  { %4844 = vmatprep.subr.bf16.mxu0 %v7819_v55  ;;  %4908 = vmatprep.subr.bf16.mxu1 %v7820_v43  ;;  %v7830_v55 = vld [vmem:[#allocation44_spill] sm:$0xff]  ;;  %v7831_v43 = vld [vmem:[#allocation45_spill] sm:$0xff] }
 0x3d3   :  { %4846 = vmatpush1.bf16.msra.mxu0 %v7821_v45  ;;  %4910 = vmatpush1.bf16.msra.mxu1 %v7822_v61  ;;  %v7832_v45 = vld [vmem:[#allocation46_spill] sm:$0xff]  ;;  %v7833_v61 = vld [vmem:[#allocation47_spill] sm:$0xff] }
 0x3d4   :  { %4848 = vmatprep.subr.bf16.mxu0 %v7823_v38  ;;  %4912 = vmatprep.subr.bf16.mxu1 %v7824_v7  ;;  %v7834_v38 = vld [vmem:[#allocation48_spill] sm:$0xff]  ;;  %v7835_v7 = vld [vmem:[#allocation49_spill] sm:$0xff] }
 0x3d7   :  { %4850 = vmatpush1.bf16.msra.mxu0 %v7825_v29  ;;  %4914 = vmatpush1.bf16.msra.mxu1 %v7826_v47  ;;  %v7836_v29 = vld [vmem:[#allocation50_spill] sm:$0xff]  ;;  %v7837_v47 = vld [vmem:[#allocation51_spill] sm:$0xff] }
 0x3d8   :  { %4852 = vmatprep.subr.bf16.mxu0 %v7827_v50  ;;  %4916 = vmatprep.subr.bf16.mxu1 %v7828_v27  ;;  %v7838_v50 = vld [vmem:[#allocation52_spill] sm:$0xff]  ;;  %v7839_v27 = vld [vmem:[#allocation53_spill] sm:$0xff] }
 0x3db   :  { %4854 = vmatpush1.bf16.msra.mxu0 %v7829_v46  ;;  %4918 = vmatpush1.bf16.msra.mxu1 %v7830_v55  ;;  %v7840_v46 = vld [vmem:[#allocation54_spill] sm:$0xff]  ;;  %v7841_v55 = vld [vmem:[#allocation55_spill] sm:$0xff] }
 0x3dc   :  { %4856 = vmatprep.subr.bf16.mxu0 %v7831_v43  ;;  %4920 = vmatprep.subr.bf16.mxu1 %v7832_v45  ;;  %v7842_v43 = vld [vmem:[#allocation56_spill] sm:$0xff]  ;;  %v7843_v45 = vld [vmem:[#allocation57_spill] sm:$0xff] }
 0x3df   :  { %4858 = vmatpush1.bf16.msra.mxu0 %v7833_v61  ;;  %4922 = vmatpush1.bf16.msra.mxu1 %v7834_v38  ;;  %v7844_v61 = vld [vmem:[#allocation58_spill] sm:$0xff]  ;;  %v7845_v38 = vld [vmem:[#allocation59_spill] sm:$0xff] }
 0x3e0   :  { %4860 = vmatprep.subr.bf16.mxu0 %v7835_v7  ;;  %4924 = vmatprep.subr.bf16.mxu1 %v7836_v29  ;;  %v7846_v7 = vld [vmem:[#allocation60_spill] sm:$0xff]  ;;  %v7847_v29 = vld [vmem:[#allocation61_spill] sm:$0xff] }
 0x3e3   :  { %4862 = vmatpush1.bf16.msra.mxu0 %v7837_v47  ;;  %4926 = vmatpush1.bf16.msra.mxu1 %v7838_v50  ;;  %v7848_v47 = vld [vmem:[#allocation62_spill] sm:$0xff]  ;;  %v7849_v50 = vld [vmem:[#allocation63_spill] sm:$0xff] }
 0x3e4   :  { %4864 = vmatprep.subr.bf16.mxu0 %v7839_v27  ;;  %4928 = vmatprep.subr.bf16.mxu1 %v7840_v46  ;;  %v7850_v27 = vld [vmem:[#allocation64_spill] sm:$0xff]  ;;  %v7851_v46 = vld [vmem:[#allocation65_spill] sm:$0xff] }
 0x3e7   :  { %4866 = vmatpush1.bf16.msra.mxu0 %v7841_v55  ;;  %4930 = vmatpush1.bf16.msra.mxu1 %v7842_v43  ;;  %v7852_v55 = vld [vmem:[#allocation66_spill] sm:$0xff]  ;;  %v7853_v43 = vld [vmem:[#allocation67_spill] sm:$0xff] }
 0x3e8   :  { %4868 = vmatprep.subr.bf16.mxu0 %v7843_v45  ;;  %4932 = vmatprep.subr.bf16.mxu1 %v7844_v61  ;;  %v7854_v45 = vld [vmem:[#allocation68_spill] sm:$0xff] }
 0x3e9   :  { %v7855_v61 = vld [vmem:[#allocation16_spill] sm:$0xff] }
 0x3eb   :  { %4870 = vmatpush1.bf16.msra.mxu0 %v7845_v38  ;;  %4934 = vmatpush1.bf16.msra.mxu1 %v7846_v7  ;;  %v7856_v38 = vld [vmem:[#allocation76_spill] sm:$0xff] }
 0x3ec   :  { %4872 = vmatprep.subr.bf16.mxu0 %v7847_v29  ;;  %4936 = vmatprep.subr.bf16.mxu1 %v7848_v47 }
 0x3ef   :  { %4874 = vmatpush1.bf16.msra.mxu0 %v7849_v50  ;;  %4938 = vmatpush1.bf16.msra.mxu1 %v7850_v27  ;;  %v7857_v27 = vld [vmem:[#allocation78_spill] sm:$0xff] }
 0x3f0   :  { %4876 = vmatprep.subr.bf16.mxu0 %v7851_v46  ;;  %4940 = vmatprep.subr.bf16.mxu1 %v7852_v55 }
 0x3f3   :  { %4878 = vmatpush1.bf16.msra.mxu0 %v7853_v43  ;;  %4942 = vmatpush1.bf16.msra.mxu1 %v7854_v45 }
 0x3f4   :  { %4944 = vmatprep.subr.bf16.mxu0 %v7855_v61  ;;  %4975 = vmatprep.subr.bf16.mxu1 %v7679_v2 }
 0x469   :  { %v1481_v7 = vpop.f32.mrb[20].mxu0  ;;  %v1552_v29 = vpop.f32.mrb[18].mxu1 }
 0x46a   :  { %v1482_v47 = vadd.f32 %v1481_v7, %v7856_v38  ;;  %v1483_v6 = vpop.f32.mrb[21].mxu0  ;;  %v1554_v50 = vpop.f32.mrb[19].mxu1  ;;  %v1553_v61 = vadd.f32 %v1552_v29, %v6603_v5 }
 0x46b   :  { %v1484_v59 = vadd.f32 %v1483_v6, %v7857_v27  ;;  %v1555_v45 = vadd.f32 %v1554_v50, %v7801_v58 }
 0x46c   :  { %v1557_v36 = vmul.f32 0.5, %v1482_v47 }
 0x46d   :  { %v1561_v46 = vmul.f32 0.5, %v1484_v59 }
 0x46e   :  { %5805 = vtanh.f32 %v1557_v36 }
 0x46f   :  { %5807 = vtanh.f32 %v1561_v46 }
 0x478   :  { %v5806_v55 = vpop.eup %5805 }
 0x479   :  { %v1559_v43 = vmul.f32 0.5, %v5806_v55  ;;  %v5808_v4 = vpop.eup %5807 }
 0x47a   :  { %v1563_v7 = vmul.f32 0.5, %v5808_v4 }
 0x47b   :  { %v1560_v32 = vadd.f32 0.5, %v1559_v43 }
 0x47c   :  { %v1564_v38 = vadd.f32 0.5, %v1563_v7 }
 0x47d   :  { %v1565_v24 = vmul.f32 %v1560_v32, %v1555_v45 }
 0x47e   :  { %v1568_v18 = vsub.f32 1.0, %v1564_v38  ;;  %v1570_v50 = vmul.f32 %v1564_v38, %v6728_v34 }
 0x47f   :  { %v1566_v44 = vadd.f32 %v1565_v24, %v1553_v61  ;;  %v7858_v61 = vld [vmem:[#allocation71_spill] sm:$0xff] }
 0x481   :  { %5809 = vtanh.f32 %v1566_v44 }
 0x489   :  { %v1641_v57 = vpop.f32.mrb[6].mxu0  ;;  %v1712_v47 = vpop.f32.mrb[20].mxu1 }
 0x48a   :  { %v5712_v36 = vadd.f32 %v7745_v31, %v1641_v57  ;;  %v1643_v59 = vpop.f32.mrb[7].mxu0  ;;  %v4030_v6 = vpop.f32.mrb[21].mxu1  ;;  %v1713_v24 = vadd.f32 %v1712_v47, %v6480_v16  ;;  %v7860_v47 = vld [vmem:[#allocation18_spill] sm:$0xff] }
 0x48b   :  { %v5810_v46 = vpop.eup %5809  ;;  %v5714_v29 = vadd.f32 %v7746_v30, %v1643_v59 }
 0x48c   :  { %v1717_v55 = vmul.f32 0.5, %v5712_v36  ;;  %v1569_v27 = vmul.f32 %v5810_v46, %v1568_v18 }
 0x48d   :  { %v1722_v44 = vmul.f32 0.5, %v5714_v29  ;;  %v7863_v29 = vld [vmem:[#allocation21_spill] sm:$0xff] }
 0x48e   :  { %5811 = vtanh.f32 %v1717_v55  ;;  %v6847_v32 = vadd.f32 %v1570_v50, %v1569_v27  ;;  %v7861_v55 = vld [vmem:[#allocation19_spill] sm:$0xff]  ;;  %v7862_v50 = vld [vmem:[#allocation20_spill] sm:$0xff] }
 0x48f   :  { %5813 = vtanh.f32 %v1722_v44  ;;  %v7864_v44 = vld [vmem:[#allocation22_spill] sm:$0xff] }
 0x490   :  { %1797 = vmatprep.mubr.f32.mxu0 %v6847_v32  ;;  %1868 = vmatprep.mubr.f32.mxu1 %v6847_v32 }
 0x498   :  { %v5812_v4 = vpop.eup %5811 }
 0x499   :  { %v1719_v57 = vmul.f32 0.5, %v5812_v4  ;;  %v5814_v18 = vpop.eup %5813  ;;  %v7865_v4 = vld [vmem:[#allocation23_spill] sm:$0xff] }
 0x49a   :  { %v1724_v38 = vmul.f32 0.5, %v5814_v18  ;;  %v7870_v18 = vld [vmem:[#allocation28_spill] sm:$0xff] }
 0x49b   :  { %v1720_v43 = vadd.f32 0.5, %v1719_v57  ;;  %v7866_v57 = vld [vmem:[#allocation24_spill] sm:$0xff] }
 0x49c   :  { %v1725_v7 = vadd.f32 0.5, %v1724_v38  ;;  %v7873_v38 = vld [vmem:[#allocation31_spill] sm:$0xff] }
 0x49d   :  { %v1726_v45 = vmul.f32 %v1720_v43, %v1713_v24  ;;  %v7867_v24 = vld [vmem:[#allocation25_spill] sm:$0xff]  ;;  %v7868_v43 = vld [vmem:[#allocation26_spill] sm:$0xff] }
 0x49e   :  { %v1729_v27 = vsub.f32 1.0, %v1725_v7  ;;  %v1731_v6 = vmul.f32 %v1725_v7, %v6735_v10  ;;  %v7859_v10 = vld [vmem:[#allocation17_spill] sm:$0xff]  ;;  %v7874_v7 = vld [vmem:[#allocation32_spill] sm:$0xff] }
 0x49f   :  { %v1727_v34 = vadd.f32 %v1726_v45, %v7858_v61  ;;  %v7869_v45 = vld [vmem:[#allocation27_spill] sm:$0xff]  ;;  %v7871_v61 = vld [vmem:[#allocation29_spill] sm:$0xff] }
 0x4a1   :  { %5815 = vtanh.f32 %v1727_v34  ;;  %v7872_v34 = vld [vmem:[#allocation30_spill] sm:$0xff] }
 0x4ab   :  { %v5816_v36 = vpop.eup %5815 }
 0x4ac   :  { %v1730_v59 = vmul.f32 %v5816_v36, %v1729_v27  ;;  %v7875_v27 = vld [vmem:[#allocation33_spill] sm:$0xff]  ;;  %v7876_v36 = vld [vmem:[#allocation34_spill] sm:$0xff] }
 0x4ae   :  { %v6854_v46 = vadd.f32 %v1731_v6, %v1730_v59  ;;  %v7877_v59 = vld [vmem:[#allocation35_spill] sm:$0xff]  ;;  %v7878_v6 = vld [vmem:[#allocation36_spill] sm:$0xff] }
 0x4b0   :  { %1798 = vmatmul.mubr.f32.vlgmr.msra.gmra.mrb[22].mxu0 %v6854_v46  ;;  %1869 = vmatmul.mubr.f32.vlgmr.msra.gmra.mrb[22].mxu1 %v6854_v46 }
 0x4b1   :  { %4946 = vmatpush1.bf16.msra.mxu0 %v6110_v9  ;;  %4977 = vmatpush3.bf16.msra.mxu1 %v6144_v35 }
 0x4b2   :  { %4948 = vmatprep.subr.bf16.mxu0 %v6117_v14  ;;  %4978 = vmatprep.subr.bf16.mxu1 %v7679_v2 }
 0x4b3   :  { %1957 = vmatprep.mubr.f32.mxu0 %v7692_v23  ;;  %4063 = vmatprep.mubr.msk.f32.mxu1 %vm5979_vm2, %v7692_v23 }
 0x4b5   :  { %4950 = vmatpush1.bf16.msra.mxu0 %v6120_v17  ;;  %4980 = vmatpush3.bf16.msra.mxu1 %v6155_v41 }
 0x4b6   :  { %4952 = vmatprep.subr.bf16.mxu0 %v6123_v19  ;;  %4981 = vmatprep.subr.bf16.mxu1 %v7679_v2 }
 0x4b9   :  { %4954 = vmatpush1.bf16.msra.mxu0 %v6135_v26  ;;  %4983 = vmatpush3.bf16.msra.mxu1 %v6175_v52 }
 0x4ba   :  { %4956 = vmatprep.subr.bf16.mxu0 %v6139_v28  ;;  %4984 = vmatprep.subr.bf16.mxu1 %v7679_v2 }
 0x4bd   :  { %4958 = vmatpush1.bf16.msra.mxu0 %v6152_v39  ;;  %4986 = vmatpush3.bf16.msra.mxu1 %v6192_v63 }
 0x4be   :  { %4960 = vmatprep.subr.bf16.mxu0 %v6158_v42  ;;  %4987 = vmatprep.subr.bf16.mxu1 %v7679_v2 }
 0x4c1   :  { %4962 = vmatpush1.bf16.msra.mxu0 %v6169_v49  ;;  %4989 = vmatpush3.bf16.msra.mxu1 %v6210_v11 }
 0x4c2   :  { %4964 = vmatprep.subr.bf16.mxu0 %v6178_v53  ;;  %4990 = vmatprep.subr.bf16.mxu1 %v7679_v2 }
 0x4c5   :  { %4966 = vmatpush1.bf16.msra.mxu0 %v6189_v60  ;;  %4992 = vmatpush3.bf16.msra.mxu1 %v6222_v22 }
 0x4c6   :  { %4968 = vmatprep.subr.bf16.mxu0 %v6195_v0  ;;  %4993 = vmatprep.subr.bf16.mxu1 %v7679_v2 }
 0x4c9   :  { %4970 = vmatpush1.bf16.msra.mxu0 %v6207_v8  ;;  %4995 = vmatpush3.bf16.msra.mxu1 %v6232_v33 }
 0x4ca   :  { %4972 = vmatprep.subr.bf16.mxu0 %v6213_v12  ;;  %4996 = vmatprep.subr.bf16.mxu1 %v7679_v2 }
 0x4cd   :  { %4974 = vmatpush1.bf16.msra.mxu0 %v6219_v21  ;;  %4998 = vmatpush3.bf16.msra.mxu1 %v6242_v48 }
 0x4ce   :  { %5000 = vmatprep.subr.bf16.mxu0 %v6226_v25  ;;  %5064 = vmatprep.subr.bf16.mxu1 %v6248_v54 }
 0x4d0   :  { %1958 = vmatmul.mubr.f32.vlgmr.msra.gmra.mrb[8].mxu0 %v6854_v46  ;;  %4064 = vmatmul.mubr.f32.vlgmr.msra.gmra.mrb[24].mxu1 %v6854_v46 }
 0x4d1   :  { %5002 = vmatpush1.bf16.msra.mxu0 %v6234_v37  ;;  %5066 = vmatpush1.bf16.msra.mxu1 %v6255_v62 }
 0x4d2   :  { %5004 = vmatprep.subr.bf16.mxu0 %v6238_v40  ;;  %5068 = vmatprep.subr.bf16.mxu1 %v6261_v3 }
 0x4d5   :  { %5006 = vmatpush1.bf16.msra.mxu0 %v6245_v51  ;;  %5070 = vmatpush1.bf16.msra.mxu1 %v6266_v13 }
 0x4d6   :  { %5008 = vmatprep.subr.bf16.mxu0 %v6251_v56  ;;  %5072 = vmatprep.subr.bf16.mxu1 %v6270_v15 }
 0x4d9   :  { %5010 = vmatpush1.bf16.msra.mxu0 %v6258_v1  ;;  %5074 = vmatpush1.bf16.msra.mxu1 %v6274_v20 }
 0x4da   :  { %5012 = vmatprep.subr.bf16.mxu0 %v7859_v10  ;;  %5076 = vmatprep.subr.bf16.mxu1 %v7860_v47 }
 0x4dd   :  { %5014 = vmatpush1.bf16.msra.mxu0 %v7861_v55  ;;  %5078 = vmatpush1.bf16.msra.mxu1 %v7862_v50 }
 0x4de   :  { %5016 = vmatprep.subr.bf16.mxu0 %v7863_v29  ;;  %5080 = vmatprep.subr.bf16.mxu1 %v7864_v44 }
 0x4e1   :  { %5018 = vmatpush1.bf16.msra.mxu0 %v7865_v4  ;;  %5082 = vmatpush1.bf16.msra.mxu1 %v7866_v57 }
 0x4e2   :  { %5020 = vmatprep.subr.bf16.mxu0 %v7867_v24  ;;  %5084 = vmatprep.subr.bf16.mxu1 %v7868_v43  ;;  %v7879_v43 = vld [vmem:[#allocation37_spill] sm:$0xff] }
 0x4e5   :  { %5022 = vmatpush1.bf16.msra.mxu0 %v7869_v45  ;;  %5086 = vmatpush1.bf16.msra.mxu1 %v7870_v18  ;;  %v7880_v45 = vld [vmem:[#allocation38_spill] sm:$0xff]  ;;  %v7881_v18 = vld [vmem:[#allocation39_spill] sm:$0xff] }
 0x4e6   :  { %5024 = vmatprep.subr.bf16.mxu0 %v7871_v61  ;;  %5088 = vmatprep.subr.bf16.mxu1 %v7872_v34  ;;  %v7882_v61 = vld [vmem:[#allocation40_spill] sm:$0xff]  ;;  %v7883_v34 = vld [vmem:[#allocation41_spill] sm:$0xff] }
 0x4e9   :  { %5026 = vmatpush1.bf16.msra.mxu0 %v7873_v38  ;;  %5090 = vmatpush1.bf16.msra.mxu1 %v7874_v7  ;;  %v7884_v38 = vld [vmem:[#allocation42_spill] sm:$0xff]  ;;  %v7885_v7 = vld [vmem:[#allocation43_spill] sm:$0xff] }
 0x4ea   :  { %5028 = vmatprep.subr.bf16.mxu0 %v7875_v27  ;;  %5092 = vmatprep.subr.bf16.mxu1 %v7876_v36  ;;  %v7886_v27 = vld [vmem:[#allocation44_spill] sm:$0xff]  ;;  %v7887_v36 = vld [vmem:[#allocation45_spill] sm:$0xff] }
 0x4ed   :  { %5030 = vmatpush1.bf16.msra.mxu0 %v7877_v59  ;;  %5094 = vmatpush1.bf16.msra.mxu1 %v7878_v6  ;;  %v7888_v59 = vld [vmem:[#allocation46_spill] sm:$0xff]  ;;  %v7889_v6 = vld [vmem:[#allocation47_spill] sm:$0xff] }
 0x4ee   :  { %5032 = vmatprep.subr.bf16.mxu0 %v7879_v43  ;;  %5096 = vmatprep.subr.bf16.mxu1 %v7880_v45  ;;  %v7890_v43 = vld [vmem:[#allocation48_spill] sm:$0xff]  ;;  %v7891_v45 = vld [vmem:[#allocation49_spill] sm:$0xff] }
 0x4f1   :  { %5034 = vmatpush1.bf16.msra.mxu0 %v7881_v18  ;;  %5098 = vmatpush1.bf16.msra.mxu1 %v7882_v61  ;;  %v7892_v18 = vld [vmem:[#allocation50_spill] sm:$0xff]  ;;  %v7893_v61 = vld [vmem:[#allocation51_spill] sm:$0xff] }
 0x4f2   :  { %5036 = vmatprep.subr.bf16.mxu0 %v7883_v34  ;;  %5100 = vmatprep.subr.bf16.mxu1 %v7884_v38  ;;  %v7894_v34 = vld [vmem:[#allocation52_spill] sm:$0xff]  ;;  %v7895_v38 = vld [vmem:[#allocation53_spill] sm:$0xff] }
 0x4f5   :  { %5038 = vmatpush1.bf16.msra.mxu0 %v7885_v7  ;;  %5102 = vmatpush1.bf16.msra.mxu1 %v7886_v27  ;;  %v7896_v7 = vld [vmem:[#allocation54_spill] sm:$0xff]  ;;  %v7897_v27 = vld [vmem:[#allocation55_spill] sm:$0xff] }
 0x4f6   :  { %5040 = vmatprep.subr.bf16.mxu0 %v7887_v36  ;;  %5104 = vmatprep.subr.bf16.mxu1 %v7888_v59  ;;  %v7898_v36 = vld [vmem:[#allocation56_spill] sm:$0xff]  ;;  %v7899_v59 = vld [vmem:[#allocation57_spill] sm:$0xff] }
 0x4f9   :  { %5042 = vmatpush1.bf16.msra.mxu0 %v7889_v6  ;;  %5106 = vmatpush1.bf16.msra.mxu1 %v7890_v43  ;;  %v7900_v6 = vld [vmem:[#allocation58_spill] sm:$0xff]  ;;  %v7901_v43 = vld [vmem:[#allocation59_spill] sm:$0xff] }
 0x4fa   :  { %5044 = vmatprep.subr.bf16.mxu0 %v7891_v45  ;;  %5108 = vmatprep.subr.bf16.mxu1 %v7892_v18  ;;  %v7902_v45 = vld [vmem:[#allocation60_spill] sm:$0xff]  ;;  %v7903_v18 = vld [vmem:[#allocation61_spill] sm:$0xff] }
 0x4fd   :  { %5046 = vmatpush1.bf16.msra.mxu0 %v7893_v61  ;;  %5110 = vmatpush1.bf16.msra.mxu1 %v7894_v34  ;;  %v7904_v61 = vld [vmem:[#allocation62_spill] sm:$0xff]  ;;  %v7905_v34 = vld [vmem:[#allocation63_spill] sm:$0xff] }
 0x4fe   :  { %5048 = vmatprep.subr.bf16.mxu0 %v7895_v38  ;;  %5112 = vmatprep.subr.bf16.mxu1 %v7896_v7  ;;  %v7906_v38 = vld [vmem:[#allocation64_spill] sm:$0xff]  ;;  %v7907_v7 = vld [vmem:[#allocation65_spill] sm:$0xff] }
 0x501   :  { %5050 = vmatpush1.bf16.msra.mxu0 %v7897_v27  ;;  %5114 = vmatpush1.bf16.msra.mxu1 %v7898_v36  ;;  %v7908_v27 = vld [vmem:[#allocation66_spill] sm:$0xff]  ;;  %v7909_v36 = vld [vmem:[#allocation67_spill] sm:$0xff] }
 0x502   :  { %5052 = vmatprep.subr.bf16.mxu0 %v7899_v59  ;;  %5116 = vmatprep.subr.bf16.mxu1 %v7900_v6  ;;  %v7910_v59 = vld [vmem:[#allocation68_spill] sm:$0xff] }
 0x503   :  { %v7911_v6 = vld [vmem:[#allocation16_spill] sm:$0xff] }
 0x505   :  { %5054 = vmatpush1.bf16.msra.mxu0 %v7901_v43  ;;  %5118 = vmatpush1.bf16.msra.mxu1 %v7902_v45  ;;  %v7912_v43 = vld [vmem:[#allocation76_spill] sm:$0xff] }
 0x506   :  { %5056 = vmatprep.subr.bf16.mxu0 %v7903_v18  ;;  %5120 = vmatprep.subr.bf16.mxu1 %v7904_v61 }
 0x509   :  { %5058 = vmatpush1.bf16.msra.mxu0 %v7905_v34  ;;  %5122 = vmatpush1.bf16.msra.mxu1 %v7906_v38  ;;  %v7913_v38 = vld [vmem:[#allocation78_spill] sm:$0xff] }
 0x50a   :  { %5060 = vmatprep.subr.bf16.mxu0 %v7907_v7  ;;  %5124 = vmatprep.subr.bf16.mxu1 %v7908_v27 }
 0x50d   :  { %5062 = vmatpush1.bf16.msra.mxu0 %v7909_v36  ;;  %5126 = vmatpush1.bf16.msra.mxu1 %v7910_v59 }
 0x50e   :  { %5128 = vmatprep.subr.bf16.mxu0 %v7911_v6  ;;  %5159 = vmatprep.subr.bf16.mxu1 %v7679_v2 }
 0x583   :  { %v1799_v45 = vpop.f32.mrb[22].mxu0  ;;  %v1870_v18 = vpop.f32.mrb[22].mxu1 }
 0x584   :  { %v1800_v61 = vadd.f32 %v1799_v45, %v7912_v43  ;;  %v1801_v24 = vpop.f32.mrb[23].mxu0  ;;  %v1872_v34 = vpop.f32.mrb[23].mxu1  ;;  %v1871_v6 = vadd.f32 %v1870_v18, %v6603_v5 }
 0x585   :  { %v1802_v4 = vadd.f32 %v1801_v24, %v7913_v38  ;;  %v1873_v59 = vadd.f32 %v1872_v34, %v7801_v58 }
 0x586   :  { %v1875_v57 = vmul.f32 0.5, %v1800_v61 }
 0x587   :  { %v1879_v7 = vmul.f32 0.5, %v1802_v4 }
 0x588   :  { %5817 = vtanh.f32 %v1875_v57 }
 0x589   :  { %5819 = vtanh.f32 %v1879_v7 }
 0x592   :  { %v5818_v27 = vpop.eup %5817 }
 0x593   :  { %v1877_v36 = vmul.f32 0.5, %v5818_v27  ;;  %v5820_v50 = vpop.eup %5819 }
 0x594   :  { %v1881_v45 = vmul.f32 0.5, %v5820_v50 }
 0x595   :  { %v1878_v44 = vadd.f32 0.5, %v1877_v36 }
 0x596   :  { %v1882_v43 = vadd.f32 0.5, %v1881_v45 }
 0x597   :  { %v1883_v29 = vmul.f32 %v1878_v44, %v1873_v59 }
 0x598   :  { %v1886_v10 = vsub.f32 1.0, %v1882_v43  ;;  %v1888_v34 = vmul.f32 %v1882_v43, %v6847_v32 }
 0x599   :  { %v1884_v55 = vadd.f32 %v1883_v29, %v1871_v6  ;;  %v7914_v6 = vld [vmem:[#allocation74_spill] sm:$0xff] }
 0x59b   :  { %5821 = vtanh.f32 %v1884_v55 }
 0x5a3   :  { %v1959_v47 = vpop.f32.mrb[8].mxu0  ;;  %v2030_v61 = vpop.f32.mrb[24].mxu1 }
 0x5a4   :  { %v5716_v57 = vadd.f32 %v7745_v31, %v1959_v47  ;;  %v1961_v4 = vpop.f32.mrb[9].mxu0  ;;  %v4065_v24 = vpop.f32.mrb[25].mxu1  ;;  %v2031_v29 = vadd.f32 %v2030_v61, %v6480_v16  ;;  %v7916_v61 = vld [vmem:[#allocation18_spill] sm:$0xff] }
 0x5a5   :  { %v5822_v7 = vpop.eup %5821  ;;  %v5718_v18 = vadd.f32 %v7746_v30, %v1961_v4 }
 0x5a6   :  { %v2035_v27 = vmul.f32 0.5, %v5716_v57  ;;  %v1887_v38 = vmul.f32 %v5822_v7, %v1886_v10 }
 0x5a7   :  { %v2040_v55 = vmul.f32 0.5, %v5718_v18  ;;  %v7919_v18 = vld [vmem:[#allocation21_spill] sm:$0xff] }
 0x5a8   :  { %5823 = vtanh.f32 %v2035_v27  ;;  %v6966_v44 = vadd.f32 %v1888_v34, %v1887_v38  ;;  %v7917_v27 = vld [vmem:[#allocation19_spill] sm:$0xff]  ;;  %v7918_v34 = vld [vmem:[#allocation20_spill] sm:$0xff] }
 0x5a9   :  { %5825 = vtanh.f32 %v2040_v55  ;;  %v7920_v55 = vld [vmem:[#allocation22_spill] sm:$0xff] }
 0x5aa   :  { %2115 = vmatprep.mubr.f32.mxu0 %v6966_v44  ;;  %2186 = vmatprep.mubr.f32.mxu1 %v6966_v44 }
 0x5b2   :  { %v5824_v50 = vpop.eup %5823 }
 0x5b3   :  { %v2037_v47 = vmul.f32 0.5, %v5824_v50  ;;  %v5826_v10 = vpop.eup %5825  ;;  %v7921_v50 = vld [vmem:[#allocation23_spill] sm:$0xff] }
 0x5b4   :  { %v2042_v43 = vmul.f32 0.5, %v5826_v10  ;;  %v7926_v10 = vld [vmem:[#allocation28_spill] sm:$0xff] }
 0x5b5   :  { %v2038_v36 = vadd.f32 0.5, %v2037_v47  ;;  %v7922_v47 = vld [vmem:[#allocation24_spill] sm:$0xff] }
 0x5b6   :  { %v2043_v45 = vadd.f32 0.5, %v2042_v43  ;;  %v7929_v43 = vld [vmem:[#allocation31_spill] sm:$0xff] }
 0x5b7   :  { %v2044_v59 = vmul.f32 %v2038_v36, %v2031_v29  ;;  %v7923_v29 = vld [vmem:[#allocation25_spill] sm:$0xff]  ;;  %v7924_v36 = vld [vmem:[#allocation26_spill] sm:$0xff] }
 0x5b8   :  { %v2047_v38 = vsub.f32 1.0, %v2043_v45  ;;  %v2049_v24 = vmul.f32 %v2043_v45, %v6854_v46  ;;  %v7915_v46 = vld [vmem:[#allocation17_spill] sm:$0xff]  ;;  %v7930_v45 = vld [vmem:[#allocation32_spill] sm:$0xff] }
 0x5b9   :  { %v2045_v32 = vadd.f32 %v2044_v59, %v7914_v6  ;;  %v7925_v59 = vld [vmem:[#allocation27_spill] sm:$0xff]  ;;  %v7927_v6 = vld [vmem:[#allocation29_spill] sm:$0xff] }
 0x5bb   :  { %5827 = vtanh.f32 %v2045_v32  ;;  %v7928_v32 = vld [vmem:[#allocation30_spill] sm:$0xff] }
 0x5c5   :  { %v5828_v57 = vpop.eup %5827 }
 0x5c6   :  { %v2048_v4 = vmul.f32 %v5828_v57, %v2047_v38  ;;  %v7931_v38 = vld [vmem:[#allocation33_spill] sm:$0xff]  ;;  %v7932_v57 = vld [vmem:[#allocation34_spill] sm:$0xff] }
 0x5c8   :  { %v6973_v7 = vadd.f32 %v2049_v24, %v2048_v4  ;;  %v7933_v4 = vld [vmem:[#allocation35_spill] sm:$0xff]  ;;  %v7934_v24 = vld [vmem:[#allocation36_spill] sm:$0xff] }
 0x5ca   :  { %2116 = vmatmul.mubr.f32.vlgmr.msra.gmra.mrb[24].mxu0 %v6973_v7  ;;  %2187 = vmatmul.mubr.f32.vlgmr.msra.gmra.mrb[26].mxu1 %v6973_v7 }
 0x5cb   :  { %5130 = vmatpush1.bf16.msra.mxu0 %v6110_v9  ;;  %5161 = vmatpush3.bf16.msra.mxu1 %v6144_v35 }
 0x5cc   :  { %5132 = vmatprep.subr.bf16.mxu0 %v6117_v14  ;;  %5162 = vmatprep.subr.bf16.mxu1 %v7679_v2 }
 0x5cd   :  { %2275 = vmatprep.mubr.f32.mxu0 %v7692_v23  ;;  %4098 = vmatprep.mubr.msk.f32.mxu1 %vm5979_vm2, %v7692_v23 }
 0x5cf   :  { %5134 = vmatpush1.bf16.msra.mxu0 %v6120_v17  ;;  %5164 = vmatpush3.bf16.msra.mxu1 %v6155_v41 }
 0x5d0   :  { %5136 = vmatprep.subr.bf16.mxu0 %v6123_v19  ;;  %5165 = vmatprep.subr.bf16.mxu1 %v7679_v2 }
 0x5d3   :  { %5138 = vmatpush1.bf16.msra.mxu0 %v6135_v26  ;;  %5167 = vmatpush3.bf16.msra.mxu1 %v6175_v52 }
 0x5d4   :  { %5140 = vmatprep.subr.bf16.mxu0 %v6139_v28  ;;  %5168 = vmatprep.subr.bf16.mxu1 %v7679_v2 }
 0x5d7   :  { %5142 = vmatpush1.bf16.msra.mxu0 %v6152_v39  ;;  %5170 = vmatpush3.bf16.msra.mxu1 %v6192_v63 }
 0x5d8   :  { %5144 = vmatprep.subr.bf16.mxu0 %v6158_v42  ;;  %5171 = vmatprep.subr.bf16.mxu1 %v7679_v2 }
 0x5db   :  { %5146 = vmatpush1.bf16.msra.mxu0 %v6169_v49  ;;  %5173 = vmatpush3.bf16.msra.mxu1 %v6210_v11 }
 0x5dc   :  { %5148 = vmatprep.subr.bf16.mxu0 %v6178_v53  ;;  %5174 = vmatprep.subr.bf16.mxu1 %v7679_v2 }
 0x5df   :  { %5150 = vmatpush1.bf16.msra.mxu0 %v6189_v60  ;;  %5176 = vmatpush3.bf16.msra.mxu1 %v6222_v22 }
 0x5e0   :  { %5152 = vmatprep.subr.bf16.mxu0 %v6195_v0  ;;  %5177 = vmatprep.subr.bf16.mxu1 %v7679_v2 }
 0x5e3   :  { %5154 = vmatpush1.bf16.msra.mxu0 %v6207_v8  ;;  %5179 = vmatpush3.bf16.msra.mxu1 %v6232_v33 }
 0x5e4   :  { %5156 = vmatprep.subr.bf16.mxu0 %v6213_v12  ;;  %5180 = vmatprep.subr.bf16.mxu1 %v7679_v2 }
 0x5e7   :  { %5158 = vmatpush1.bf16.msra.mxu0 %v6219_v21  ;;  %5182 = vmatpush3.bf16.msra.mxu1 %v6242_v48 }
 0x5e8   :  { %5184 = vmatprep.subr.bf16.mxu0 %v6226_v25  ;;  %5248 = vmatprep.subr.bf16.mxu1 %v6248_v54 }
 0x5ea   :  { %2276 = vmatmul.mubr.f32.vlgmr.msra.gmra.mrb[10].mxu0 %v6973_v7  ;;  %4099 = vmatmul.mubr.f32.vlgmr.msra.gmra.mrb[28].mxu1 %v6973_v7 }
 0x5eb   :  { %5186 = vmatpush1.bf16.msra.mxu0 %v6234_v37  ;;  %5250 = vmatpush1.bf16.msra.mxu1 %v6255_v62 }
 0x5ec   :  { %5188 = vmatprep.subr.bf16.mxu0 %v6238_v40  ;;  %5252 = vmatprep.subr.bf16.mxu1 %v6261_v3 }
 0x5ef   :  { %5190 = vmatpush1.bf16.msra.mxu0 %v6245_v51  ;;  %5254 = vmatpush1.bf16.msra.mxu1 %v6266_v13 }
 0x5f0   :  { %5192 = vmatprep.subr.bf16.mxu0 %v6251_v56  ;;  %5256 = vmatprep.subr.bf16.mxu1 %v6270_v15 }
 0x5f3   :  { %5194 = vmatpush1.bf16.msra.mxu0 %v6258_v1  ;;  %5258 = vmatpush1.bf16.msra.mxu1 %v6274_v20 }
 0x5f4   :  { %5196 = vmatprep.subr.bf16.mxu0 %v7915_v46  ;;  %5260 = vmatprep.subr.bf16.mxu1 %v7916_v61 }
 0x5f7   :  { %5198 = vmatpush1.bf16.msra.mxu0 %v7917_v27  ;;  %5262 = vmatpush1.bf16.msra.mxu1 %v7918_v34 }
 0x5f8   :  { %5200 = vmatprep.subr.bf16.mxu0 %v7919_v18  ;;  %5264 = vmatprep.subr.bf16.mxu1 %v7920_v55 }
 0x5fb   :  { %5202 = vmatpush1.bf16.msra.mxu0 %v7921_v50  ;;  %5266 = vmatpush1.bf16.msra.mxu1 %v7922_v47 }
 0x5fc   :  { %5204 = vmatprep.subr.bf16.mxu0 %v7923_v29  ;;  %5268 = vmatprep.subr.bf16.mxu1 %v7924_v36  ;;  %v7935_v36 = vld [vmem:[#allocation37_spill] sm:$0xff] }
 0x5ff   :  { %5206 = vmatpush1.bf16.msra.mxu0 %v7925_v59  ;;  %5270 = vmatpush1.bf16.msra.mxu1 %v7926_v10  ;;  %v7936_v59 = vld [vmem:[#allocation38_spill] sm:$0xff]  ;;  %v7937_v10 = vld [vmem:[#allocation39_spill] sm:$0xff] }
 0x600   :  { %5208 = vmatprep.subr.bf16.mxu0 %v7927_v6  ;;  %5272 = vmatprep.subr.bf16.mxu1 %v7928_v32  ;;  %v7938_v6 = vld [vmem:[#allocation40_spill] sm:$0xff]  ;;  %v7939_v32 = vld [vmem:[#allocation41_spill] sm:$0xff] }
 0x603   :  { %5210 = vmatpush1.bf16.msra.mxu0 %v7929_v43  ;;  %5274 = vmatpush1.bf16.msra.mxu1 %v7930_v45  ;;  %v7940_v43 = vld [vmem:[#allocation42_spill] sm:$0xff]  ;;  %v7941_v45 = vld [vmem:[#allocation43_spill] sm:$0xff] }
 0x604   :  { %5212 = vmatprep.subr.bf16.mxu0 %v7931_v38  ;;  %5276 = vmatprep.subr.bf16.mxu1 %v7932_v57  ;;  %v7942_v38 = vld [vmem:[#allocation44_spill] sm:$0xff]  ;;  %v7943_v57 = vld [vmem:[#allocation45_spill] sm:$0xff] }
 0x607   :  { %5214 = vmatpush1.bf16.msra.mxu0 %v7933_v4  ;;  %5278 = vmatpush1.bf16.msra.mxu1 %v7934_v24  ;;  %v7944_v4 = vld [vmem:[#allocation46_spill] sm:$0xff]  ;;  %v7945_v24 = vld [vmem:[#allocation47_spill] sm:$0xff] }
 0x608   :  { %5216 = vmatprep.subr.bf16.mxu0 %v7935_v36  ;;  %5280 = vmatprep.subr.bf16.mxu1 %v7936_v59  ;;  %v7946_v36 = vld [vmem:[#allocation48_spill] sm:$0xff]  ;;  %v7947_v59 = vld [vmem:[#allocation49_spill] sm:$0xff] }
 0x60b   :  { %5218 = vmatpush1.bf16.msra.mxu0 %v7937_v10  ;;  %5282 = vmatpush1.bf16.msra.mxu1 %v7938_v6  ;;  %v7948_v10 = vld [vmem:[#allocation50_spill] sm:$0xff]  ;;  %v7949_v6 = vld [vmem:[#allocation51_spill] sm:$0xff] }
 0x60c   :  { %5220 = vmatprep.subr.bf16.mxu0 %v7939_v32  ;;  %5284 = vmatprep.subr.bf16.mxu1 %v7940_v43  ;;  %v7950_v32 = vld [vmem:[#allocation52_spill] sm:$0xff]  ;;  %v7951_v43 = vld [vmem:[#allocation53_spill] sm:$0xff] }
 0x60f   :  { %5222 = vmatpush1.bf16.msra.mxu0 %v7941_v45  ;;  %5286 = vmatpush1.bf16.msra.mxu1 %v7942_v38  ;;  %v7952_v45 = vld [vmem:[#allocation54_spill] sm:$0xff]  ;;  %v7953_v38 = vld [vmem:[#allocation55_spill] sm:$0xff] }
 0x610   :  { %5224 = vmatprep.subr.bf16.mxu0 %v7943_v57  ;;  %5288 = vmatprep.subr.bf16.mxu1 %v7944_v4  ;;  %v7954_v57 = vld [vmem:[#allocation56_spill] sm:$0xff]  ;;  %v7955_v4 = vld [vmem:[#allocation57_spill] sm:$0xff] }
 0x613   :  { %5226 = vmatpush1.bf16.msra.mxu0 %v7945_v24  ;;  %5290 = vmatpush1.bf16.msra.mxu1 %v7946_v36  ;;  %v7956_v24 = vld [vmem:[#allocation58_spill] sm:$0xff]  ;;  %v7957_v36 = vld [vmem:[#allocation59_spill] sm:$0xff] }
 0x614   :  { %5228 = vmatprep.subr.bf16.mxu0 %v7947_v59  ;;  %5292 = vmatprep.subr.bf16.mxu1 %v7948_v10  ;;  %v7958_v59 = vld [vmem:[#allocation60_spill] sm:$0xff]  ;;  %v7959_v10 = vld [vmem:[#allocation61_spill] sm:$0xff] }
 0x617   :  { %5230 = vmatpush1.bf16.msra.mxu0 %v7949_v6  ;;  %5294 = vmatpush1.bf16.msra.mxu1 %v7950_v32  ;;  %v7960_v6 = vld [vmem:[#allocation62_spill] sm:$0xff]  ;;  %v7961_v32 = vld [vmem:[#allocation63_spill] sm:$0xff] }
 0x618   :  { %5232 = vmatprep.subr.bf16.mxu0 %v7951_v43  ;;  %5296 = vmatprep.subr.bf16.mxu1 %v7952_v45  ;;  %v7962_v43 = vld [vmem:[#allocation64_spill] sm:$0xff]  ;;  %v7963_v45 = vld [vmem:[#allocation65_spill] sm:$0xff] }
 0x61b   :  { %5234 = vmatpush1.bf16.msra.mxu0 %v7953_v38  ;;  %5298 = vmatpush1.bf16.msra.mxu1 %v7954_v57  ;;  %v7964_v38 = vld [vmem:[#allocation66_spill] sm:$0xff]  ;;  %v7965_v57 = vld [vmem:[#allocation67_spill] sm:$0xff] }
 0x61c   :  { %5236 = vmatprep.subr.bf16.mxu0 %v7955_v4  ;;  %5300 = vmatprep.subr.bf16.mxu1 %v7956_v24  ;;  %v7966_v4 = vld [vmem:[#allocation68_spill] sm:$0xff] }
 0x61d   :  { %v7967_v24 = vld [vmem:[#allocation16_spill] sm:$0xff] }
 0x61f   :  { %5238 = vmatpush1.bf16.msra.mxu0 %v7957_v36  ;;  %5302 = vmatpush1.bf16.msra.mxu1 %v7958_v59  ;;  %v7968_v36 = vld [vmem:[#allocation76_spill] sm:$0xff] }
 0x620   :  { %5240 = vmatprep.subr.bf16.mxu0 %v7959_v10  ;;  %5304 = vmatprep.subr.bf16.mxu1 %v7960_v6 }
 0x623   :  { %5242 = vmatpush1.bf16.msra.mxu0 %v7961_v32  ;;  %5306 = vmatpush1.bf16.msra.mxu1 %v7962_v43  ;;  %v7969_v43 = vld [vmem:[#allocation78_spill] sm:$0xff] }
 0x624   :  { %5244 = vmatprep.subr.bf16.mxu0 %v7963_v45  ;;  %5308 = vmatprep.subr.bf16.mxu1 %v7964_v38 }
 0x627   :  { %5246 = vmatpush1.bf16.msra.mxu0 %v7965_v57  ;;  %5310 = vmatpush1.bf16.msra.mxu1 %v7966_v4 }
 0x628   :  { %5312 = vmatprep.subr.bf16.mxu0 %v7967_v24  ;;  %5343 = vmatprep.subr.bf16.mxu1 %v7679_v2 }
 0x69d   :  { %v2117_v59 = vpop.f32.mrb[24].mxu0  ;;  %v2188_v10 = vpop.f32.mrb[26].mxu1 }
 0x69e   :  { %v2118_v6 = vadd.f32 %v2117_v59, %v7968_v36  ;;  %v2119_v29 = vpop.f32.mrb[25].mxu0  ;;  %v2190_v32 = vpop.f32.mrb[27].mxu1  ;;  %v2189_v24 = vadd.f32 %v2188_v10, %v6603_v5 }
 0x69f   :  { %v2120_v50 = vadd.f32 %v2119_v29, %v7969_v43  ;;  %v2191_v4 = vadd.f32 %v2190_v32, %v7801_v58 }
 0x6a0   :  { %v2193_v47 = vmul.f32 0.5, %v2118_v6 }
 0x6a1   :  { %v2197_v45 = vmul.f32 0.5, %v2120_v50 }
 0x6a2   :  { %5829 = vtanh.f32 %v2193_v47 }
 0x6a3   :  { %5831 = vtanh.f32 %v2197_v45 }
 0x6ac   :  { %v5830_v38 = vpop.eup %5829 }
 0x6ad   :  { %v2195_v57 = vmul.f32 0.5, %v5830_v38  ;;  %v5832_v34 = vpop.eup %5831 }
 0x6ae   :  { %v2199_v59 = vmul.f32 0.5, %v5832_v34 }
 0x6af   :  { %v2196_v55 = vadd.f32 0.5, %v2195_v57 }
 0x6b0   :  { %v2200_v36 = vadd.f32 0.5, %v2199_v59 }
 0x6b1   :  { %v2201_v18 = vmul.f32 %v2196_v55, %v2191_v4 }
 0x6b2   :  { %v2204_v46 = vsub.f32 1.0, %v2200_v36  ;;  %v2206_v32 = vmul.f32 %v2200_v36, %v6966_v44 }
 0x6b3   :  { %v2202_v27 = vadd.f32 %v2201_v18, %v2189_v24  ;;  %v7970_v24 = vld [vmem:[#allocation73_spill] sm:$0xff] }
 0x6b5   :  { %5833 = vtanh.f32 %v2202_v27 }
 0x6bd   :  { %v2277_v61 = vpop.f32.mrb[10].mxu0  ;;  %v2348_v6 = vpop.f32.mrb[28].mxu1 }
 0x6be   :  { %v5720_v47 = vadd.f32 %v7745_v31, %v2277_v61  ;;  %v2279_v50 = vpop.f32.mrb[11].mxu0  ;;  %v4100_v29 = vpop.f32.mrb[29].mxu1  ;;  %v2349_v18 = vadd.f32 %v2348_v6, %v6480_v16  ;;  %v7972_v6 = vld [vmem:[#allocation18_spill] sm:$0xff] }
 0x6bf   :  { %v5834_v45 = vpop.eup %5833  ;;  %v5722_v10 = vadd.f32 %v7746_v30, %v2279_v50 }
 0x6c0   :  { %v2353_v38 = vmul.f32 0.5, %v5720_v47  ;;  %v2205_v43 = vmul.f32 %v5834_v45, %v2204_v46 }
 0x6c1   :  { %v2358_v27 = vmul.f32 0.5, %v5722_v10  ;;  %v7975_v10 = vld [vmem:[#allocation21_spill] sm:$0xff] }
 0x6c2   :  { %5835 = vtanh.f32 %v2353_v38  ;;  %v7085_v55 = vadd.f32 %v2206_v32, %v2205_v43  ;;  %v7973_v38 = vld [vmem:[#allocation19_spill] sm:$0xff]  ;;  %v7974_v32 = vld [vmem:[#allocation20_spill] sm:$0xff] }
 0x6c3   :  { %5837 = vtanh.f32 %v2358_v27  ;;  %v7976_v27 = vld [vmem:[#allocation22_spill] sm:$0xff] }
 0x6c4   :  { %2433 = vmatprep.mubr.f32.mxu0 %v7085_v55  ;;  %2504 = vmatprep.mubr.f32.mxu1 %v7085_v55 }
 0x6cc   :  { %v5836_v34 = vpop.eup %5835 }
 0x6cd   :  { %v2355_v61 = vmul.f32 0.5, %v5836_v34  ;;  %v5838_v46 = vpop.eup %5837  ;;  %v7977_v34 = vld [vmem:[#allocation23_spill] sm:$0xff] }
 0x6ce   :  { %v2360_v36 = vmul.f32 0.5, %v5838_v46  ;;  %v7982_v46 = vld [vmem:[#allocation28_spill] sm:$0xff] }
 0x6cf   :  { %v2356_v57 = vadd.f32 0.5, %v2355_v61  ;;  %v7978_v61 = vld [vmem:[#allocation24_spill] sm:$0xff] }
 0x6d0   :  { %v2361_v59 = vadd.f32 0.5, %v2360_v36  ;;  %v7985_v36 = vld [vmem:[#allocation31_spill] sm:$0xff] }
 0x6d1   :  { %v2362_v4 = vmul.f32 %v2356_v57, %v2349_v18  ;;  %v7979_v18 = vld [vmem:[#allocation25_spill] sm:$0xff]  ;;  %v7980_v57 = vld [vmem:[#allocation26_spill] sm:$0xff] }
 0x6d2   :  { %v2365_v43 = vsub.f32 1.0, %v2361_v59  ;;  %v2367_v29 = vmul.f32 %v2361_v59, %v6973_v7  ;;  %v7971_v7 = vld [vmem:[#allocation17_spill] sm:$0xff]  ;;  %v7986_v59 = vld [vmem:[#allocation32_spill] sm:$0xff] }
 0x6d3   :  { %v2363_v44 = vadd.f32 %v2362_v4, %v7970_v24  ;;  %v7981_v4 = vld [vmem:[#allocation27_spill] sm:$0xff]  ;;  %v7983_v24 = vld [vmem:[#allocation29_spill] sm:$0xff] }
 0x6d5   :  { %5839 = vtanh.f32 %v2363_v44  ;;  %v7984_v44 = vld [vmem:[#allocation30_spill] sm:$0xff] }
 0x6df   :  { %v5840_v47 = vpop.eup %5839 }
 0x6e0   :  { %v2366_v50 = vmul.f32 %v5840_v47, %v2365_v43  ;;  %v7987_v43 = vld [vmem:[#allocation33_spill] sm:$0xff]  ;;  %v7988_v47 = vld [vmem:[#allocation34_spill] sm:$0xff] }
 0x6e2   :  { %v7092_v45 = vadd.f32 %v2367_v29, %v2366_v50  ;;  %v7989_v50 = vld [vmem:[#allocation35_spill] sm:$0xff]  ;;  %v7990_v29 = vld [vmem:[#allocation36_spill] sm:$0xff] }
 0x6e4   :  { %2434 = vmatmul.mubr.f32.vlgmr.msra.gmra.mrb[26].mxu0 %v7092_v45  ;;  %2505 = vmatmul.mubr.f32.vlgmr.msra.gmra.mrb[30].mxu1 %v7092_v45 }
 0x6e5   :  { %5314 = vmatpush1.bf16.msra.mxu0 %v6110_v9  ;;  %5345 = vmatpush3.bf16.msra.mxu1 %v6144_v35 }
 0x6e6   :  { %5316 = vmatprep.subr.bf16.mxu0 %v6117_v14  ;;  %5346 = vmatprep.subr.bf16.mxu1 %v7679_v2 }
 0x6e7   :  { %2593 = vmatprep.mubr.f32.mxu0 %v7692_v23  ;;  %4133 = vmatprep.mubr.msk.f32.mxu1 %vm5979_vm2, %v7692_v23 }
 0x6e9   :  { %5318 = vmatpush1.bf16.msra.mxu0 %v6120_v17  ;;  %5348 = vmatpush3.bf16.msra.mxu1 %v6155_v41 }
 0x6ea   :  { %5320 = vmatprep.subr.bf16.mxu0 %v6123_v19  ;;  %5349 = vmatprep.subr.bf16.mxu1 %v7679_v2 }
 0x6ed   :  { %5322 = vmatpush1.bf16.msra.mxu0 %v6135_v26  ;;  %5351 = vmatpush3.bf16.msra.mxu1 %v6175_v52 }
 0x6ee   :  { %5324 = vmatprep.subr.bf16.mxu0 %v6139_v28  ;;  %5352 = vmatprep.subr.bf16.mxu1 %v7679_v2 }
 0x6f1   :  { %5326 = vmatpush1.bf16.msra.mxu0 %v6152_v39  ;;  %5354 = vmatpush3.bf16.msra.mxu1 %v6192_v63 }
 0x6f2   :  { %5328 = vmatprep.subr.bf16.mxu0 %v6158_v42  ;;  %5355 = vmatprep.subr.bf16.mxu1 %v7679_v2 }
 0x6f5   :  { %5330 = vmatpush1.bf16.msra.mxu0 %v6169_v49  ;;  %5357 = vmatpush3.bf16.msra.mxu1 %v6210_v11 }
 0x6f6   :  { %5332 = vmatprep.subr.bf16.mxu0 %v6178_v53  ;;  %5358 = vmatprep.subr.bf16.mxu1 %v7679_v2 }
 0x6f9   :  { %5334 = vmatpush1.bf16.msra.mxu0 %v6189_v60  ;;  %5360 = vmatpush3.bf16.msra.mxu1 %v6222_v22 }
 0x6fa   :  { %5336 = vmatprep.subr.bf16.mxu0 %v6195_v0  ;;  %5361 = vmatprep.subr.bf16.mxu1 %v7679_v2 }
 0x6fd   :  { %5338 = vmatpush1.bf16.msra.mxu0 %v6207_v8  ;;  %5363 = vmatpush3.bf16.msra.mxu1 %v6232_v33 }
 0x6fe   :  { %5340 = vmatprep.subr.bf16.mxu0 %v6213_v12  ;;  %5364 = vmatprep.subr.bf16.mxu1 %v7679_v2 }
 0x701   :  { %5342 = vmatpush1.bf16.msra.mxu0 %v6219_v21  ;;  %5366 = vmatpush3.bf16.msra.mxu1 %v6242_v48 }
 0x702   :  { %5368 = vmatprep.subr.bf16.mxu0 %v6226_v25  ;;  %5432 = vmatprep.subr.bf16.mxu1 %v6248_v54 }
 0x704   :  { %2594 = vmatmul.mubr.f32.vlgmr.msra.gmra.mrb[12].mxu0 %v7092_v45  ;;  %4134 = vmatmul.mubr.f32.vlgmr.msra.gmra.mrb[32].mxu1 %v7092_v45 }
 0x705   :  { %5370 = vmatpush1.bf16.msra.mxu0 %v6234_v37  ;;  %5434 = vmatpush1.bf16.msra.mxu1 %v6255_v62 }
 0x706   :  { %5372 = vmatprep.subr.bf16.mxu0 %v6238_v40  ;;  %5436 = vmatprep.subr.bf16.mxu1 %v6261_v3 }
 0x709   :  { %5374 = vmatpush1.bf16.msra.mxu0 %v6245_v51  ;;  %5438 = vmatpush1.bf16.msra.mxu1 %v6266_v13 }
 0x70a   :  { %5376 = vmatprep.subr.bf16.mxu0 %v6251_v56  ;;  %5440 = vmatprep.subr.bf16.mxu1 %v6270_v15 }
 0x70d   :  { %5378 = vmatpush1.bf16.msra.mxu0 %v6258_v1  ;;  %5442 = vmatpush1.bf16.msra.mxu1 %v6274_v20 }
 0x70e   :  { %5380 = vmatprep.subr.bf16.mxu0 %v7971_v7  ;;  %5444 = vmatprep.subr.bf16.mxu1 %v7972_v6 }
 0x711   :  { %5382 = vmatpush1.bf16.msra.mxu0 %v7973_v38  ;;  %5446 = vmatpush1.bf16.msra.mxu1 %v7974_v32 }
 0x712   :  { %5384 = vmatprep.subr.bf16.mxu0 %v7975_v10  ;;  %5448 = vmatprep.subr.bf16.mxu1 %v7976_v27 }
 0x715   :  { %5386 = vmatpush1.bf16.msra.mxu0 %v7977_v34  ;;  %5450 = vmatpush1.bf16.msra.mxu1 %v7978_v61 }
 0x716   :  { %5388 = vmatprep.subr.bf16.mxu0 %v7979_v18  ;;  %5452 = vmatprep.subr.bf16.mxu1 %v7980_v57  ;;  %v7991_v57 = vld [vmem:[#allocation37_spill] sm:$0xff] }
 0x719   :  { %5390 = vmatpush1.bf16.msra.mxu0 %v7981_v4  ;;  %5454 = vmatpush1.bf16.msra.mxu1 %v7982_v46  ;;  %v7992_v4 = vld [vmem:[#allocation38_spill] sm:$0xff]  ;;  %v7993_v46 = vld [vmem:[#allocation39_spill] sm:$0xff] }
 0x71a   :  { %5392 = vmatprep.subr.bf16.mxu0 %v7983_v24  ;;  %5456 = vmatprep.subr.bf16.mxu1 %v7984_v44  ;;  %v7994_v24 = vld [vmem:[#allocation40_spill] sm:$0xff]  ;;  %v7995_v44 = vld [vmem:[#allocation41_spill] sm:$0xff] }
 0x71d   :  { %5394 = vmatpush1.bf16.msra.mxu0 %v7985_v36  ;;  %5458 = vmatpush1.bf16.msra.mxu1 %v7986_v59  ;;  %v7996_v36 = vld [vmem:[#allocation42_spill] sm:$0xff]  ;;  %v7997_v59 = vld [vmem:[#allocation43_spill] sm:$0xff] }
 0x71e   :  { %5396 = vmatprep.subr.bf16.mxu0 %v7987_v43  ;;  %5460 = vmatprep.subr.bf16.mxu1 %v7988_v47  ;;  %v7998_v43 = vld [vmem:[#allocation44_spill] sm:$0xff]  ;;  %v7999_v47 = vld [vmem:[#allocation45_spill] sm:$0xff] }
 0x721   :  { %5398 = vmatpush1.bf16.msra.mxu0 %v7989_v50  ;;  %5462 = vmatpush1.bf16.msra.mxu1 %v7990_v29  ;;  %v8000_v50 = vld [vmem:[#allocation46_spill] sm:$0xff]  ;;  %v8001_v29 = vld [vmem:[#allocation47_spill] sm:$0xff] }
 0x722   :  { %5400 = vmatprep.subr.bf16.mxu0 %v7991_v57  ;;  %5464 = vmatprep.subr.bf16.mxu1 %v7992_v4  ;;  %v8002_v57 = vld [vmem:[#allocation48_spill] sm:$0xff]  ;;  %v8003_v4 = vld [vmem:[#allocation49_spill] sm:$0xff] }
 0x725   :  { %5402 = vmatpush1.bf16.msra.mxu0 %v7993_v46  ;;  %5466 = vmatpush1.bf16.msra.mxu1 %v7994_v24  ;;  %v8004_v46 = vld [vmem:[#allocation50_spill] sm:$0xff]  ;;  %v8005_v24 = vld [vmem:[#allocation51_spill] sm:$0xff] }
 0x726   :  { %5404 = vmatprep.subr.bf16.mxu0 %v7995_v44  ;;  %5468 = vmatprep.subr.bf16.mxu1 %v7996_v36  ;;  %v8006_v44 = vld [vmem:[#allocation52_spill] sm:$0xff]  ;;  %v8007_v36 = vld [vmem:[#allocation53_spill] sm:$0xff] }
 0x729   :  { %5406 = vmatpush1.bf16.msra.mxu0 %v7997_v59  ;;  %5470 = vmatpush1.bf16.msra.mxu1 %v7998_v43  ;;  %v8008_v59 = vld [vmem:[#allocation54_spill] sm:$0xff]  ;;  %v8009_v43 = vld [vmem:[#allocation55_spill] sm:$0xff] }
 0x72a   :  { %5408 = vmatprep.subr.bf16.mxu0 %v7999_v47  ;;  %5472 = vmatprep.subr.bf16.mxu1 %v8000_v50  ;;  %v8010_v47 = vld [vmem:[#allocation56_spill] sm:$0xff]  ;;  %v8011_v50 = vld [vmem:[#allocation57_spill] sm:$0xff] }
 0x72d   :  { %5410 = vmatpush1.bf16.msra.mxu0 %v8001_v29  ;;  %5474 = vmatpush1.bf16.msra.mxu1 %v8002_v57  ;;  %v8012_v29 = vld [vmem:[#allocation58_spill] sm:$0xff]  ;;  %v8013_v57 = vld [vmem:[#allocation59_spill] sm:$0xff] }
 0x72e   :  { %5412 = vmatprep.subr.bf16.mxu0 %v8003_v4  ;;  %5476 = vmatprep.subr.bf16.mxu1 %v8004_v46  ;;  %v8014_v4 = vld [vmem:[#allocation60_spill] sm:$0xff]  ;;  %v8015_v46 = vld [vmem:[#allocation61_spill] sm:$0xff] }
 0x731   :  { %5414 = vmatpush1.bf16.msra.mxu0 %v8005_v24  ;;  %5478 = vmatpush1.bf16.msra.mxu1 %v8006_v44  ;;  %v8016_v24 = vld [vmem:[#allocation62_spill] sm:$0xff]  ;;  %v8017_v44 = vld [vmem:[#allocation63_spill] sm:$0xff] }
 0x732   :  { %5416 = vmatprep.subr.bf16.mxu0 %v8007_v36  ;;  %5480 = vmatprep.subr.bf16.mxu1 %v8008_v59  ;;  %v8018_v36 = vld [vmem:[#allocation64_spill] sm:$0xff]  ;;  %v8019_v59 = vld [vmem:[#allocation65_spill] sm:$0xff] }
 0x735   :  { %5418 = vmatpush1.bf16.msra.mxu0 %v8009_v43  ;;  %5482 = vmatpush1.bf16.msra.mxu1 %v8010_v47  ;;  %v8020_v43 = vld [vmem:[#allocation66_spill] sm:$0xff]  ;;  %v8021_v47 = vld [vmem:[#allocation67_spill] sm:$0xff] }
 0x736   :  { %5420 = vmatprep.subr.bf16.mxu0 %v8011_v50  ;;  %5484 = vmatprep.subr.bf16.mxu1 %v8012_v29  ;;  %v8022_v50 = vld [vmem:[#allocation68_spill] sm:$0xff] }
 0x737   :  { %v8023_v29 = vld [vmem:[#allocation16_spill] sm:$0xff] }
 0x739   :  { %5422 = vmatpush1.bf16.msra.mxu0 %v8013_v57  ;;  %5486 = vmatpush1.bf16.msra.mxu1 %v8014_v4  ;;  %v8024_v57 = vld [vmem:[#allocation76_spill] sm:$0xff] }
 0x73a   :  { %5424 = vmatprep.subr.bf16.mxu0 %v8015_v46  ;;  %5488 = vmatprep.subr.bf16.mxu1 %v8016_v24 }
 0x73d   :  { %5426 = vmatpush1.bf16.msra.mxu0 %v8017_v44  ;;  %5490 = vmatpush1.bf16.msra.mxu1 %v8018_v36  ;;  %v8025_v36 = vld [vmem:[#allocation78_spill] sm:$0xff] }
 0x73e   :  { %5428 = vmatprep.subr.bf16.mxu0 %v8019_v59  ;;  %5492 = vmatprep.subr.bf16.mxu1 %v8020_v43 }
 0x741   :  { %5430 = vmatpush1.bf16.msra.mxu0 %v8021_v47  ;;  %5494 = vmatpush1.bf16.msra.mxu1 %v8022_v50 }
 0x742   :  { %5496 = vmatprep.subr.bf16.mxu0 %v8023_v29  ;;  %5527 = vmatprep.subr.bf16.mxu1 %v7679_v2 }
 0x7b7   :  { %v2435_v4 = vpop.f32.mrb[26].mxu0  ;;  %v2506_v46 = vpop.f32.mrb[30].mxu1 }
 0x7b8   :  { %v2436_v24 = vadd.f32 %v2435_v4, %v8024_v57  ;;  %v2437_v18 = vpop.f32.mrb[27].mxu0  ;;  %v2508_v44 = vpop.f32.mrb[31].mxu1  ;;  %v2507_v29 = vadd.f32 %v2506_v46, %v6603_v5 }
 0x7b9   :  { %v2438_v34 = vadd.f32 %v2437_v18, %v8025_v36  ;;  %v2509_v50 = vadd.f32 %v2508_v44, %v7801_v58 }
 0x7ba   :  { %v2511_v61 = vmul.f32 0.5, %v2436_v24 }
 0x7bb   :  { %v2515_v59 = vmul.f32 0.5, %v2438_v34 }
 0x7bc   :  { %5841 = vtanh.f32 %v2511_v61 }
 0x7bd   :  { %5843 = vtanh.f32 %v2515_v59 }
 0x7c6   :  { %v5842_v43 = vpop.eup %5841 }
 0x7c7   :  { %v2513_v47 = vmul.f32 0.5, %v5842_v43  ;;  %v5844_v32 = vpop.eup %5843 }
 0x7c8   :  { %v2517_v4 = vmul.f32 0.5, %v5844_v32 }
 0x7c9   :  { %v2514_v27 = vadd.f32 0.5, %v2513_v47 }
 0x7ca   :  { %v2518_v57 = vadd.f32 0.5, %v2517_v4 }
 0x7cb   :  { %v2519_v10 = vmul.f32 %v2514_v27, %v2509_v50 }
 0x7cc   :  { %v2522_v7 = vsub.f32 1.0, %v2518_v57  ;;  %v2524_v44 = vmul.f32 %v2518_v57, %v7085_v55 }
 0x7cd   :  { %v2520_v38 = vadd.f32 %v2519_v10, %v2507_v29  ;;  %v8026_v29 = vld [vmem:[#allocation77_spill] sm:$0xff] }
 0x7cf   :  { %5845 = vtanh.f32 %v2520_v38 }
 0x7d7   :  { %v2595_v6 = vpop.f32.mrb[12].mxu0  ;;  %v2666_v24 = vpop.f32.mrb[32].mxu1 }
 0x7d8   :  { %v5724_v61 = vadd.f32 %v7745_v31, %v2595_v6  ;;  %v2597_v34 = vpop.f32.mrb[13].mxu0  ;;  %v4135_v18 = vpop.f32.mrb[33].mxu1  ;;  %v2667_v10 = vadd.f32 %v2666_v24, %v6480_v16  ;;  %v8063_v24 = vld [vmem:[#allocation53_spill] sm:$0xff] }
 0x7d9   :  { %v5846_v59 = vpop.eup %5845  ;;  %v5726_v46 = vadd.f32 %v7746_v30, %v2597_v34 }
 0x7da   :  { %v2671_v43 = vmul.f32 0.5, %v5724_v61  ;;  %v2523_v36 = vmul.f32 %v5846_v59, %v2522_v7 }
 0x7db   :  { %v2676_v38 = vmul.f32 0.5, %v5726_v46  ;;  %v8066_v46 = vld [vmem:[#allocation56_spill] sm:$0xff] }
 0x7dc   :  { %5847 = vtanh.f32 %v2671_v43  ;;  %v7204_v27 = vadd.f32 %v2524_v44, %v2523_v36  ;;  %v8064_v43 = vld [vmem:[#allocation54_spill] sm:$0xff]  ;;  %v8065_v44 = vld [vmem:[#allocation55_spill] sm:$0xff] }
 0x7dd   :  { %5849 = vtanh.f32 %v2676_v38  ;;  %v8067_v38 = vld [vmem:[#allocation57_spill] sm:$0xff] }
 0x7de   :  { %2751 = vmatprep.mubr.f32.mxu0 %v7204_v27  ;;  %2822 = vmatprep.mubr.f32.mxu1 %v7204_v27 }
 0x7e6   :  { %v5848_v32 = vpop.eup %5847 }
 0x7e7   :  { %v2673_v6 = vmul.f32 0.5, %v5848_v32  ;;  %v5850_v7 = vpop.eup %5849  ;;  %v8068_v32 = vld [vmem:[#allocation58_spill] sm:$0xff] }
 0x7e8   :  { %v2678_v57 = vmul.f32 0.5, %v5850_v7  ;;  %v8073_v7 = vld [vmem:[#allocation63_spill] sm:$0xff] }
 0x7e9   :  { %v2674_v47 = vadd.f32 0.5, %v2673_v6  ;;  %v8069_v6 = vld [vmem:[#allocation59_spill] sm:$0xff] }
 0x7ea   :  { %v2679_v4 = vadd.f32 0.5, %v2678_v57  ;;  %v8076_v57 = vld [vmem:[#allocation66_spill] sm:$0xff] }
 0x7eb   :  { %v2680_v50 = vmul.f32 %v2674_v47, %v2667_v10  ;;  %v8070_v10 = vld [vmem:[#allocation60_spill] sm:$0xff]  ;;  %v8071_v47 = vld [vmem:[#allocation61_spill] sm:$0xff] }
 0x7ec   :  { %v2683_v36 = vsub.f32 1.0, %v2679_v4  ;;  %v2685_v18 = vmul.f32 %v2679_v4, %v7092_v45  ;;  %v8062_v45 = vld [vmem:[#allocation52_spill] sm:$0xff]  ;;  %v8077_v4 = vld [vmem:[#allocation67_spill] sm:$0xff] }
 0x7ed   :  { %v2681_v55 = vadd.f32 %v2680_v50, %v8026_v29  ;;  %v8072_v50 = vld [vmem:[#allocation62_spill] sm:$0xff]  ;;  %v8074_v29 = vld [vmem:[#allocation64_spill] sm:$0xff] }
 0x7ef   :  { %5851 = vtanh.f32 %v2681_v55  ;;  %v8075_v55 = vld [vmem:[#allocation65_spill] sm:$0xff] }
 0x7f9   :  { %v5852_v61 = vpop.eup %5851 }
 0x7fa   :  { %v2684_v34 = vmul.f32 %v5852_v61, %v2683_v36  ;;  %v8078_v36 = vld [vmem:[#allocation68_spill] sm:$0xff] }
 0x7fc   :  { %v7211_v59 = vadd.f32 %v2685_v18, %v2684_v34  ;;  %v8079_v18 = vld [vmem:[#allocation76_spill] sm:$0xff] }
 0x7fe   :  { %2752 = vmatmul.mubr.f32.vlgmr.msra.gmra.mrb[28].mxu0 %v7211_v59  ;;  %2823 = vmatmul.mubr.f32.vlgmr.msra.gmra.mrb[34].mxu1 %v7211_v59 }
 0x7ff   :  { %5498 = vmatpush1.bf16.msra.mxu0 %v6110_v9  ;;  %5529 = vmatpush3.bf16.msra.mxu1 %v6144_v35  ;;  %v8027_v9 = vld [vmem:[#allocation17_spill] sm:$0xff]  ;;  %v8033_v35 = vld [vmem:[#allocation23_spill] sm:$0xff] }
 0x800   :  { %5500 = vmatprep.subr.bf16.mxu0 %v6117_v14  ;;  %5530 = vmatprep.subr.bf16.mxu1 %v7679_v2  ;;  %v8028_v14 = vld [vmem:[#allocation18_spill] sm:$0xff] }
 0x801   :  { %2911 = vmatprep.mubr.f32.mxu0 %v7692_v23  ;;  %4168 = vmatprep.mubr.msk.f32.mxu1 %vm5979_vm2, %v7692_v23 }
 0x803   :  { %5502 = vmatpush1.bf16.msra.mxu0 %v6120_v17  ;;  %5532 = vmatpush3.bf16.msra.mxu1 %v6155_v41  ;;  %v8029_v17 = vld [vmem:[#allocation19_spill] sm:$0xff]  ;;  %v8035_v41 = vld [vmem:[#allocation25_spill] sm:$0xff] }
 0x804   :  { %5504 = vmatprep.subr.bf16.mxu0 %v6123_v19  ;;  %5533 = vmatprep.subr.bf16.mxu1 %v7679_v2  ;;  %v8030_v19 = vld [vmem:[#allocation20_spill] sm:$0xff] }
 0x807   :  { %5506 = vmatpush1.bf16.msra.mxu0 %v6135_v26  ;;  %5535 = vmatpush3.bf16.msra.mxu1 %v6175_v52  ;;  %v8031_v26 = vld [vmem:[#allocation21_spill] sm:$0xff]  ;;  %v8038_v52 = vld [vmem:[#allocation28_spill] sm:$0xff] }
 0x808   :  { %5508 = vmatprep.subr.bf16.mxu0 %v6139_v28  ;;  %5536 = vmatprep.subr.bf16.mxu1 %v7679_v2  ;;  %v8032_v28 = vld [vmem:[#allocation22_spill] sm:$0xff] }
 0x80b   :  { %5510 = vmatpush1.bf16.msra.mxu0 %v6152_v39  ;;  %5538 = vmatpush3.bf16.msra.mxu1 %v6192_v63  ;;  %v8034_v39 = vld [vmem:[#allocation24_spill] sm:$0xff]  ;;  %v8041_v63 = vld [vmem:[#allocation31_spill] sm:$0xff] }
 0x80c   :  { %5512 = vmatprep.subr.bf16.mxu0 %v6158_v42  ;;  %5539 = vmatprep.subr.bf16.mxu1 %v7679_v2  ;;  %v8036_v42 = vld [vmem:[#allocation26_spill] sm:$0xff] }
 0x80f   :  { %5514 = vmatpush1.bf16.msra.mxu0 %v6169_v49  ;;  %5541 = vmatpush3.bf16.msra.mxu1 %v6210_v11  ;;  %v8037_v49 = vld [vmem:[#allocation27_spill] sm:$0xff]  ;;  %v8044_v11 = vld [vmem:[#allocation34_spill] sm:$0xff] }
 0x810   :  { %5516 = vmatprep.subr.bf16.mxu0 %v6178_v53  ;;  %5542 = vmatprep.subr.bf16.mxu1 %v7679_v2  ;;  %v8039_v53 = vld [vmem:[#allocation29_spill] sm:$0xff] }
 0x813   :  { %5518 = vmatpush1.bf16.msra.mxu0 %v6189_v60  ;;  %5544 = vmatpush3.bf16.msra.mxu1 %v6222_v22  ;;  %v8040_v60 = vld [vmem:[#allocation30_spill] sm:$0xff]  ;;  %v8047_v22 = vld [vmem:[#allocation37_spill] sm:$0xff] }
 0x814   :  { %5520 = vmatprep.subr.bf16.mxu0 %v6195_v0  ;;  %5545 = vmatprep.subr.bf16.mxu1 %v7679_v2  ;;  %v8042_v0 = vld [vmem:[#allocation32_spill] sm:$0xff] }
 0x817   :  { %5522 = vmatpush1.bf16.msra.mxu0 %v6207_v8  ;;  %5547 = vmatpush3.bf16.msra.mxu1 %v6232_v33  ;;  %v8043_v8 = vld [vmem:[#allocation33_spill] sm:$0xff]  ;;  %v8049_v33 = vld [vmem:[#allocation39_spill] sm:$0xff] }
 0x818   :  { %5524 = vmatprep.subr.bf16.mxu0 %v6213_v12  ;;  %5548 = vmatprep.subr.bf16.mxu1 %v7679_v2  ;;  %v8045_v12 = vld [vmem:[#allocation35_spill] sm:$0xff] }
 0x81b   :  { %5526 = vmatpush1.bf16.msra.mxu0 %v6219_v21  ;;  %5550 = vmatpush3.bf16.msra.mxu1 %v6242_v48  ;;  %v8046_v21 = vld [vmem:[#allocation36_spill] sm:$0xff]  ;;  %v8052_v48 = vld [vmem:[#allocation42_spill] sm:$0xff] }
 0x81c   :  { %5552 = vmatprep.subr.bf16.mxu0 %v6226_v25  ;;  %5616 = vmatprep.subr.bf16.mxu1 %v6248_v54  ;;  %v8048_v25 = vld [vmem:[#allocation38_spill] sm:$0xff]  ;;  %v8054_v54 = vld [vmem:[#allocation44_spill] sm:$0xff] }
 0x81e   :  { %2912 = vmatmul.mubr.f32.vlgmr.msra.gmra.mrb[14].mxu0 %v7211_v59  ;;  %4169 = vmatmul.mubr.f32.vlgmr.msra.gmra.mrb[36].mxu1 %v7211_v59 }
 0x81f   :  { %5554 = vmatpush1.bf16.msra.mxu0 %v6234_v37  ;;  %5618 = vmatpush1.bf16.msra.mxu1 %v6255_v62  ;;  %v8050_v37 = vld [vmem:[#allocation40_spill] sm:$0xff]  ;;  %v8056_v62 = vld [vmem:[#allocation46_spill] sm:$0xff] }
 0x820   :  { %5556 = vmatprep.subr.bf16.mxu0 %v6238_v40  ;;  %5620 = vmatprep.subr.bf16.mxu1 %v6261_v3  ;;  %v8051_v40 = vld [vmem:[#allocation41_spill] sm:$0xff]  ;;  %v8058_v3 = vld [vmem:[#allocation48_spill] sm:$0xff] }
 0x823   :  { %5558 = vmatpush1.bf16.msra.mxu0 %v6245_v51  ;;  %5622 = vmatpush1.bf16.msra.mxu1 %v6266_v13  ;;  %v8053_v51 = vld [vmem:[#allocation43_spill] sm:$0xff]  ;;  %v8059_v13 = vld [vmem:[#allocation49_spill] sm:$0xff] }
 0x824   :  { %5560 = vmatprep.subr.bf16.mxu0 %v6251_v56  ;;  %5624 = vmatprep.subr.bf16.mxu1 %v6270_v15  ;;  %v8055_v56 = vld [vmem:[#allocation45_spill] sm:$0xff]  ;;  %v8060_v15 = vld [vmem:[#allocation50_spill] sm:$0xff] }
 0x827   :  { %5562 = vmatpush1.bf16.msra.mxu0 %v6258_v1  ;;  %5626 = vmatpush1.bf16.msra.mxu1 %v6274_v20  ;;  %v8057_v1 = vld [vmem:[#allocation47_spill] sm:$0xff] }
 0x828   :  { %5564 = vmatprep.subr.bf16.mxu0 %v8027_v9  ;;  %5628 = vmatprep.subr.bf16.mxu1 %v8028_v14  ;;  %v8061_v20 = vld [vmem:[#allocation51_spill] sm:$0xff] }
 0x82b   :  { %5566 = vmatpush1.bf16.msra.mxu0 %v8029_v17  ;;  %5630 = vmatpush1.bf16.msra.mxu1 %v8030_v19 }
 0x82c   :  { %5568 = vmatprep.subr.bf16.mxu0 %v8031_v26  ;;  %5632 = vmatprep.subr.bf16.mxu1 %v8032_v28  ;;  %v8080_v26 = vld [vmem:[#allocation78_spill] sm:$0xff] }
 0x82f   :  { %5570 = vmatpush1.bf16.msra.mxu0 %v8033_v35  ;;  %5634 = vmatpush1.bf16.msra.mxu1 %v8034_v39 }
 0x830   :  { %5572 = vmatprep.subr.bf16.mxu0 %v8035_v41  ;;  %5636 = vmatprep.subr.bf16.mxu1 %v8036_v42 }
 0x833   :  { %5574 = vmatpush1.bf16.msra.mxu0 %v8037_v49  ;;  %5638 = vmatpush1.bf16.msra.mxu1 %v8038_v52 }
 0x834   :  { %5576 = vmatprep.subr.bf16.mxu0 %v8039_v53  ;;  %5640 = vmatprep.subr.bf16.mxu1 %v8040_v60 }
 0x837   :  { %5578 = vmatpush1.bf16.msra.mxu0 %v8041_v63  ;;  %5642 = vmatpush1.bf16.msra.mxu1 %v8042_v0 }
 0x838   :  { %5580 = vmatprep.subr.bf16.mxu0 %v8043_v8  ;;  %5644 = vmatprep.subr.bf16.mxu1 %v8044_v11 }
 0x83b   :  { %5582 = vmatpush1.bf16.msra.mxu0 %v8045_v12  ;;  %5646 = vmatpush1.bf16.msra.mxu1 %v8046_v21 }
 0x83c   :  { %5584 = vmatprep.subr.bf16.mxu0 %v8047_v22  ;;  %5648 = vmatprep.subr.bf16.mxu1 %v8048_v25 }
 0x83f   :  { %5586 = vmatpush1.bf16.msra.mxu0 %v8049_v33  ;;  %5650 = vmatpush1.bf16.msra.mxu1 %v8050_v37 }
 0x840   :  { %5588 = vmatprep.subr.bf16.mxu0 %v8051_v40  ;;  %5652 = vmatprep.subr.bf16.mxu1 %v8052_v48 }
 0x843   :  { %5590 = vmatpush1.bf16.msra.mxu0 %v8053_v51  ;;  %5654 = vmatpush1.bf16.msra.mxu1 %v8054_v54 }
 0x844   :  { %5592 = vmatprep.subr.bf16.mxu0 %v8055_v56  ;;  %5656 = vmatprep.subr.bf16.mxu1 %v8056_v62 }
 0x847   :  { %5594 = vmatpush1.bf16.msra.mxu0 %v8057_v1  ;;  %5658 = vmatpush1.bf16.msra.mxu1 %v8058_v3 }
 0x848   :  { %5596 = vmatprep.subr.bf16.mxu0 %v8059_v13  ;;  %5660 = vmatprep.subr.bf16.mxu1 %v8060_v15 }
 0x84b   :  { %5598 = vmatpush1.bf16.msra.mxu0 %v8061_v20  ;;  %5662 = vmatpush1.bf16.msra.mxu1 %v8062_v45  ;;  %v8081_v45 = vld [vmem:[#allocation75_spill] sm:$0xff] }
 0x84c   :  { %5600 = vmatprep.subr.bf16.mxu0 %v8063_v24  ;;  %5664 = vmatprep.subr.bf16.mxu1 %v8064_v43 }
 0x84f   :  { %5602 = vmatpush1.bf16.msra.mxu0 %v8065_v44  ;;  %5666 = vmatpush1.bf16.msra.mxu1 %v8066_v46 }
 0x850   :  { %5604 = vmatprep.subr.bf16.mxu0 %v8067_v38  ;;  %5668 = vmatprep.subr.bf16.mxu1 %v8068_v32 }
 0x853   :  { %5606 = vmatpush1.bf16.msra.mxu0 %v8069_v6  ;;  %5670 = vmatpush1.bf16.msra.mxu1 %v8070_v10 }
 0x854   :  { %5608 = vmatprep.subr.bf16.mxu0 %v8071_v47  ;;  %5672 = vmatprep.subr.bf16.mxu1 %v8072_v50 }
 0x857   :  { %5610 = vmatpush1.bf16.msra.mxu0 %v8073_v7  ;;  %5674 = vmatpush1.bf16.msra.mxu1 %v8074_v29 }
 0x858   :  { %5612 = vmatprep.subr.bf16.mxu0 %v8075_v55  ;;  %5676 = vmatprep.subr.bf16.mxu1 %v8076_v57 }
 0x85b   :  { %5614 = vmatpush1.bf16.msra.mxu0 %v8077_v4  ;;  %5678 = vmatpush1.bf16.msra.mxu1 %v8078_v36 }
 0x85c   :  { %5679 = vmatprep.subr.bf16.mxu0 %v7679_v2  ;;  %5693 = vmatprep.subr.bf16.mxu1 %v7679_v2 }
 0x8d1   :  { %v2753_v61 = vpop.f32.mrb[28].mxu0  ;;  %v2824_v34 = vpop.f32.mrb[34].mxu1 }
 0x8d2   :  { %v2754_v9 = vadd.f32 %v2753_v61, %v8079_v18  ;;  %v2755_v14 = vpop.f32.mrb[29].mxu0  ;;  %v2826_v17 = vpop.f32.mrb[35].mxu1  ;;  %v2825_v52 = vadd.f32 %v2824_v34, %v6603_v5 }
 0x8d3   :  { %v2756_v28 = vadd.f32 %v2755_v14, %v8080_v26  ;;  %v2827_v42 = vadd.f32 %v2826_v17, %v7801_v58 }
 0x8d4   :  { %v2829_v19 = vmul.f32 0.5, %v2754_v9 }
 0x8d5   :  { %v2833_v35 = vmul.f32 0.5, %v2756_v28 }
 0x8d6   :  { %5853 = vtanh.f32 %v2829_v19 }
 0x8d7   :  { %5855 = vtanh.f32 %v2833_v35 }
 0x8e0   :  { %v5854_v39 = vpop.eup %5853 }
 0x8e1   :  { %v2831_v41 = vmul.f32 0.5, %v5854_v39  ;;  %v5856_v60 = vpop.eup %5855 }
 0x8e2   :  { %v2835_v0 = vmul.f32 0.5, %v5856_v60 }
 0x8e3   :  { %v2832_v49 = vadd.f32 0.5, %v2831_v41 }
 0x8e4   :  { %v2836_v8 = vadd.f32 0.5, %v2835_v0 }
 0x8e5   :  { %v2837_v53 = vmul.f32 %v2832_v49, %v2827_v42 }
 0x8e6   :  { %v2840_v21 = vsub.f32 1.0, %v2836_v8  ;;  %v2842_v51 = vmul.f32 %v2836_v8, %v7204_v27 }
 0x8e7   :  { %v2838_v63 = vadd.f32 %v2837_v53, %v2825_v52 }
 0x8e9   :  { %5857 = vtanh.f32 %v2838_v63 }
 0x8f1   :  { %v2913_v11 = vpop.f32.mrb[14].mxu0  ;;  %v2984_v12 = vpop.f32.mrb[36].mxu1 }
 0x8f2   :  { %v5728_v22 = vadd.f32 %v7745_v31, %v2913_v11  ;;  %v2915_v25 = vpop.f32.mrb[15].mxu0  ;;  %v4170_v33 = vpop.f32.mrb[37].mxu1  ;;  %v2985_v13 = vadd.f32 %v2984_v12, %v6480_v16  ;;  %v3203_v11 = vld [vmem:[%s7494_s7] sm:$0xff]  ;;  %s5990_s7 = smov 104  }
 0x8f3   :  { %v5858_v37 = vpop.eup %5857  ;;  %v5730_v54 = vadd.f32 %v7746_v30, %v2915_v25 }
 0x8f4   :  { %v2989_v40 = vmul.f32 0.5, %v5728_v22  ;;  %v2841_v48 = vmul.f32 %v5858_v37, %v2840_v21 }
 0x8f5   :  { %v2994_v62 = vmul.f32 0.5, %v5730_v54 }
 0x8f6   :  { %5859 = vtanh.f32 %v2989_v40  ;;  %v2843_v56 = vadd.f32 %v2842_v51, %v2841_v48 }
 0x8f7   :  { %5861 = vtanh.f32 %v2994_v62 }
 0x8f8   :  { %3069 = vmatprep.mubr.f32.mxu0 %v2843_v56  ;;  %3140 = vmatprep.mubr.f32.mxu1 %v2843_v56 }
 0x900   :  { %v5860_v1 = vpop.eup %5859 }
 0x901   :  { %v2991_v3 = vmul.f32 0.5, %v5860_v1  ;;  %v5862_v20 = vpop.eup %5861 }
 0x902   :  { %v2996_v43 = vmul.f32 0.5, %v5862_v20 }
 0x903   :  { %v2992_v31 = vadd.f32 0.5, %v2991_v3 }
 0x904   :  { %v2997_v27 = vadd.f32 0.5, %v2996_v43 }
 0x905   :  { %v2998_v15 = vmul.f32 %v2992_v31, %v2985_v13  ;;  %v5982_v13 = vmov 35   ;;  %v5983_v31 = vmov 33  }
 0x906   :  { %v3001_v44 = vsub.f32 1.0, %v2997_v27  ;;  %v3003_v38 = vmul.f32 %v2997_v27, %v7211_v59  ;;  %5770 = vset.pattern.permute.xlu1 %v5982_v13  ;;  %5771 = vset.pattern.permute.xlu0 %v5983_v31 }
 0x907   :  { %v2999_v24 = vadd.f32 %v2998_v15, %v8081_v45 }
 0x909   :  { %5863 = vtanh.f32 %v2999_v24 }
 0x913   :  { %v5864_v30 = vpop.eup %5863 }
 0x914   :  { %v3002_v46 = vmul.f32 %v5864_v30, %v3001_v44  ;;  %v3708_v44 = vld [vmem:[%s7497_s10 + $0x1] ss:$0 sm:$0xff]  ;;  %v3710_v30 = vld [vmem:[%s7497_s10 + $0x2] ss:$0 sm:$0xff] }
 0x916   :  { %v3004_v32 = vadd.f32 %v3003_v38, %v3002_v46 }
 0x918   :  { %3070 = vmatmul.mubr.f32.vlgmr.msra.gmra.mrb[30].mxu0 %v3004_v32  ;;  %3141 = vmatmul.mubr.f32.vlgmr.msra.gmra.mrb[38].mxu1 %v3004_v32 }
 0x919   :  { %4181 = vmatprep.mubr.msk.f32.mxu0 %vm5979_vm2, %v7692_v23  ;;  %4190 = vmatprep.mubr.msk.f32.mxu1 %vm5979_vm2, %v7692_v23 }
 0x9eb   :  { %v3071_v16 = vpop.f32.mrb[30].mxu0  ;;  %v3142_v6 = vpop.f32.mrb[38].mxu1 }
 0x9ec   :  { %v3072_v10 = vadd.f32 %v3071_v16, %v8079_v18  ;;  %v3073_v47 = vpop.f32.mrb[31].mxu0  ;;  %v3144_v50 = vpop.f32.mrb[39].mxu1  ;;  %v3143_v61 = vadd.f32 %v3142_v6, %v6603_v5  ;;  %v3712_v16 = vld [vmem:[%s7497_s10 + $0x3] ss:$0 sm:$0xff]  ;;  %v3714_v6 = vld [vmem:[%s7497_s10 + $0x4] ss:$0 sm:$0xff] }
 0x9ed   :  { %v3074_v29 = vadd.f32 %v3073_v47, %v8080_v26  ;;  %v3145_v4 = vadd.f32 %v3144_v50, %v7801_v58 }
 0x9ee   :  { %v3147_v7 = vmul.f32 0.5, %v3072_v10 }
 0x9ef   :  { %v3151_v59 = vmul.f32 0.5, %v3074_v29  ;;  %v8082_v29 = vlaneseq }
 0x9f0   :  { %5865 = vtanh.f32 %v3147_v7 }
 0x9f1   :  { %5867 = vtanh.f32 %v3151_v59  ;;  %v7404_v59 = vand.u32 127, %v8082_v29 }
 0x9fa   :  { %v5866_v55 = vpop.eup %5865 }
 0x9fb   :  { %v3149_v57 = vmul.f32 0.5, %v5866_v55  ;;  %v5868_v9 = vpop.eup %5867  ;;  %v3461_v55 = vstv %s3459_s27 }
 0x9fc   :  { %v3153_v18 = vmul.f32 0.5, %v5868_v9  ;;  %v7423_v9 = vld [vmem:[%s7495_s8 + $0x10] sm:$0xff] }
 0x9fd   :  { %v3150_v36 = vadd.f32 0.5, %v3149_v57  ;;  %v7414_v57 = vld [vmem:[%s7495_s8 + $0x8] sm:$0xff] }
 0x9fe   :  { %v3154_v17 = vadd.f32 0.5, %v3153_v18 }
 0x9ff   :  { %v3155_v34 = vmul.f32 %v3150_v36, %v3145_v4  ;;  %v3466_v4 = vstv %s3701_s28 }
 0xa00   :  { %v3158_v19 = vsub.f32 1.0, %v3154_v17  ;;  %v3160_v35 = vmul.f32 %v3154_v17, %v2843_v56 }
 0xa01   :  { %v3156_v14 = vadd.f32 %v3155_v34, %v3143_v61  ;;  %v3467_v61 = vmul.f32 %v7414_v57, %v3466_v4  ;;  %v8083_v34 = vld [vmem:[#allocation69_spill] sm:$0xff] }
 0xa02   :  { %vm3326_vm5 = vcmp.eq.s32.totalorder %v8083_v34, %v7404_v59 }
 0xa03   :  { %5869 = vtanh.f32 %v3156_v14  ;;  %v3473_v14 = vstv %s3703_s5  ;;  %v3697_v18 = vsel %vm3326_vm5, 1.0, %v7692_v23 }
 0xa0d   :  { %v5870_v28 = vpop.eup %5869 }
 0xa0e   :  { %v3159_v26 = vmul.f32 %v5870_v28, %v3158_v19  ;;  %v3474_v19 = vmul.f32 %v7423_v9, %v3473_v14  ;;  %v7433_v28 = vld [vmem:[%s7495_s8 + $0x18] sm:$0xff] }
 0xa10   :  { %v7334_v39 = vadd.f32 %v3160_v35, %v3159_v26  ;;  %v3480_v35 = vstv %s3705_s29 }
 0xa12   :  { %3658 = vst [vmem:[%s7500_s13] sm:$0xff] %v7334_v39  ;;  %3163 = vrot.lane.b32.xlu0 %v7334_v39, %s5980_s2  ;;  %v3169_v5 = vmul.f32 %v7334_v39, %v7334_v39  ;;  %v3542_v38 = vmul.f32 %v3708_v44, %v7334_v39  ;;  %v3551_v32 = vmul.f32 %v3710_v30, %v7334_v39 }
 0xa13   :  { %v3560_v47 = vmul.f32 %v3712_v16, %v7334_v39  ;;  %v3569_v50 = vmul.f32 %v3714_v6, %v7334_v39  ;;  %v3499_v6 = vstv %s3706_s17 }
 0xa14   :  { %3175 = vrot.lane.b32.xlu1 %v3169_v5, %s5980_s2  ;;  %v5688_v10 = vpack.c.bf16 %v3551_v32, %v3542_v38 }
 0xa15   :  { %v5691_v7 = vpack.c.bf16 %v3569_v50, %v3560_v47 }
 0xa16   :  { %3166 = vrot.lane.b32.xlu0 %v7334_v39, %s5981_s16  ;;  %s3699_s16 = sld [smem:[#allocation10 + $0x2]] }
 0xa1c   :  { %v3427_v16 = vstv %s3699_s16 }
 0xa84   :  { %v3164_v58 = vpop.permute.xlu0 %3163 }
 0xa85   :  { %v3170_v41 = vmul.f32 %v3164_v58, %v3164_v58 }
 0xa86   :  { %v3176_v52 = vpop.permute.xlu1 %3175 }
 0xa87   :  { %3177 = vrot.lane.b32.xlu1 %v3170_v41, %s5980_s2  ;;  %v3185_v53 = vsel %vm3184_vm3, %v3176_v52, 0.0  ;;  %v3481_v52 = vmul.f32 %v7433_v28, %v3480_v35 }
 0xa88   :  { %v3167_v42 = vpop.permute.xlu0 %3166 }
 0xa89   :  { %v3171_v49 = vmul.f32 %v3167_v42, %v3167_v42 }
 0xa8b   :  { %3179 = vrot.lane.b32.xlu0 %v3171_v49, %s5980_s2 }
 0xaab   :  { %3186 = vadd.xlane.f32.xlu1 %v3185_v53 }
 0xabc   :  { %3204 = vrot.lane.b32.xlu1 %v7334_v39, %s5974_s26 }
 0xaf9   :  { %v3178_v60 = vpop.permute.xlu1 %3177 }
 0xafa   :  { %v3188_v63 = vsel %vm3184_vm3, %v3178_v60, 0.0 }
 0xafb   :  { %3189 = vadd.xlane.f32.xlu0 %v3188_v63  ;;  %v5984_v63 = vmov 32  }
 0xafd   :  { %v3180_v0 = vpop.permute.xlu0 %3179 }
 0xafe   :  { %v3191_v8 = vsel %vm3184_vm3, %v3180_v0, 0.0  ;;  %v5985_v0 = vmov 34  }
 0xaff   :  { %3192 = vadd.xlane.f32.xlu0 %v3191_v8 }
 0xb15   :  { %3207 = vrot.lane.b32.xlu0 %v3203_v11, %s5974_s26  ;;  %s5991_s26 = smov 120  }
 0xb38   :  { %v3187_v12 = vpop.xlane.xlu1 %3186 }
 0xb39   :  { %v3194_v21 = vmax.f32 %v3187_v12, 1e-12 }
 0xb3b   :  { %5871 = vrsqrt.f32 %v3194_v21 }
 0xb3c   :  { %v3205_v1 = vpop.permute.xlu1 %3204 }
 0xb45   :  { %v5872_v22 = vpop.eup %5871 }
 0xb46   :  { %v3200_v25 = vmul.f32 %v5872_v22, %v7334_v39 }
 0xb48   :  { %3212 = vrot.lane.b32.xlu1 %v3200_v25, %s5980_s2  ;;  %v5988_v25 = vmov 0  }
 0xb88   :  { %v3190_v33 = vpop.xlane.xlu0 %3189 }
 0xb89   :  { %v3195_v37 = vmax.f32 %v3190_v33, 1e-12  ;;  %v3327_v33 = vsel %vm3326_vm5, 1, %v5988_v25 }
 0xb8b   :  { %5873 = vrsqrt.f32 %v3195_v37  ;;  %v3377_v37 = vsub.s32 5, %v8083_v34 }
 0xb8c   :  { %v3193_v40 = vpop.xlane.xlu0 %3192 }
 0xb8d   :  { %v3196_v48 = vmax.f32 %v3193_v40, 1e-12 }
 0xb8f   :  { %5875 = vrsqrt.f32 %v3196_v48  ;;  %v3381_v48 = vstv %s3698_s15 }
 0xb90   :  { %v3208_v3 = vpop.permute.xlu0 %3207 }
 0xb95   :  { %v5874_v51 = vpop.eup %5873 }
 0xb96   :  { %v3201_v54 = vmul.f32 %v5874_v51, %v3164_v58 }
 0xb98   :  { %3214 = vrot.lane.b32.xlu1 %v3201_v54, %s5980_s2 }
 0xb99   :  { %v5876_v56 = vpop.eup %5875 }
 0xb9a   :  { %v3202_v62 = vmul.f32 %v5876_v56, %v3167_v42  ;;  %v3337_v56 = vsub.s32 4, %v8083_v34 }
 0xb9c   :  { %3216 = vrot.lane.b32.xlu0 %v3202_v62, %s5980_s2  ;;  %3218 = vrot.lane.b32.xlu1 %v3205_v1, %s5980_s2  ;;  %v3490_v1 = vsub.s32 7, %v8083_v34 }
 0xba0   :  { %3220 = vrot.lane.b32.xlu0 %v3208_v3, %s5980_s2  ;;  %s3340_s2 = sld [smem:[#allocation10]]  ;;  %v3423_v3 = vsub.s32 6, %v8083_v34 }
 0xbba   :  { %v3213_v15 = vpop.permute.xlu1 %3212 }
 0xc0a   :  { %v3215_v20 = vpop.permute.xlu1 %3214 }
 0xc0b   :  { %v5680_v45 = vpack.c.bf16 %v3215_v20, %v3213_v15 }
 0xc0d   :  { %5682 = vmatpush3.bf16.xpose.msk.msra.mxu0 %vm5681_vm4, %v5680_v45  ;;  %5696 = vmatpush3.bf16.xpose.msk.msra.mxu1 %vm5681_vm4, %v5680_v45 }
 0xc0e   :  { %5683 = vmatprep.subr.bf16.mxu0 %v7679_v2  ;;  %5694 = vmatprep.subr.bf16.mxu1 %v7679_v2  ;;  %v3217_v24 = vpop.permute.xlu0 %3216  ;;  %v3219_v43 = vpop.permute.xlu1 %3218 }
 0xc0f   :  { %v5684_v27 = vpack.c.bf16 %v3219_v43, %v3217_v24 }
 0xc12   :  { %v3221_v46 = vpop.permute.xlu0 %3220 }
 0xc15   :  { %5686 = vmatpush3.bf16.xpose.msk.msra.mxu0 %vm5681_vm4, %v5684_v27  ;;  %5697 = vmatpush3.bf16.xpose.msk.msra.mxu1 %vm5681_vm4, %v5684_v27  ;;  %vm3443_vm4 = vcmask 195712  }
 0xc16   :  { %4179 = vmatprep.subr.mxu0 %v7692_v23  ;;  %5695 = vmatprep.subr.mxu1 %v7692_v23 }
 0xc1d   :  { %4180 = vmatpush3.xpose.msk.msra.mxu0 %vm3184_vm3, %v3221_v46  ;;  %5698 = vmatpush3.xpose.msk.msra.mxu1 %vm3184_vm3, %v3221_v46 }
 0xc1e   :  { %5687 = vmatprep.subr.bf16.mxu1 %v7679_v2 }
 0xc20   :  { %4182 = vmatmul.mubr.msk.f32.vlgmr.msra.gmra.mrb[32].mxu0 %vm3184_vm3, %v3213_v15  ;;  %4191 = vmatmul.mubr.msk.f32.vlgmr.msra.gmra.mrb[40].mxu1 %vm3184_vm3, %v3219_v43  ;;  %v3341_v15 = vstv %s3340_s2 }
 0xc21   :  { %5689 = vmatpush3.bf16.msra.mxu1 %v5688_v10  ;;  %4184 = vmatprep.mubr.msk.f32.mxu0 %vm5979_vm2, %v7692_v23 }
 0xc22   :  { %4193 = vmatprep.mubr.msk.f32.mxu1 %vm5979_vm2, %v7692_v23  ;;  %5690 = vmatprep.subr.bf16.mxu1 %v7679_v2  ;;  %v7409_v2 = vld [vmem:[%s7495_s8] sm:$0xff]  ;;  %s5986_s8 = smov 8  }
 0xc23   :  { %v3462_v36 = vmul.f32 %v3461_v55, %v7409_v2 }
 0xc24   :  { %4185 = vmatmul.mubr.msk.f32.gmra.mrb[34].mxu0 %vm3184_vm3, %v3215_v20  ;;  %4194 = vmatmul.mubr.msk.f32.gmra.mrb[42].mxu1 %vm3184_vm3, %v3221_v46 }
 0xc25   :  { %5692 = vmatpush3.bf16.msra.mxu1 %v5691_v7  ;;  %4187 = vmatprep.mubr.msk.f32.mxu0 %vm5979_vm2, %v7692_v23  ;;  %v3468_v17 = vadd.f32 %v3467_v61, %v3462_v36 }
 0xc26   :  { %4204 = vmatprep.mubr.msk.f32.mxu1 %vm5979_vm2, %v7692_v23  ;;  %vm3354_vm2 = vcmask 64512  }
 0xc27   :  { %v3475_v49 = vadd.f32 %v3474_v19, %v3468_v17  ;;  %v3469_v19 = vadd.f32 %v7414_v57, %v7409_v2 }
 0xc28   :  { %4188 = vmatmul.mubr.msk.f32.gmra.mrb[36].mxu0 %vm3184_vm3, %v3217_v24 }
 0xc29   :  { %v3482_v12 = vadd.f32 %v3481_v52, %v3475_v49 }
 0xcf3   :  { %v3298_v26 = vpop.f32.mrb[32].mxu0  ;;  %v3313_v5 = vpop.f32.mrb[40].mxu1 }
 0xcf4   :  { %v7435_v58 = vsub.f32 %v3298_v26, %v3697_v18  ;;  %3372 = vperm.xlu0 %5771, %v3313_v5   ;;  %3485 = vperm.xlu1 %5770, %v3313_v5   ;;  %v4183_v41 = vpop.f32.mrb[33].mxu0  ;;  %v4192_v42 = vpop.f32.mrb[41].mxu1  ;;  %v3476_v26 = vadd.f32 %v7423_v9, %v3469_v19  ;;  %v3716_v19 = vld [vmem:[%s7497_s10] ss:$0 sm:$0xff] }
 0xcf6   :  { %v3483_v42 = vadd.f32 %v7433_v28, %v3476_v26  ;;  %vm3346_vm1 = vcmp.eq.f32.partialorder %v7435_v58, 0.0 }
 0xcf7   :  { %v7438_v53 = vpop.f32.mrb[34].mxu0  ;;  %v3318_v60 = vpop.f32.mrb[42].mxu1 }
 0xcf8   :  { %5773 = vset.pattern.permute.xlu0 %v5984_v63  ;;  %5772 = vset.pattern.permute.xlu1 %v5985_v0  ;;  %v4186_v8 = vpop.f32.mrb[35].mxu0  ;;  %v4195_v11 = vpop.f32.mrb[43].mxu1  ;;  %v3378_v40 = vrot.slane %v3318_v60, %v3377_v37  ;;  %v3338_v31 = vrot.slane %v3318_v60, %v3337_v56  ;;  %v3491_v43 = vrot.slane %v3318_v60, %v3490_v1  ;;  %vm3504_vm14 = vcmp.ne.f32.partialorder %v3483_v42, 0.0 }
 0xcf9   :  { %3332 = vperm.xlu0 %5773, %v3313_v5   ;;  %3418 = vperm.xlu1 %5772, %v3313_v5   ;;  %v3424_v44 = vrot.slane %v3318_v60, %v3423_v3  ;;  %v3505_v2 = vsel %vm3504_vm14, 1.0, %v7692_v23 }
 0xcfb   :  { %v7440_v21 = vpop.f32.mrb[36].mxu0 }
 0xcfc   :  { %v4189_v22 = vpop.f32.mrb[37].mxu0 }
 0xcfd   :  { %3494 = vrot.lane.b32.xlu1 %v3482_v12, %s5971_s19  ;;  %5774 = vset.pattern.permute.xlu0 %v5982_v13 }
 0xd01   :  { %3367 = vrot.lane.b32.xlu1 %v3697_v18, %s5986_s8 }
 0xd05   :  { %3413 = vrot.lane.b32.xlu1 %v3697_v18, %s5987_s6 }
 0xd09   :  { %3387 = vrot.lane.b32.xlu1 %v3327_v33, %s5986_s8 }
 0xd0d   :  { %3433 = vrot.lane.b32.xlu1 %v3327_v33, %s5987_s6 }
 0xd73   :  { %v3373_v51 = vpop.permute.xlu0 %3372  ;;  %v3486_v54 = vpop.permute.xlu1 %3485 }
 0xd74   :  { %v3379_v62 = vadd.f32 %v3378_v40, %v3373_v51  ;;  %v3492_v46 = vadd.f32 %v3491_v43, %v3486_v54 }
 0xd76   :  { %v3382_v13 = vadd.f32 %v3381_v48, %v3379_v62 }
 0xd78   :  { %v3333_v20 = vpop.permute.xlu0 %3332  ;;  %v3419_v45 = vpop.permute.xlu1 %3418  ;;  %vm3383_vm6 = vcmp.ge.f32.partialorder %v3382_v13, 0.0  ;;  %v3384_v24 = vmul.f32 0.01, %v3382_v13 }
 0xd79   :  { %v3339_v27 = vadd.f32 %v3338_v31, %v3333_v20  ;;  %v3425_v32 = vadd.f32 %v3424_v44, %v3419_v45 }
 0xd7a   :  { %v3385_v30 = vsel %vm3383_vm6, %v3382_v13, %v3384_v24 }
 0xd7b   :  { %v3342_v38 = vadd.f32 %v3341_v15, %v3339_v27  ;;  %3392 = vrot.lane.b32.xlu0 %v3385_v30, %s5989_s18  ;;  %v3428_v7 = vadd.f32 %v3427_v16, %v3425_v32 }
 0xd7c   :  { %v3495_v10 = vpop.permute.xlu1 %3494 }
 0xd7d   :  { %v3497_v47 = vadd.f32 %v3495_v10, %v3492_v46  ;;  %vm3343_vm7 = vcmp.ge.f32.partialorder %v3342_v38, 0.0  ;;  %v3344_v50 = vmul.f32 0.01, %v3342_v38  ;;  %v3430_v61 = vmul.f32 0.01, %v3428_v7 }
 0xd7e   :  { %vm3429_vm9 = vcmp.ge.f32.partialorder %v3428_v7, 0.0 }
 0xd7f   :  { %v3500_v29 = vadd.f32 %v3499_v6, %v3497_v47  ;;  %v3345_v55 = vsel %vm3343_vm7, %v3342_v38, %v3344_v50  ;;  %v3431_v14 = vsel %vm3429_vm9, %v3428_v7, %v3430_v61  ;;  %vm3532_vm9 = vcmask 195584  }
 0xd80   :  { %3349 = vrot.lane.b32.xlu1 %v3345_v55, %s5990_s7  ;;  %v3368_v18 = vpop.permute.xlu1 %3367 }
 0xd81   :  { %vm3501_vm8 = vcmp.ge.f32.partialorder %v3500_v29, 0.0  ;;  %v3502_v4 = vmul.f32 0.01, %v3500_v29  ;;  %v3370_v5 = vsub.f32 %v7438_v53, %v3368_v18 }
 0xd83   :  { %v3503_v36 = vsel %vm3501_vm8, %v3500_v29, %v3502_v4  ;;  %vm3386_vm11 = vcmp.eq.f32.partialorder %v3370_v5, 0.0  ;;  %vm3347_vm8 = vmor %vm3346_vm1, %vm3326_vm5  ;;  %vm3530_vm5 = vcmask 130048  }
 0xd84   :  { %3507 = vrot.lane.b32.xlu0 %v3503_v36, %s5990_s7  ;;  %v3414_v17 = vpop.permute.xlu1 %3413 }
 0xd85   :  { %v3416_v9 = vsub.f32 %v7440_v21, %v3414_v17 }
 0xd87   :  { %vm3432_vm6 = vcmp.eq.f32.partialorder %v3416_v9, 0.0 }
 0xd88   :  { %3438 = vrot.lane.b32.xlu0 %v3431_v14, %s5991_s26  ;;  %v3388_v35 = vpop.permute.xlu1 %3387 }
 0xd89   :  { %vm3389_vm10 = vcmp.ne.s32.totalorder %v3388_v35, 0  ;;  %v3650_v35 = vmul.f32 %v3716_v19, %v7334_v39 }
 0xd8a   :  { %vm3390_vm13 = vmor %vm3386_vm11, %vm3389_vm10 }
 0xd8c   :  { %v3434_v63 = vpop.permute.xlu1 %3433 }
 0xd8d   :  { %vm3435_vm15 = vcmp.ne.s32.totalorder %v3434_v63, 0 }
 0xd8e   :  { %vm3436_vm7 = vmor %vm3432_vm6, %vm3435_vm15 }
 0xded   :  { %v3393_v41 = vpop.permute.xlu0 %3392 }
 0xdee   :  { %v3395_v49 = vmul.f32 %v3393_v41, %v3370_v5 }
 0xdf0   :  { %v3396_v52 = vsel %vm3390_vm13, -1e+10, %v3395_v49  ;;  %v3656_v49 = vstv %s7499_s12 }
 0xdf1   :  { %v3398_v60 = vsel %vm3397_vm12, %v3396_v52, -inf }
 0xdf2   :  { %3399 = vmax.xlane.f32.xlu0 %v3398_v60  ;;  %v3350_v53 = vpop.permute.xlu1 %3349 }
 0xdf3   :  { %v3352_v11 = vmul.f32 %v3350_v53, %v7435_v58 }
 0xdf5   :  { %v3353_v25 = vsel %vm3347_vm8, -1e+10, %v3352_v11 }
 0xdf6   :  { %v3508_v57 = vpop.permute.xlu0 %3507  ;;  %v3355_v33 = vsel %vm3354_vm2, %v3353_v25, -inf }
 0xdf7   :  { %v3510_v0 = vmul.f32 %v3508_v57, %v3505_v2 }
 0xdf9   :  { %vm3511_vm0 = vcmp.eq.f32.partialorder %v3510_v0, 0.0 }
 0xdfa   :  { %v3439_v28 = vpop.permute.xlu0 %3438  ;;  %v3512_v8 = vsel %vm3511_vm0, -100000.0, %v3510_v0 }
 0xdfb   :  { %v3441_v12 = vmul.f32 %v3439_v28, %v3416_v9  ;;  %v3513_v22 = vsel %vm3354_vm2, %v3512_v8, -inf }
 0xdfc   :  { %3514 = vmax.xlane.f32.xlu1 %v3513_v22 }
 0xdfd   :  { %v3442_v23 = vsel %vm3436_vm7, -1e+10, %v3441_v12 }
 0xdfe   :  { %v3444_v21 = vsel %vm3443_vm4, %v3442_v23, -inf }
 0xdff   :  { %3445 = vmax.xlane.f32.xlu0 %v3444_v21 }
 0xe03   :  { %3356 = vmax.xlane.f32.xlu0 %v3355_v33 }
 0xe7f   :  { %v3400_v37 = vpop.xlane.xlu0 %3399 }
 0xe80   :  { %v3401_v40 = vsub.f32 %v3396_v52, %v3400_v37 }
 0xe82   :  { %v3402_v48 = vmul.f32 1.442695, %v3401_v40 }
 0xe84   :  { %5877 = vpow2.f32 %v3402_v48 }
 0xe89   :  { %v3515_v62 = vpop.xlane.xlu1 %3514 }
 0xe8a   :  { %v3516_v59 = vsub.f32 %v3512_v8, %v3515_v62 }
 0xe8c   :  { %v3446_v58 = vpop.xlane.xlu0 %3445  ;;  %v3517_v34 = vmul.f32 1.442695, %v3516_v59 }
 0xe8d   :  { %v3447_v51 = vsub.f32 %v3442_v23, %v3446_v58 }
 0xe8e   :  { %v5878_v54 = vpop.eup %5877 }
 0xe8f   :  { %v3448_v56 = vmul.f32 1.442695, %v3447_v51  ;;  %3405 = vrot.lane.b32.xlu1 %v5878_v54, %s5991_s26 }
 0xe90   :  { %v3357_v3 = vpop.xlane.xlu0 %3356 }
 0xe91   :  { %5879 = vpow2.f32 %v3448_v56  ;;  %v3358_v13 = vsub.f32 %v3353_v25, %v3357_v3 }
 0xe92   :  { %5881 = vpow2.f32 %v3517_v34 }
 0xe93   :  { %v3359_v31 = vmul.f32 1.442695, %v3358_v13 }
 0xe95   :  { %5883 = vpow2.f32 %v3359_v31 }
 0xe9b   :  { %v5880_v1 = vpop.eup %5879 }
 0xe9c   :  { %3451 = vrot.lane.b32.xlu0 %v5880_v1, %s5989_s18  ;;  %v5882_v15 = vpop.eup %5881 }
 0xe9d   :  { %v3519_v20 = vsel %vm3354_vm2, %v5882_v15, 0.0 }
 0xe9f   :  { %v5884_v45 = vpop.eup %5883 }
 0xea0   :  { %v3361_v24 = vsel %vm3354_vm2, %v5884_v45, 0.0 }
 0xeb3   :  { %3520 = vadd.xlane.f32.xlu1 %v3519_v20 }
 0xebb   :  { %3362 = vadd.xlane.f32.xlu0 %v3361_v24 }
 0xf01   :  { %v3406_v43 = vpop.permute.xlu1 %3405 }
 0xf02   :  { %v3408_v27 = vsel %vm3354_vm2, %v3406_v43, 0.0 }
 0xf03   :  { %3409 = vadd.xlane.f32.xlu1 %v3408_v27 }
 0xf0e   :  { %v3452_v44 = vpop.permute.xlu0 %3451 }
 0xf0f   :  { %v3454_v30 = vsel %vm3354_vm2, %v3452_v44, 0.0 }
 0xf10   :  { %3455 = vadd.xlane.f32.xlu0 %v3454_v30 }
 0xf40   :  { %v3521_v46 = vpop.xlane.xlu1 %3520 }
 0xf41   :  { %5885 = vrcp.f32 %v3521_v46 }
 0xf48   :  { %v3363_v6 = vpop.xlane.xlu0 %3362 }
 0xf4b   :  { %v5886_v38 = vpop.eup %5885 }
 0xf4c   :  { %v3523_v32 = vmul.f32 %v5886_v38, %v5882_v15 }
 0xf4e   :  { %v3524_v16 = vmul.f32 %v3523_v32, %v3505_v2 }
 0xf50   :  { %3526 = vrot.lane.b32.xlu1 %v3524_v16, %s5971_s19 }
 0xf90   :  { %v3410_v10 = vpop.xlane.xlu1 %3409 }
 0xf91   :  { %5887 = vrcp.f32 %v3410_v10 }
 0xf9b   :  { %v5888_v50 = vpop.eup %5887 }
 0xf9c   :  { %v3412_v55 = vmul.f32 %v5888_v50, %v5878_v54 }
 0xf9d   :  { %v3456_v47 = vpop.xlane.xlu0 %3455 }
 0xf9e   :  { %5889 = vrcp.f32 %v3456_v47 }
 0xf9f   :  { %5891 = vrcp.f32 %v3363_v6 }
 0xfa8   :  { %v5890_v7 = vpop.eup %5889 }
 0xfa9   :  { %v5892_v29 = vpop.eup %5891  ;;  %v3458_v4 = vmul.f32 %v5890_v7, %v5880_v1 }
 0xfaa   :  { %v3365_v36 = vmul.f32 %v5892_v29, %v5884_v45 }
 0xfac   :  { %v3529_v61 = vsel %vm3354_vm2, %v3365_v36, %v3412_v55 }
 0xfad   :  { %v3531_v18 = vsel %vm3530_vm5, %v3529_v61, %v3458_v4 }
 0xfc2   :  { %v3527_v14 = vpop.permute.xlu1 %3526 }
 0xfc3   :  { %v3533_v17 = vsel %vm3532_vm9, %v3531_v18, %v3527_v14 }
 0xfc4   :  { %4205 = vmatmul.mubr.msk.f32.vlgmr.msra.gmra.mrb[44].mxu1 %vm3184_vm3, %v3533_v17 }
0x1097   :  { %v3639_v26 = vpop.f32.mrb[44].mxu1 }
0x1098   :  { %v3651_v5 = vadd.f32 %v3650_v35, %v3639_v26  ;;  %v4206_v41 = vpop.f32.mrb[45].mxu1 }
0x109a   :  { %v3652_v42 = vsel %vm3184_vm3, %v3651_v5, 0.0 }
0x109b   :  { %3653 = vadd.xlane.f32.xlu0 %v3652_v42 }
0x1128   :  { %v3654_v52 = vpop.xlane.xlu0 %3653 }
0x1129   :  { %v3657_v60 = vadd.f32 %v3656_v49, %v3654_v52 }
0x112b   :  { %3659 = vst [vmem:[%s7500_s13 + $0x8] sm:$0xff] %v3657_v60 }
0x112c   :  { %3664 = vsyncpa [#allocation5], 1 }
0x112d   :  { %3665 = vsyncpa [#allocation8], 1 }
0x112e   :  { %3666 = vsyncpa [#allocation6], 1 }
0x112f   :  { %3667 = vsyncpa [#allocation11], 1 }

</bundles_post_ra>
